<compile_context>
chip_gen: v7x
topology: tpu7x:2x2x1
jax: 0.10.0
libtpu: 0.0.40
codegen_flags: <defaults>
</compile_context>

<pallas_src>
import functools
import math

import jax
import jax.numpy as jnp
from jax.experimental import pallas as pl
from jax.experimental.pallas import tpu as pltpu

NEG_INF = -1e9                     # finite stand-in for -inf attention masking
MXU_DTYPE = jnp.bfloat16           # matmul operand dtype (bf16 MXU on v5e/v6e/v7x)
ACT_DTYPE = jnp.bfloat16           # inter-kernel activation dtype (halves HBM traffic)
VMEM_LIMIT = 48 * 1024 * 1024      # conservative: fits v7x's 64 MiB physical VMEM
LN_EPS = 1e-5


def _round_up(x, m):
    return (x + m - 1) // m * m


def _pad2(a, rows, cols):
    if a.shape == (rows, cols):
        return a
    return jnp.pad(a, ((0, rows - a.shape[0]), (0, cols - a.shape[1])))


# ----------------------------------------------------------------------------
# Pallas kernels
# ----------------------------------------------------------------------------
def _linear_kernel(x_ref, w_ref, b_ref, o_ref, acc_ref):
    """K-tiled bf16 matmul with f32 accumulator; bias added in the epilogue."""
    @pl.when(pl.program_id(2) == 0)
    def _():
        acc_ref[...] = jnp.zeros_like(acc_ref)

    acc_ref[...] += jnp.dot(x_ref[...], w_ref[...], preferred_element_type=jnp.float32)

    @pl.when(pl.program_id(2) == pl.num_programs(2) - 1)
    def _():
        o_ref[...] = (acc_ref[...] + b_ref[...]).astype(o_ref.dtype)


def _ffn_ln_kernel(x_ref, w1_ref, b1_ref, w2_ref, b2_ref, g_ref, bln_ref,
                   o_ref, acc_ref, *, eps):
    """Fused FFN with the hidden (F) axis tiled: relu(x@w1+b1)@w2 accumulated in f32,
    then bias + residual (= x) + LayerNorm in the epilogue."""
    @pl.when(pl.program_id(1) == 0)
    def _():
        acc_ref[...] = jnp.zeros_like(acc_ref)

    h = jnp.dot(x_ref[...], w1_ref[...], preferred_element_type=jnp.float32) + b1_ref[...]
    h = jnp.maximum(h, 0.0).astype(MXU_DTYPE)
    acc_ref[...] += jnp.dot(h, w2_ref[...], preferred_element_type=jnp.float32)

    @pl.when(pl.program_id(1) == pl.num_programs(1) - 1)
    def _():
        x = acc_ref[...] + b2_ref[...] + x_ref[...].astype(jnp.float32)
        mu = jnp.mean(x, axis=-1, keepdims=True)
        xc = x - mu
        var = jnp.mean(xc * xc, axis=-1, keepdims=True)
        o_ref[...] = (xc * jax.lax.rsqrt(var + eps) * g_ref[...] + bln_ref[...]).astype(o_ref.dtype)


def _attend_heads(q_src, k_src, v_src, nhead, dh, bias, scale):
    """Per-head scores -> softmax -> context (bf16 operands, f32 softmax).
    Returns the concatenated (T, D) f32 context for one full-width output projection."""
    ctxs = []
    for h in range(nhead):
        sl = slice(h * dh, (h + 1) * dh)
        s = jax.lax.dot_general(q_src[:, sl], k_src[:, sl], (((1,), (1,)), ((), ())),
                                preferred_element_type=jnp.float32)      # q @ k^T
        s = s * scale
        if bias is not None:
            s = s + bias
        m = jnp.max(s, axis=-1, keepdims=True)
        p = jnp.exp(s - m)
        p = p * pl.reciprocal(jnp.sum(p, axis=-1, keepdims=True), approx=True)
        ctxs.append(jnp.dot(p.astype(v_src.dtype), v_src[:, sl],
                            preferred_element_type=jnp.float32))         # (T, dh)
    return jnp.concatenate(ctxs, axis=-1)                                # (T, D) f32


def _proj_add_ln(ctx_f32, wo, bo, res, g, b, eps, out_dtype):
    """Single (T,D)@(D,D) output projection, then fused residual add + LayerNorm."""
    out = jnp.dot(ctx_f32.astype(wo.dtype), wo, preferred_element_type=jnp.float32) + bo
    x = out + res.astype(jnp.float32)
    mu = jnp.mean(x, axis=-1, keepdims=True)
    xc = x - mu
    var = jnp.mean(xc * xc, axis=-1, keepdims=True)
    return (xc * jax.lax.rsqrt(var + eps) * g + b).astype(out_dtype)


def _self_attn_ln_kernel(qkv_ref, *rest, nhead, scale, has_mask, has_kpm, eps):
    """All heads of one batch element; fused QKV input, fused output projection,
    fused residual + LayerNorm.  Mask operands exist only when statically present."""
    i = 0
    mask_ref = kpm_ref = None
    if has_mask:
        mask_ref = rest[i]; i += 1
    if has_kpm:
        kpm_ref = rest[i]; i += 1
    wo_ref, bo_ref, res_ref, g_ref, b_ref, o_ref = rest[i:i + 6]

    qkv = qkv_ref[0]                                   # (T, 3D) bf16
    D = qkv.shape[1] // 3
    dh = D // nhead

    bias = None
    if has_mask:
        bias = mask_ref[0]                             # (T, S) f32
    if has_kpm:
        kb = kpm_ref[0]                                # (1, S) f32
        bias = kb if bias is None else bias + kb

    ctx = _attend_heads(qkv[:, :D], qkv[:, D:2 * D], qkv[:, 2 * D:], nhead, dh, bias, scale)
    o_ref[0] = _proj_add_ln(ctx, wo_ref[...], bo_ref[...], res_ref[0],
                            g_ref[...], b_ref[...], eps, o_ref.dtype)


def _cross_attn_ln_kernel(q_ref, kv_ref, *rest, nhead, scale, has_mask, has_kpm, eps):
    i = 0
    mask_ref = kpm_ref = None
    if has_mask:
        mask_ref = rest[i]; i += 1
    if has_kpm:
        kpm_ref = rest[i]; i += 1
    wo_ref, bo_ref, res_ref, g_ref, b_ref, o_ref = rest[i:i + 6]

    D = q_ref.shape[2]
    dh = D // nhead
    q = q_ref[0]                                       # (T, D)  bf16
    kv = kv_ref[0]                                     # (S, 2D) bf16

    bias = None
    if has_mask:
        bias = mask_ref[0]
    if has_kpm:
        kb = kpm_ref[0]
        bias = kb if bias is None else bias + kb

    ctx = _attend_heads(q, kv[:, :D], kv[:, D:], nhead, dh, bias, scale)
    o_ref[0] = _proj_add_ln(ctx, wo_ref[...], bo_ref[...], res_ref[0],
                            g_ref[...], b_ref[...], eps, o_ref.dtype)


# ----------------------------------------------------------------------------
# Pallas wrappers
# ----------------------------------------------------------------------------
def linear(x, w, b, out_dtype=ACT_DTYPE, tm=512, tn=512, tk=512):
    """x: (..., K) @ w: (K, N) + b: (N,), tiled over (M, N, K), bf16 operands / f32 acc."""
    shp = x.shape
    K = shp[-1]
    N = w.shape[1]
    x2 = x.reshape(-1, K).astype(MXU_DTYPE)            # no-op when activations already bf16
    w = w.astype(MXU_DTYPE)                            # no-op: weights stored bf16
    b = b.astype(jnp.float32)
    M = x2.shape[0]

    tm, tk, tn = min(tm, M), min(tk, K), min(tn, N)
    Mp, Kp, Np = _round_up(M, tm), _round_up(K, tk), _round_up(N, tn)

    # TODO(synk): for tile-unfriendly K/N, pre-pad weights once at build time (here the
    # pads are no-ops for the chosen dims).
    xp = _pad2(x2, Mp, Kp)
    wp = _pad2(w, Kp, Np)
    bp = b if Np == N else jnp.pad(b, (0, Np - N))

    out = pl.pallas_call(
        _linear_kernel,
        grid=(Mp // tm, Np // tn, Kp // tk),
        in_specs=[
            pl.BlockSpec((tm, tk), lambda i, j, k: (i, k)),
            pl.BlockSpec((tk, tn), lambda i, j, k: (k, j)),
            pl.BlockSpec((1, tn), lambda i, j, k: (0, j)),
        ],
        out_specs=pl.BlockSpec((tm, tn), lambda i, j, k: (i, j)),
        out_shape=jax.ShapeDtypeStruct((Mp, Np), out_dtype),
        scratch_shapes=[pltpu.VMEM((tm, tn), jnp.float32)],
        compiler_params=pltpu.CompilerParams(
            dimension_semantics=("parallel", "parallel", "arbitrary"),
            vmem_limit_bytes=VMEM_LIMIT),
    )(xp, wp, bp.reshape(1, -1))

    if Mp != M or Np != N:
        out = out[:M, :N]
    return out.reshape(shp[:-1] + (N,))


def ffn_add_ln(x, p, ln, eps=LN_EPS, tm=256, tf=512):
    """Fused FFN (F-tiled) + residual + LayerNorm.  x is both matmul input and residual."""
    shp = x.shape
    D = shp[-1]
    F = p["w1"].shape[1]
    x2 = x.reshape(-1, D).astype(MXU_DTYPE)
    M = x2.shape[0]

    tm, tf = min(tm, M), min(tf, F)
    Mp, Fp = _round_up(M, tm), _round_up(F, tf)

    x2p = x2 if Mp == M else jnp.pad(x2, ((0, Mp - M), (0, 0)))
    w1 = p["w1"].astype(MXU_DTYPE)
    w2 = p["w2"].astype(MXU_DTYPE)
    b1 = p["b1"].astype(jnp.float32)
    b2 = p["b2"].astype(jnp.float32)
    if Fp != F:
        w1 = jnp.pad(w1, ((0, 0), (0, Fp - F)))
        b1 = jnp.pad(b1, (0, Fp - F))
        w2 = jnp.pad(w2, ((0, Fp - F), (0, 0)))

    out = pl.pallas_call(
        functools.partial(_ffn_ln_kernel, eps=eps),
        grid=(Mp // tm, Fp // tf),
        in_specs=[
            pl.BlockSpec((tm, D), lambda i, f: (i, 0)),
            pl.BlockSpec((D, tf), lambda i, f: (0, f)),
            pl.BlockSpec((1, tf), lambda i, f: (0, f)),
            pl.BlockSpec((tf, D), lambda i, f: (f, 0)),
            pl.BlockSpec((1, D), lambda i, f: (0, 0)),
            pl.BlockSpec((1, D), lambda i, f: (0, 0)),
            pl.BlockSpec((1, D), lambda i, f: (0, 0)),
        ],
        out_specs=pl.BlockSpec((tm, D), lambda i, f: (i, 0)),
        out_shape=jax.ShapeDtypeStruct((Mp, D), ACT_DTYPE),
        scratch_shapes=[pltpu.VMEM((tm, D), jnp.float32)],
        compiler_params=pltpu.CompilerParams(
            dimension_semantics=("parallel", "arbitrary"),
            vmem_limit_bytes=VMEM_LIMIT),
    )(x2p, w1, b1.reshape(1, -1), w2, b2.reshape(1, -1),
      ln["g"].reshape(1, -1), ln["b"].reshape(1, -1))

    if Mp != M:
        out = out[:M]
    return out.reshape(shp)


def _attention_call(kernel, first_operands, first_specs, B, T, D, S, p, ln, x_res,
                    nhead, attn_mask, key_pad_bias, eps):
    has_mask = attn_mask is not None
    has_kpm = key_pad_bias is not None
    scale = 1.0 / math.sqrt(D // nhead)

    operands = list(first_operands)
    in_specs = list(first_specs)
    if has_mask:
        operands.append(attn_mask.astype(jnp.float32).reshape(1, T, S))
        in_specs.append(pl.BlockSpec((1, T, S), lambda b: (0, 0, 0)))
    if has_kpm:
        operands.append(key_pad_bias.astype(jnp.float32))
        in_specs.append(pl.BlockSpec((1, 1, S), lambda b: (b, 0, 0)))
    operands += [p["wo"].astype(MXU_DTYPE), p["bo"].astype(jnp.float32).reshape(1, -1),
                 x_res.astype(ACT_DTYPE),
                 ln["g"].reshape(1, -1), ln["b"].reshape(1, -1)]
    in_specs += [pl.BlockSpec((D, D), lambda b: (0, 0)),
                 pl.BlockSpec((1, D), lambda b: (0, 0)),
                 pl.BlockSpec((1, T, D), lambda b: (b, 0, 0)),
                 pl.BlockSpec((1, D), lambda b: (0, 0)),
                 pl.BlockSpec((1, D), lambda b: (0, 0))]

    return pl.pallas_call(
        functools.partial(kernel, nhead=nhead, scale=scale,
                          has_mask=has_mask, has_kpm=has_kpm, eps=eps),
        grid=(B,),
        in_specs=in_specs,
        out_specs=pl.BlockSpec((1, T, D), lambda b: (b, 0, 0)),
        out_shape=jax.ShapeDtypeStruct((B, T, D), ACT_DTYPE),
        compiler_params=pltpu.CompilerParams(
            dimension_semantics=("parallel",), vmem_limit_bytes=VMEM_LIMIT),
    )(*operands)


def self_attention_add_ln(x, p, ln, nhead, attn_mask, key_pad_bias, eps=LN_EPS):
    """x: (B, T, D); fused QKV projection + all-heads attention + out proj + residual + LN."""
    B, T, D = x.shape
    qkv = linear(x, p["wqkv"], p["bqkv"], out_dtype=ACT_DTYPE)          # (B, T, 3D) bf16
    return _attention_call(
        _self_attn_ln_kernel,
        [qkv], [pl.BlockSpec((1, T, 3 * D), lambda b: (b, 0, 0))],
        B, T, D, T, p, ln, x, nhead, attn_mask, key_pad_bias, eps)


def cross_attention_add_ln(x, memory, p, ln, nhead, attn_mask, key_pad_bias, eps=LN_EPS):
    """x: (B, T, D) queries; memory: (B, S, D) keys/values (fused KV projection)."""
    B, T, D = x.shape
    S = memory.shape[1]
    q = linear(x, p["wq"], p["bq"], out_dtype=ACT_DTYPE)                # (B, T, D)
    kv = linear(memory, p["wkv"], p["bkv"], out_dtype=ACT_DTYPE)        # (B, S, 2D)
    return _attention_call(
        _cross_attn_ln_kernel,
        [q, kv],
        [pl.BlockSpec((1, T, D), lambda b: (b, 0, 0)),
         pl.BlockSpec((1, S, 2 * D), lambda b: (b, 0, 0))],
        B, T, D, S, p, ln, x, nhead, attn_mask, key_pad_bias, eps)


# ----------------------------------------------------------------------------
# Model glue (pure JAX): parameters, positional encodings, layer wiring
# ----------------------------------------------------------------------------
def positional_encoding(length, d_model):
    pos = jnp.arange(length, dtype=jnp.float32)[:, None]
    div = jnp.exp(jnp.arange(0, d_model, 2, dtype=jnp.float32) * (-math.log(10000.0) / d_model))
    pe = jnp.zeros((length, d_model), jnp.float32)
    pe = pe.at[:, 0::2].set(jnp.sin(pos * div))
    pe = pe.at[:, 1::2].set(jnp.cos(pos * div))
    return pe


def _linear_params(key, fan_in, fan_out):
    k1, k2 = jax.random.split(key)
    bound = 1.0 / math.sqrt(fan_in)
    return {
        # weights stored bf16 (MXU operand dtype); biases stay f32
        "w": jax.random.uniform(k1, (fan_in, fan_out), jnp.float32, -bound, bound).astype(MXU_DTYPE),
        "b": jax.random.uniform(k2, (fan_out,), jnp.float32, -bound, bound),
    }


def _mha_self_params(key, d_model):
    kq, kk, kv, ko = jax.random.split(key, 4)
    q, k, v, o = (_linear_params(kk_, d_model, d_model) for kk_ in (kq, kk, kv, ko))
    return {
        "wqkv": jnp.concatenate([q["w"], k["w"], v["w"]], axis=1),
        "bqkv": jnp.concatenate([q["b"], k["b"], v["b"]]),
        "wo": o["w"], "bo": o["b"],
    }


def _mha_cross_params(key, d_model):
    kq, kk, kv, ko = jax.random.split(key, 4)
    q, k, v, o = (_linear_params(kk_, d_model, d_model) for kk_ in (kq, kk, kv, ko))
    return {
        "wq": q["w"], "bq": q["b"],
        "wkv": jnp.concatenate([k["w"], v["w"]], axis=1),
        "bkv": jnp.concatenate([k["b"], v["b"]]),
        "wo": o["w"], "bo": o["b"],
    }


def _ffn_params(key, d_model, dim_ff):
    k1, k2 = jax.random.split(key)
    l1 = _linear_params(k1, d_model, dim_ff)
    l2 = _linear_params(k2, dim_ff, d_model)
    return {"w1": l1["w"], "b1": l1["b"], "w2": l2["w"], "b2": l2["b"]}


def _ln_params(d_model):
    return {"g": jnp.ones((d_model,), jnp.float32), "b": jnp.zeros((d_model,), jnp.float32)}


def build_params(key, cfg):
    D, F, V, IN = cfg["d_model"], cfg["dim_ff"], cfg["vocab_size"], cfg["in_features"]
    keys = iter(jax.random.split(key, 64))
    nk = lambda: next(keys)
    params = {"enc_in": _linear_params(nk(), IN, D), "enc_layers": [], "dec_layers": []}
    for _ in range(cfg["num_enc_layers"]):
        params["enc_layers"].append({
            "self_attn": _mha_self_params(nk(), D),
            "ffn": _ffn_params(nk(), D, F),
            "ln1": _ln_params(D), "ln2": _ln_params(D),
        })
    for _ in range(cfg["num_dec_layers"]):
        params["dec_layers"].append({
            "self_attn": _mha_self_params(nk(), D),
            "cross_attn": _mha_cross_params(nk(), D),
            "ffn": _ffn_params(nk(), D, F),
            "ln1": _ln_params(D), "ln2": _ln_params(D), "ln3": _ln_params(D),
        })
    params["embed"] = 0.02 * jax.random.normal(nk(), (V, D), jnp.float32)
    params["out_proj"] = _linear_params(nk(), D, V)
    return params


def encoder_forward(params, src, src_mask, padding_mask, cfg):
    B, S, _ = src.shape
    D, H = cfg["d_model"], cfg["nhead"]
    x = linear(src, params["enc_in"]["w"], params["enc_in"]["b"], out_dtype=jnp.float32)
    x = (x + positional_encoding(S, D)[None]).astype(ACT_DTYPE)

    attn_mask = src_mask
    kpm = None
    if padding_mask is not None:
        kpm = jnp.where(padding_mask, NEG_INF, 0.0).astype(jnp.float32).reshape(B, 1, S)

    for layer in params["enc_layers"]:
        x = self_attention_add_ln(x, layer["self_attn"], layer["ln1"], H, attn_mask, kpm)
        x = ffn_add_ln(x, layer["ffn"], layer["ln2"])
    return x


def decoder_forward(params, tgt, memory, tgt_mask, cfg):
    B, T = tgt.shape
    D, H = cfg["d_model"], cfg["nhead"]

    # TODO(synk): token-embedding gather stays in plain JAX (data-dependent gather).
    x = jnp.take(params["embed"], tgt, axis=0) * math.sqrt(D)
    x = (x + positional_encoding(T, D)[None]).astype(ACT_DTYPE)

    for layer in params["dec_layers"]:
        x = self_attention_add_ln(x, layer["self_attn"], layer["ln1"], H, tgt_mask, None)
        # Matches the spec: decoder(tgt, memory, tgt_mask) — no memory key-padding mask.
        x = cross_attention_add_ln(x, memory, layer["cross_attn"], layer["ln2"], H, None, None)
        x = ffn_add_ln(x, layer["ffn"], layer["ln3"])

    return linear(x, params["out_proj"]["w"], params["out_proj"]["b"], out_dtype=jnp.float32)


def seq2seq_transformer_forward(params, src, tgt, src_mask, tgt_mask, padding_mask, cfg):
    """Mirrors Seq2SeqTransformer.forward: memory = encoder(src, ...); out = decoder(tgt, memory, ...)."""
    memory = encoder_forward(params, src, src_mask, padding_mask, cfg)
    outputs = decoder_forward(params, tgt, memory, tgt_mask, cfg)
    return outputs


# ----------------------------------------------------------------------------
if __name__ == "__main__":
    # Small demo config with MXU/lane-friendly feature widths (128 / 256).
    cfg = dict(in_features=16, d_model=128, nhead=4, dim_ff=256, vocab_size=256,
               num_enc_layers=2, num_dec_layers=2)
    B, S, T = 2, 8, 8

    key = jax.random.PRNGKey(0)
    pkey, skey, tkey = jax.random.split(key, 3)
    params = build_params(pkey, cfg)

    src = jax.random.normal(skey, (B, S, cfg["in_features"]), jnp.float32)
    tgt = jax.random.randint(tkey, (B, T), 0, cfg["vocab_size"], jnp.int32)

    # Causal target mask (NEG_INF standing in for -inf) and a source padding mask.
    tgt_mask = jnp.where(jnp.tril(jnp.ones((T, T), jnp.bool_)), 0.0, NEG_INF).astype(jnp.float32)
    padding_mask = jnp.zeros((B, S), jnp.bool_).at[:, -2:].set(True)

    fwd = jax.jit(functools.partial(seq2seq_transformer_forward, cfg=cfg))
    out = fwd(params, src, tgt, None, tgt_mask, padding_mask)
    out = jax.block_until_ready(out)

    assert out.shape == (B, T, cfg["vocab_size"])
    assert bool(jnp.all(jnp.isfinite(out)))
    print("KERNEL_OK")
</pallas_src>

<mosaic_0001>
module attributes {stable_mosaic.version = 11 : i64} {
  func.func @_linear_kernel(%arg0: i32, %arg1: i32, %arg2: i32, %arg3: memref<16x16xbf16, #tpu.memory_space<vmem>>, %arg4: memref<16x128xbf16, #tpu.memory_space<vmem>>, %arg5: memref<1x128xf32, #tpu.memory_space<vmem>>, %arg6: memref<16x128xf32, #tpu.memory_space<vmem>>, %arg7: memref<16x128xf32, #tpu.memory_space<vmem>>) attributes {dimension_semantics = [#tpu.dimension_semantics<parallel>, #tpu.dimension_semantics<parallel>, #tpu.dimension_semantics<arbitrary>], iteration_bounds = array<i64: 1, 1, 1>, scalar_prefetch = 0 : i64, scratch_operands = 1 : i64, tpu.core_type = #tpu.core_type<tc>, window_params = [{transform_indices = @transform_0, window_bounds = array<i64: 16, 16>}, {transform_indices = @transform_1, window_bounds = array<i64: 16, 128>}, {transform_indices = @transform_2, window_bounds = array<i64: 1, 128>}, {transform_indices = @transform_3, window_bounds = array<i64: 16, 128>}]} {
    %c0_i32 = arith.constant 0 : i32
    %0 = arith.cmpi eq, %arg2, %c0_i32 : i32
    %1 = arith.extui %0 : i1 to i32
    %c0_i32_0 = arith.constant 0 : i32
    %2 = arith.cmpi ne, %1, %c0_i32_0 : i32
    scf.if %2 {
      %cst_10 = arith.constant 0.000000e+00 : f32
      %12 = vector.broadcast %cst_10 : f32 to vector<16x128xf32>
      %c0_11 = arith.constant 0 : index
      %c0_12 = arith.constant 0 : index
      %13 = vector.load %arg7[%c0_11, %c0_12] : memref<16x128xf32, #tpu.memory_space<vmem>>, vector<16x128xf32>
      tpu.vector_store %arg7[%c0_11, %c0_12], %12 {strides = array<i32>} : memref<16x128xf32, #tpu.memory_space<vmem>>, vector<16x128xf32>,
    } else {
    }
    %c0 = arith.constant 0 : index
    %c0_1 = arith.constant 0 : index
    %3 = vector.load %arg7[%c0, %c0_1] : memref<16x128xf32, #tpu.memory_space<vmem>>, vector<16x128xf32>
    %c0_2 = arith.constant 0 : index
    %c0_3 = arith.constant 0 : index
    %4 = vector.load %arg3[%c0_2, %c0_3] : memref<16x16xbf16, #tpu.memory_space<vmem>>, vector<16x16xbf16>
    %c0_4 = arith.constant 0 : index
    %c0_5 = arith.constant 0 : index
    %5 = vector.load %arg4[%c0_4, %c0_5] : memref<16x128xbf16, #tpu.memory_space<vmem>>, vector<16x128xbf16>
    %cst = arith.constant dense<0.000000e+00> : vector<16x128xf32>
    %6 = tpu.matmul %4, %5, %cst {dimension_numbers = #tpu.dot_dimension_numbers<[1], [0], [0], [1], [0, 0, 1, 1], [], []>} : vector<16x16xbf16>, vector<16x128xbf16>, vector<16x128xf32> -> vector<16x128xf32>
    %7 = arith.addf %3, %6 : vector<16x128xf32>
    %c0_6 = arith.constant 0 : index
    %c0_7 = arith.constant 0 : index
    %8 = vector.load %arg7[%c0_6, %c0_7] : memref<16x128xf32, #tpu.memory_space<vmem>>, vector<16x128xf32>
    tpu.vector_store %arg7[%c0_6, %c0_7], %7 {strides = array<i32>} : memref<16x128xf32, #tpu.memory_space<vmem>>, vector<16x128xf32>,
    %c0_i32_8 = arith.constant 0 : i32
    %9 = arith.cmpi eq, %arg2, %c0_i32_8 : i32
    %10 = arith.extui %9 : i1 to i32
    %c0_i32_9 = arith.constant 0 : i32
    %11 = arith.cmpi ne, %10, %c0_i32_9 : i32
    scf.if %11 {
      %c0_10 = arith.constant 0 : index
      %c0_11 = arith.constant 0 : index
      %12 = vector.load %arg7[%c0_10, %c0_11] : memref<16x128xf32, #tpu.memory_space<vmem>>, vector<16x128xf32>
      %c0_12 = arith.constant 0 : index
      %c0_13 = arith.constant 0 : index
      %13 = vector.load %arg5[%c0_12, %c0_13] : memref<1x128xf32, #tpu.memory_space<vmem>>, vector<1x128xf32>
      %14 = vector.broadcast %13 : vector<1x128xf32> to vector<16x128xf32>
      %15 = arith.addf %12, %14 : vector<16x128xf32>
      %c0_14 = arith.constant 0 : index
      %c0_15 = arith.constant 0 : index
      %16 = vector.load %arg6[%c0_14, %c0_15] : memref<16x128xf32, #tpu.memory_space<vmem>>, vector<16x128xf32>
      tpu.vector_store %arg6[%c0_14, %c0_15], %15 {strides = array<i32>} : memref<16x128xf32, #tpu.memory_space<vmem>>, vector<16x128xf32>,
    } else {
    }
    return
  }
  func.func @transform_0(%arg0: i32, %arg1: i32, %arg2: i32) -> (i32, i32) {
    %c0_i32 = arith.constant 0 : i32
    return %arg0, %arg2 : i32, i32
  }
  func.func @transform_1(%arg0: i32, %arg1: i32, %arg2: i32) -> (i32, i32) {
    %c0_i32 = arith.constant 0 : i32
    return %arg2, %arg1 : i32, i32
  }
  func.func @transform_2(%arg0: i32, %arg1: i32, %arg2: i32) -> (i32, i32) {
    %c0_i32 = arith.constant 0 : i32
    %c0_i32_0 = arith.constant 0 : i32
    return %c0_i32, %arg1 : i32, i32
  }
  func.func @transform_3(%arg0: i32, %arg1: i32, %arg2: i32) -> (i32, i32) {
    %c0_i32 = arith.constant 0 : i32
    return %arg0, %arg1 : i32, i32
  }
}

module attributes {stable_mosaic.version = 11 : i64} {
  func.func @_linear_kernel(%arg0: i32, %arg1: i32, %arg2: i32, %arg3: memref<16x128xbf16, #tpu.memory_space<vmem>>, %arg4: memref<128x384xbf16, #tpu.memory_space<vmem>>, %arg5: memref<1x384xf32, #tpu.memory_space<vmem>>, %arg6: memref<16x384xbf16, #tpu.memory_space<vmem>>, %arg7: memref<16x384xf32, #tpu.memory_space<vmem>>) attributes {dimension_semantics = [#tpu.dimension_semantics<parallel>, #tpu.dimension_semantics<parallel>, #tpu.dimension_semantics<arbitrary>], iteration_bounds = array<i64: 1, 1, 1>, scalar_prefetch = 0 : i64, scratch_operands = 1 : i64, tpu.core_type = #tpu.core_type<tc>, window_params = [{transform_indices = @transform_0, window_bounds = array<i64: 16, 128>}, {transform_indices = @transform_1, window_bounds = array<i64: 128, 384>}, {transform_indices = @transform_2, window_bounds = array<i64: 1, 384>}, {transform_indices = @transform_3, window_bounds = array<i64: 16, 384>}]} {
    %c0_i32 = arith.constant 0 : i32
    %0 = arith.cmpi eq, %arg2, %c0_i32 : i32
    %1 = arith.extui %0 : i1 to i32
    %c0_i32_0 = arith.constant 0 : i32
    %2 = arith.cmpi ne, %1, %c0_i32_0 : i32
    scf.if %2 {
      %cst_10 = arith.constant 0.000000e+00 : f32
      %12 = vector.broadcast %cst_10 : f32 to vector<16x384xf32>
      %c0_11 = arith.constant 0 : index
      %c0_12 = arith.constant 0 : index
      %13 = vector.load %arg7[%c0_11, %c0_12] : memref<16x384xf32, #tpu.memory_space<vmem>>, vector<16x384xf32>
      tpu.vector_store %arg7[%c0_11, %c0_12], %12 {strides = array<i32>} : memref<16x384xf32, #tpu.memory_space<vmem>>, vector<16x384xf32>,
    } else {
    }
    %c0 = arith.constant 0 : index
    %c0_1 = arith.constant 0 : index
    %3 = vector.load %arg7[%c0, %c0_1] : memref<16x384xf32, #tpu.memory_space<vmem>>, vector<16x384xf32>
    %c0_2 = arith.constant 0 : index
    %c0_3 = arith.constant 0 : index
    %4 = vector.load %arg3[%c0_2, %c0_3] : memref<16x128xbf16, #tpu.memory_space<vmem>>, vector<16x128xbf16>
    %c0_4 = arith.constant 0 : index
    %c0_5 = arith.constant 0 : index
    %5 = vector.load %arg4[%c0_4, %c0_5] : memref<128x384xbf16, #tpu.memory_space<vmem>>, vector<128x384xbf16>
    %cst = arith.constant dense<0.000000e+00> : vector<16x384xf32>
    %6 = tpu.matmul %4, %5, %cst {dimension_numbers = #tpu.dot_dimension_numbers<[1], [0], [0], [1], [0, 0, 1, 1], [], []>} : vector<16x128xbf16>, vector<128x384xbf16>, vector<16x384xf32> -> vector<16x384xf32>
    %7 = arith.addf %3, %6 : vector<16x384xf32>
    %c0_6 = arith.constant 0 : index
    %c0_7 = arith.constant 0 : index
    %8 = vector.load %arg7[%c0_6, %c0_7] : memref<16x384xf32, #tpu.memory_space<vmem>>, vector<16x384xf32>
    tpu.vector_store %arg7[%c0_6, %c0_7], %7 {strides = array<i32>} : memref<16x384xf32, #tpu.memory_space<vmem>>, vector<16x384xf32>,
    %c0_i32_8 = arith.constant 0 : i32
    %9 = arith.cmpi eq, %arg2, %c0_i32_8 : i32
    %10 = arith.extui %9 : i1 to i32
    %c0_i32_9 = arith.constant 0 : i32
    %11 = arith.cmpi ne, %10, %c0_i32_9 : i32
    scf.if %11 {
      %c0_10 = arith.constant 0 : index
      %c0_11 = arith.constant 0 : index
      %12 = vector.load %arg7[%c0_10, %c0_11] : memref<16x384xf32, #tpu.memory_space<vmem>>, vector<16x384xf32>
      %c0_12 = arith.constant 0 : index
      %c0_13 = arith.constant 0 : index
      %13 = vector.load %arg5[%c0_12, %c0_13] : memref<1x384xf32, #tpu.memory_space<vmem>>, vector<1x384xf32>
      %14 = vector.broadcast %13 : vector<1x384xf32> to vector<16x384xf32>
      %15 = arith.addf %12, %14 : vector<16x384xf32>
      %16 = arith.truncf %15 : vector<16x384xf32> to vector<16x384xbf16>
      %c0_14 = arith.constant 0 : index
      %c0_15 = arith.constant 0 : index
      %17 = vector.load %arg6[%c0_14, %c0_15] : memref<16x384xbf16, #tpu.memory_space<vmem>>, vector<16x384xbf16>
      tpu.vector_store %arg6[%c0_14, %c0_15], %16 {strides = array<i32>} : memref<16x384xbf16, #tpu.memory_space<vmem>>, vector<16x384xbf16>,
    } else {
    }
    return
  }
  func.func @transform_0(%arg0: i32, %arg1: i32, %arg2: i32) -> (i32, i32) {
    %c0_i32 = arith.constant 0 : i32
    return %arg0, %arg2 : i32, i32
  }
  func.func @transform_1(%arg0: i32, %arg1: i32, %arg2: i32) -> (i32, i32) {
    %c0_i32 = arith.constant 0 : i32
    return %arg2, %arg1 : i32, i32
  }
  func.func @transform_2(%arg0: i32, %arg1: i32, %arg2: i32) -> (i32, i32) {
    %c0_i32 = arith.constant 0 : i32
    %c0_i32_0 = arith.constant 0 : i32
    return %c0_i32, %arg1 : i32, i32
  }
  func.func @transform_3(%arg0: i32, %arg1: i32, %arg2: i32) -> (i32, i32) {
    %c0_i32 = arith.constant 0 : i32
    return %arg0, %arg1 : i32, i32
  }
}

module attributes {stable_mosaic.version = 11 : i64} {
  func.func @_self_attn_ln_kernel(%arg0: i32, %arg1: memref<1x8x384xbf16, #tpu.memory_space<vmem>>, %arg2: memref<1x1x8xf32, #tpu.memory_space<vmem>>, %arg3: memref<128x128xbf16, #tpu.memory_space<vmem>>, %arg4: memref<1x128xf32, #tpu.memory_space<vmem>>, %arg5: memref<1x8x128xbf16, #tpu.memory_space<vmem>>, %arg6: memref<1x128xf32, #tpu.memory_space<vmem>>, %arg7: memref<1x128xf32, #tpu.memory_space<vmem>>, %arg8: memref<1x8x128xbf16, #tpu.memory_space<vmem>>) attributes {dimension_semantics = [#tpu.dimension_semantics<parallel>], iteration_bounds = array<i64: 2>, scalar_prefetch = 0 : i64, scratch_operands = 0 : i64, tpu.core_type = #tpu.core_type<tc>, window_params = [{transform_indices = @transform_0, window_bounds = array<i64: 1, 8, 384>}, {transform_indices = @transform_1, window_bounds = array<i64: 1, 1, 8>}, {pipeline_mode = #tpu.pipeline_mode<synchronous>, transform_indices = @transform_2, window_bounds = array<i64: 128, 128>}, {pipeline_mode = #tpu.pipeline_mode<synchronous>, transform_indices = @transform_3, window_bounds = array<i64: 1, 128>}, {transform_indices = @transform_4, window_bounds = array<i64: 1, 8, 128>}, {pipeline_mode = #tpu.pipeline_mode<synchronous>, transform_indices = @transform_5, window_bounds = array<i64: 1, 128>}, {pipeline_mode = #tpu.pipeline_mode<synchronous>, transform_indices = @transform_6, window_bounds = array<i64: 1, 128>}, {transform_indices = @transform_7, window_bounds = array<i64: 1, 8, 128>}]} {
    %c0 = arith.constant 0 : index
    %c0_0 = arith.constant 0 : index
    %c0_1 = arith.constant 0 : index
    %0 = vector.load %arg1[%c0, %c0_0, %c0_1] : memref<1x8x384xbf16, #tpu.memory_space<vmem>>, vector<1x8x384xbf16>
    %1 = vector.shape_cast %0 : vector<1x8x384xbf16> to vector<8x384xbf16>
    %c0_2 = arith.constant 0 : index
    %c0_3 = arith.constant 0 : index
    %c0_4 = arith.constant 0 : index
    %2 = vector.load %arg2[%c0_2, %c0_3, %c0_4] : memref<1x1x8xf32, #tpu.memory_space<vmem>>, vector<1x1x8xf32>
    %3 = vector.shape_cast %2 : vector<1x1x8xf32> to vector<1x8xf32>
    %4 = vector.extract_strided_slice %1 {offsets = [0, 0], sizes = [8, 128], strides = [1, 1]} : vector<8x384xbf16> to vector<8x128xbf16>
    %5 = vector.extract_strided_slice %1 {offsets = [0, 128], sizes = [8, 128], strides = [1, 1]} : vector<8x384xbf16> to vector<8x128xbf16>
    %6 = vector.extract_strided_slice %1 {offsets = [0, 256], sizes = [8, 128], strides = [1, 1]} : vector<8x384xbf16> to vector<8x128xbf16>
    %7 = vector.extract_strided_slice %4 {offsets = [0, 0], sizes = [8, 32], strides = [1, 1]} : vector<8x128xbf16> to vector<8x32xbf16>
    %8 = vector.extract_strided_slice %5 {offsets = [0, 0], sizes = [8, 32], strides = [1, 1]} : vector<8x128xbf16> to vector<8x32xbf16>
    %cst = arith.constant dense<0.000000e+00> : vector<8x8xf32>
    %9 = tpu.matmul %7, %8, %cst {dimension_numbers = #tpu.dot_dimension_numbers<[1], [1], [0], [0], [0, 0, 1, 0], [], []>} : vector<8x32xbf16>, vector<8x32xbf16>, vector<8x8xf32> -> vector<8x8xf32>
    %cst_5 = arith.constant 0.176776692 : f32
    %10 = vector.broadcast %cst_5 : f32 to vector<8x8xf32>
    %11 = arith.mulf %9, %10 : vector<8x8xf32>
    %12 = vector.broadcast %3 : vector<1x8xf32> to vector<8x8xf32>
    %13 = arith.addf %11, %12 : vector<8x8xf32>
    %cst_6 = arith.constant dense<0xFF800000> : vector<8xf32>
    %14 = vector.multi_reduction <maximumf>, %13, %cst_6 [1] : vector<8x8xf32> to vector<8xf32>
    %15 = vector.shape_cast %14 : vector<8xf32> to vector<8x1xf32>
    %16 = vector.broadcast %15 : vector<8x1xf32> to vector<8x8xf32>
    %17 = arith.subf %13, %16 : vector<8x8xf32>
    %18 = math.exp %17 : vector<8x8xf32>
    %cst_7 = arith.constant dense<0.000000e+00> : vector<8xf32>
    %19 = vector.multi_reduction <add>, %18, %cst_7 [1] : vector<8x8xf32> to vector<8xf32>
    %20 = vector.shape_cast %19 : vector<8xf32> to vector<8x1xf32>
    %21 = tpu.reciprocal %20 {approx = true} : vector<8x1xf32> -> vector<8x1xf32>
    %22 = vector.broadcast %21 : vector<8x1xf32> to vector<8x8xf32>
    %23 = arith.mulf %18, %22 : vector<8x8xf32>
    %24 = arith.truncf %23 : vector<8x8xf32> to vector<8x8xbf16>
    %25 = vector.extract_strided_slice %6 {offsets = [0, 0], sizes = [8, 32], strides = [1, 1]} : vector<8x128xbf16> to vector<8x32xbf16>
    %cst_8 = arith.constant dense<0.000000e+00> : vector<8x32xf32>
    %26 = tpu.matmul %24, %25, %cst_8 {dimension_numbers = #tpu.dot_dimension_numbers<[1], [0], [0], [1], [0, 0, 1, 1], [], []>} : vector<8x8xbf16>, vector<8x32xbf16>, vector<8x32xf32> -> vector<8x32xf32>
    %27 = vector.extract_strided_slice %4 {offsets = [0, 32], sizes = [8, 32], strides = [1, 1]} : vector<8x128xbf16> to vector<8x32xbf16>
    %28 = vector.extract_strided_slice %5 {offsets = [0, 32], sizes = [8, 32], strides = [1, 1]} : vector<8x128xbf16> to vector<8x32xbf16>
    %cst_9 = arith.constant dense<0.000000e+00> : vector<8x8xf32>
    %29 = tpu.matmul %27, %28, %cst_9 {dimension_numbers = #tpu.dot_dimension_numbers<[1], [1], [0], [0], [0, 0, 1, 0], [], []>} : vector<8x32xbf16>, vector<8x32xbf16>, vector<8x8xf32> -> vector<8x8xf32>
    %cst_10 = arith.constant 0.176776692 : f32
    %30 = vector.broadcast %cst_10 : f32 to vector<8x8xf32>
    %31 = arith.mulf %29, %30 : vector<8x8xf32>
    %32 = vector.broadcast %3 : vector<1x8xf32> to vector<8x8xf32>
    %33 = arith.addf %31, %32 : vector<8x8xf32>
    %cst_11 = arith.constant dense<0xFF800000> : vector<8xf32>
    %34 = vector.multi_reduction <maximumf>, %33, %cst_11 [1] : vector<8x8xf32> to vector<8xf32>
    %35 = vector.shape_cast %34 : vector<8xf32> to vector<8x1xf32>
    %36 = vector.broadcast %35 : vector<8x1xf32> to vector<8x8xf32>
    %37 = arith.subf %33, %36 : vector<8x8xf32>
    %38 = math.exp %37 : vector<8x8xf32>
    %cst_12 = arith.constant dense<0.000000e+00> : vector<8xf32>
    %39 = vector.multi_reduction <add>, %38, %cst_12 [1] : vector<8x8xf32> to vector<8xf32>
    %40 = vector.shape_cast %39 : vector<8xf32> to vector<8x1xf32>
    %41 = tpu.reciprocal %40 {approx = true} : vector<8x1xf32> -> vector<8x1xf32>
    %42 = vector.broadcast %41 : vector<8x1xf32> to vector<8x8xf32>
    %43 = arith.mulf %38, %42 : vector<8x8xf32>
    %44 = arith.truncf %43 : vector<8x8xf32> to vector<8x8xbf16>
    %45 = vector.extract_strided_slice %6 {offsets = [0, 32], sizes = [8, 32], strides = [1, 1]} : vector<8x128xbf16> to vector<8x32xbf16>
    %cst_13 = arith.constant dense<0.000000e+00> : vector<8x32xf32>
    %46 = tpu.matmul %44, %45, %cst_13 {dimension_numbers = #tpu.dot_dimension_numbers<[1], [0], [0], [1], [0, 0, 1, 1], [], []>} : vector<8x8xbf16>, vector<8x32xbf16>, vector<8x32xf32> -> vector<8x32xf32>
    %47 = vector.extract_strided_slice %4 {offsets = [0, 64], sizes = [8, 32], strides = [1, 1]} : vector<8x128xbf16> to vector<8x32xbf16>
    %48 = vector.extract_strided_slice %5 {offsets = [0, 64], sizes = [8, 32], strides = [1, 1]} : vector<8x128xbf16> to vector<8x32xbf16>
    %cst_14 = arith.constant dense<0.000000e+00> : vector<8x8xf32>
    %49 = tpu.matmul %47, %48, %cst_14 {dimension_numbers = #tpu.dot_dimension_numbers<[1], [1], [0], [0], [0, 0, 1, 0], [], []>} : vector<8x32xbf16>, vector<8x32xbf16>, vector<8x8xf32> -> vector<8x8xf32>
    %cst_15 = arith.constant 0.176776692 : f32
    %50 = vector.broadcast %cst_15 : f32 to vector<8x8xf32>
    %51 = arith.mulf %49, %50 : vector<8x8xf32>
    %52 = vector.broadcast %3 : vector<1x8xf32> to vector<8x8xf32>
    %53 = arith.addf %51, %52 : vector<8x8xf32>
    %cst_16 = arith.constant dense<0xFF800000> : vector<8xf32>
    %54 = vector.multi_reduction <maximumf>, %53, %cst_16 [1] : vector<8x8xf32> to vector<8xf32>
    %55 = vector.shape_cast %54 : vector<8xf32> to vector<8x1xf32>
    %56 = vector.broadcast %55 : vector<8x1xf32> to vector<8x8xf32>
    %57 = arith.subf %53, %56 : vector<8x8xf32>
    %58 = math.exp %57 : vector<8x8xf32>
    %cst_17 = arith.constant dense<0.000000e+00> : vector<8xf32>
    %59 = vector.multi_reduction <add>, %58, %cst_17 [1] : vector<8x8xf32> to vector<8xf32>
    %60 = vector.shape_cast %59 : vector<8xf32> to vector<8x1xf32>
    %61 = tpu.reciprocal %60 {approx = true} : vector<8x1xf32> -> vector<8x1xf32>
    %62 = vector.broadcast %61 : vector<8x1xf32> to vector<8x8xf32>
    %63 = arith.mulf %58, %62 : vector<8x8xf32>
    %64 = arith.truncf %63 : vector<8x8xf32> to vector<8x8xbf16>
    %65 = vector.extract_strided_slice %6 {offsets = [0, 64], sizes = [8, 32], strides = [1, 1]} : vector<8x128xbf16> to vector<8x32xbf16>
    %cst_18 = arith.constant dense<0.000000e+00> : vector<8x32xf32>
    %66 = tpu.matmul %64, %65, %cst_18 {dimension_numbers = #tpu.dot_dimension_numbers<[1], [0], [0], [1], [0, 0, 1, 1], [], []>} : vector<8x8xbf16>, vector<8x32xbf16>, vector<8x32xf32> -> vector<8x32xf32>
    %67 = vector.extract_strided_slice %4 {offsets = [0, 96], sizes = [8, 32], strides = [1, 1]} : vector<8x128xbf16> to vector<8x32xbf16>
    %68 = vector.extract_strided_slice %5 {offsets = [0, 96], sizes = [8, 32], strides = [1, 1]} : vector<8x128xbf16> to vector<8x32xbf16>
    %cst_19 = arith.constant dense<0.000000e+00> : vector<8x8xf32>
    %69 = tpu.matmul %67, %68, %cst_19 {dimension_numbers = #tpu.dot_dimension_numbers<[1], [1], [0], [0], [0, 0, 1, 0], [], []>} : vector<8x32xbf16>, vector<8x32xbf16>, vector<8x8xf32> -> vector<8x8xf32>
    %cst_20 = arith.constant 0.176776692 : f32
    %70 = vector.broadcast %cst_20 : f32 to vector<8x8xf32>
    %71 = arith.mulf %69, %70 : vector<8x8xf32>
    %72 = vector.broadcast %3 : vector<1x8xf32> to vector<8x8xf32>
    %73 = arith.addf %71, %72 : vector<8x8xf32>
    %cst_21 = arith.constant dense<0xFF800000> : vector<8xf32>
    %74 = vector.multi_reduction <maximumf>, %73, %cst_21 [1] : vector<8x8xf32> to vector<8xf32>
    %75 = vector.shape_cast %74 : vector<8xf32> to vector<8x1xf32>
    %76 = vector.broadcast %75 : vector<8x1xf32> to vector<8x8xf32>
    %77 = arith.subf %73, %76 : vector<8x8xf32>
    %78 = math.exp %77 : vector<8x8xf32>
    %cst_22 = arith.constant dense<0.000000e+00> : vector<8xf32>
    %79 = vector.multi_reduction <add>, %78, %cst_22 [1] : vector<8x8xf32> to vector<8xf32>
    %80 = vector.shape_cast %79 : vector<8xf32> to vector<8x1xf32>
    %81 = tpu.reciprocal %80 {approx = true} : vector<8x1xf32> -> vector<8x1xf32>
    %82 = vector.broadcast %81 : vector<8x1xf32> to vector<8x8xf32>
    %83 = arith.mulf %78, %82 : vector<8x8xf32>
    %84 = arith.truncf %83 : vector<8x8xf32> to vector<8x8xbf16>
    %85 = vector.extract_strided_slice %6 {offsets = [0, 96], sizes = [8, 32], strides = [1, 1]} : vector<8x128xbf16> to vector<8x32xbf16>
    %cst_23 = arith.constant dense<0.000000e+00> : vector<8x32xf32>
    %86 = tpu.matmul %84, %85, %cst_23 {dimension_numbers = #tpu.dot_dimension_numbers<[1], [0], [0], [1], [0, 0, 1, 1], [], []>} : vector<8x8xbf16>, vector<8x32xbf16>, vector<8x32xf32> -> vector<8x32xf32>
    %87 = tpu.concatenate %26, %46, %66, %86 in 1 : vector<8x32xf32>, vector<8x32xf32>, vector<8x32xf32>, vector<8x32xf32> -> vector<8x128xf32>
    %c0_24 = arith.constant 0 : index
    %c0_25 = arith.constant 0 : index
    %88 = vector.load %arg3[%c0_24, %c0_25] : memref<128x128xbf16, #tpu.memory_space<vmem>>, vector<128x128xbf16>
    %c0_26 = arith.constant 0 : index
    %c0_27 = arith.constant 0 : index
    %89 = vector.load %arg4[%c0_26, %c0_27] : memref<1x128xf32, #tpu.memory_space<vmem>>, vector<1x128xf32>
    %c0_28 = arith.constant 0 : index
    %c0_29 = arith.constant 0 : index
    %c0_30 = arith.constant 0 : index
    %90 = vector.load %arg5[%c0_28, %c0_29, %c0_30] : memref<1x8x128xbf16, #tpu.memory_space<vmem>>, vector<1x8x128xbf16>
    %91 = vector.shape_cast %90 : vector<1x8x128xbf16> to vector<8x128xbf16>
    %c0_31 = arith.constant 0 : index
    %c0_32 = arith.constant 0 : index
    %92 = vector.load %arg6[%c0_31, %c0_32] : memref<1x128xf32, #tpu.memory_space<vmem>>, vector<1x128xf32>
    %c0_33 = arith.constant 0 : index
    %c0_34 = arith.constant 0 : index
    %93 = vector.load %arg7[%c0_33, %c0_34] : memref<1x128xf32, #tpu.memory_space<vmem>>, vector<1x128xf32>
    %94 = arith.truncf %87 : vector<8x128xf32> to vector<8x128xbf16>
    %cst_35 = arith.constant dense<0.000000e+00> : vector<8x128xf32>
    %95 = tpu.matmul %94, %88, %cst_35 {dimension_numbers = #tpu.dot_dimension_numbers<[1], [0], [0], [1], [0, 0, 1, 1], [], []>} : vector<8x128xbf16>, vector<128x128xbf16>, vector<8x128xf32> -> vector<8x128xf32>
    %96 = vector.broadcast %89 : vector<1x128xf32> to vector<8x128xf32>
    %97 = arith.addf %95, %96 : vector<8x128xf32>
    %98 = arith.extf %91 : vector<8x128xbf16> to vector<8x128xf32>
    %99 = arith.addf %97, %98 : vector<8x128xf32>
    %cst_36 = arith.constant dense<0.000000e+00> : vector<8xf32>
    %100 = vector.multi_reduction <add>, %99, %cst_36 [1] : vector<8x128xf32> to vector<8xf32>
    %101 = vector.shape_cast %100 : vector<8xf32> to vector<8x1xf32>
    %cst_37 = arith.constant 1.280000e+02 : f32
    %102 = vector.broadcast %cst_37 : f32 to vector<8x1xf32>
    %103 = arith.divf %101, %102 : vector<8x1xf32>
    %104 = vector.broadcast %103 : vector<8x1xf32> to vector<8x128xf32>
    %105 = arith.subf %99, %104 : vector<8x128xf32>
    %106 = arith.mulf %105, %105 : vector<8x128xf32>
    %cst_38 = arith.constant dense<0.000000e+00> : vector<8xf32>
    %107 = vector.multi_reduction <add>, %106, %cst_38 [1] : vector<8x128xf32> to vector<8xf32>
    %108 = vector.shape_cast %107 : vector<8xf32> to vector<8x1xf32>
    %cst_39 = arith.constant 1.280000e+02 : f32
    %109 = vector.broadcast %cst_39 : f32 to vector<8x1xf32>
    %110 = arith.divf %108, %109 : vector<8x1xf32>
    %cst_40 = arith.constant 9.99999974E-6 : f32
    %111 = vector.broadcast %cst_40 : f32 to vector<8x1xf32>
    %112 = arith.addf %110, %111 : vector<8x1xf32>
    %113 = math.rsqrt %112 : vector<8x1xf32>
    %114 = vector.broadcast %113 : vector<8x1xf32> to vector<8x128xf32>
    %115 = arith.mulf %105, %114 : vector<8x128xf32>
    %116 = vector.broadcast %92 : vector<1x128xf32> to vector<8x128xf32>
    %117 = arith.mulf %115, %116 : vector<8x128xf32>
    %118 = vector.broadcast %93 : vector<1x128xf32> to vector<8x128xf32>
    %119 = arith.addf %117, %118 : vector<8x128xf32>
    %120 = arith.truncf %119 : vector<8x128xf32> to vector<8x128xbf16>
    %c0_41 = arith.constant 0 : index
    %c0_42 = arith.constant 0 : index
    %c0_43 = arith.constant 0 : index
    %121 = vector.load %arg8[%c0_41, %c0_42, %c0_43] : memref<1x8x128xbf16, #tpu.memory_space<vmem>>, vector<1x8x128xbf16>
    %122 = vector.shape_cast %121 : vector<1x8x128xbf16> to vector<8x128xbf16>
    %123 = vector.shape_cast %120 : vector<8x128xbf16> to vector<1x8x128xbf16>
    tpu.vector_store %arg8[%c0_41, %c0_42, %c0_43], %123 {strides = array<i32>} : memref<1x8x128xbf16, #tpu.memory_space<vmem>>, vector<1x8x128xbf16>,
    return
  }
  func.func @transform_0(%arg0: i32) -> (i32, i32, i32) {
    %c0_i32 = arith.constant 0 : i32
    %c0_i32_0 = arith.constant 0 : i32
    %c0_i32_1 = arith.constant 0 : i32
    return %arg0, %c0_i32, %c0_i32_0 : i32, i32, i32
  }
  func.func @transform_1(%arg0: i32) -> (i32, i32, i32) {
    %c0_i32 = arith.constant 0 : i32
    %c0_i32_0 = arith.constant 0 : i32
    %c0_i32_1 = arith.constant 0 : i32
    return %arg0, %c0_i32, %c0_i32_0 : i32, i32, i32
  }
  func.func @transform_2(%arg0: i32) -> (i32, i32) {
    %c0_i32 = arith.constant 0 : i32
    %c0_i32_0 = arith.constant 0 : i32
    %c0_i32_1 = arith.constant 0 : i32
    return %c0_i32, %c0_i32_0 : i32, i32
  }
  func.func @transform_3(%arg0: i32) -> (i32, i32) {
    %c0_i32 = arith.constant 0 : i32
    %c0_i32_0 = arith.constant 0 : i32
    %c0_i32_1 = arith.constant 0 : i32
    return %c0_i32, %c0_i32_0 : i32, i32
  }
  func.func @transform_4(%arg0: i32) -> (i32, i32, i32) {
    %c0_i32 = arith.constant 0 : i32
    %c0_i32_0 = arith.constant 0 : i32
    %c0_i32_1 = arith.constant 0 : i32
    return %arg0, %c0_i32, %c0_i32_0 : i32, i32, i32
  }
  func.func @transform_5(%arg0: i32) -> (i32, i32) {
    %c0_i32 = arith.constant 0 : i32
    %c0_i32_0 = arith.constant 0 : i32
    %c0_i32_1 = arith.constant 0 : i32
    return %c0_i32, %c0_i32_0 : i32, i32
  }
  func.func @transform_6(%arg0: i32) -> (i32, i32) {
    %c0_i32 = arith.constant 0 : i32
    %c0_i32_0 = arith.constant 0 : i32
    %c0_i32_1 = arith.constant 0 : i32
    return %c0_i32, %c0_i32_0 : i32, i32
  }
  func.func @transform_7(%arg0: i32) -> (i32, i32, i32) {
    %c0_i32 = arith.constant 0 : i32
    %c0_i32_0 = arith.constant 0 : i32
    %c0_i32_1 = arith.constant 0 : i32
    return %arg0, %c0_i32, %c0_i32_0 : i32, i32, i32
  }
}

module attributes {stable_mosaic.version = 11 : i64} {
  func.func @_ffn_ln_kernel(%arg0: i32, %arg1: i32, %arg2: memref<16x128xbf16, #tpu.memory_space<vmem>>, %arg3: memref<128x256xbf16, #tpu.memory_space<vmem>>, %arg4: memref<1x256xf32, #tpu.memory_space<vmem>>, %arg5: memref<256x128xbf16, #tpu.memory_space<vmem>>, %arg6: memref<1x128xf32, #tpu.memory_space<vmem>>, %arg7: memref<1x128xf32, #tpu.memory_space<vmem>>, %arg8: memref<1x128xf32, #tpu.memory_space<vmem>>, %arg9: memref<16x128xbf16, #tpu.memory_space<vmem>>, %arg10: memref<16x128xf32, #tpu.memory_space<vmem>>) attributes {dimension_semantics = [#tpu.dimension_semantics<parallel>, #tpu.dimension_semantics<arbitrary>], iteration_bounds = array<i64: 1, 1>, scalar_prefetch = 0 : i64, scratch_operands = 1 : i64, tpu.core_type = #tpu.core_type<tc>, window_params = [{transform_indices = @transform_0, window_bounds = array<i64: 16, 128>}, {transform_indices = @transform_1, window_bounds = array<i64: 128, 256>}, {transform_indices = @transform_2, window_bounds = array<i64: 1, 256>}, {transform_indices = @transform_3, window_bounds = array<i64: 256, 128>}, {pipeline_mode = #tpu.pipeline_mode<synchronous>, transform_indices = @transform_4, window_bounds = array<i64: 1, 128>}, {pipeline_mode = #tpu.pipeline_mode<synchronous>, transform_indices = @transform_5, window_bounds = array<i64: 1, 128>}, {pipeline_mode = #tpu.pipeline_mode<synchronous>, transform_indices = @transform_6, window_bounds = array<i64: 1, 128>}, {transform_indices = @transform_7, window_bounds = array<i64: 16, 128>}]} {
    %c0_i32 = arith.constant 0 : i32
    %0 = arith.cmpi eq, %arg1, %c0_i32 : i32
    %1 = arith.extui %0 : i1 to i32
    %c0_i32_0 = arith.constant 0 : i32
    %2 = arith.cmpi ne, %1, %c0_i32_0 : i32
    scf.if %2 {
      %cst_16 = arith.constant 0.000000e+00 : f32
      %20 = vector.broadcast %cst_16 : f32 to vector<16x128xf32>
      %c0_17 = arith.constant 0 : index
      %c0_18 = arith.constant 0 : index
      %21 = vector.load %arg10[%c0_17, %c0_18] : memref<16x128xf32, #tpu.memory_space<vmem>>, vector<16x128xf32>
      tpu.vector_store %arg10[%c0_17, %c0_18], %20 {strides = array<i32>} : memref<16x128xf32, #tpu.memory_space<vmem>>, vector<16x128xf32>,
    } else {
    }
    %c0 = arith.constant 0 : index
    %c0_1 = arith.constant 0 : index
    %3 = vector.load %arg2[%c0, %c0_1] : memref<16x128xbf16, #tpu.memory_space<vmem>>, vector<16x128xbf16>
    %c0_2 = arith.constant 0 : index
    %c0_3 = arith.constant 0 : index
    %4 = vector.load %arg3[%c0_2, %c0_3] : memref<128x256xbf16, #tpu.memory_space<vmem>>, vector<128x256xbf16>
    %cst = arith.constant dense<0.000000e+00> : vector<16x256xf32>
    %5 = tpu.matmul %3, %4, %cst {dimension_numbers = #tpu.dot_dimension_numbers<[1], [0], [0], [1], [0, 0, 1, 1], [], []>} : vector<16x128xbf16>, vector<128x256xbf16>, vector<16x256xf32> -> vector<16x256xf32>
    %c0_4 = arith.constant 0 : index
    %c0_5 = arith.constant 0 : index
    %6 = vector.load %arg4[%c0_4, %c0_5] : memref<1x256xf32, #tpu.memory_space<vmem>>, vector<1x256xf32>
    %7 = vector.broadcast %6 : vector<1x256xf32> to vector<16x256xf32>
    %8 = arith.addf %5, %7 : vector<16x256xf32>
    %cst_6 = arith.constant 0.000000e+00 : f32
    %9 = vector.broadcast %cst_6 : f32 to vector<16x256xf32>
    %10 = arith.maximumf %8, %9 : vector<16x256xf32>
    %11 = arith.truncf %10 : vector<16x256xf32> to vector<16x256xbf16>
    %c0_7 = arith.constant 0 : index
    %c0_8 = arith.constant 0 : index
    %12 = vector.load %arg10[%c0_7, %c0_8] : memref<16x128xf32, #tpu.memory_space<vmem>>, vector<16x128xf32>
    %c0_9 = arith.constant 0 : index
    %c0_10 = arith.constant 0 : index
    %13 = vector.load %arg5[%c0_9, %c0_10] : memref<256x128xbf16, #tpu.memory_space<vmem>>, vector<256x128xbf16>
    %cst_11 = arith.constant dense<0.000000e+00> : vector<16x128xf32>
    %14 = tpu.matmul %11, %13, %cst_11 {dimension_numbers = #tpu.dot_dimension_numbers<[1], [0], [0], [1], [0, 0, 1, 1], [], []>} : vector<16x256xbf16>, vector<256x128xbf16>, vector<16x128xf32> -> vector<16x128xf32>
    %15 = arith.addf %12, %14 : vector<16x128xf32>
    %c0_12 = arith.constant 0 : index
    %c0_13 = arith.constant 0 : index
    %16 = vector.load %arg10[%c0_12, %c0_13] : memref<16x128xf32, #tpu.memory_space<vmem>>, vector<16x128xf32>
    tpu.vector_store %arg10[%c0_12, %c0_13], %15 {strides = array<i32>} : memref<16x128xf32, #tpu.memory_space<vmem>>, vector<16x128xf32>,
    %c0_i32_14 = arith.constant 0 : i32
    %17 = arith.cmpi eq, %arg1, %c0_i32_14 : i32
    %18 = arith.extui %17 : i1 to i32
    %c0_i32_15 = arith.constant 0 : i32
    %19 = arith.cmpi ne, %18, %c0_i32_15 : i32
    scf.if %19 {
      %c0_16 = arith.constant 0 : index
      %c0_17 = arith.constant 0 : index
      %20 = vector.load %arg10[%c0_16, %c0_17] : memref<16x128xf32, #tpu.memory_space<vmem>>, vector<16x128xf32>
      %c0_18 = arith.constant 0 : index
      %c0_19 = arith.constant 0 : index
      %21 = vector.load %arg6[%c0_18, %c0_19] : memref<1x128xf32, #tpu.memory_space<vmem>>, vector<1x128xf32>
      %22 = vector.broadcast %21 : vector<1x128xf32> to vector<16x128xf32>
      %23 = arith.addf %20, %22 : vector<16x128xf32>
      %c0_20 = arith.constant 0 : index
      %c0_21 = arith.constant 0 : index
      %24 = vector.load %arg2[%c0_20, %c0_21] : memref<16x128xbf16, #tpu.memory_space<vmem>>, vector<16x128xbf16>
      %25 = arith.extf %24 : vector<16x128xbf16> to vector<16x128xf32>
      %26 = arith.addf %23, %25 : vector<16x128xf32>
      %cst_22 = arith.constant dense<0.000000e+00> : vector<16xf32>
      %27 = vector.multi_reduction <add>, %26, %cst_22 [1] : vector<16x128xf32> to vector<16xf32>
      %28 = vector.shape_cast %27 : vector<16xf32> to vector<16x1xf32>
      %cst_23 = arith.constant 1.280000e+02 : f32
      %29 = vector.broadcast %cst_23 : f32 to vector<16x1xf32>
      %30 = arith.divf %28, %29 : vector<16x1xf32>
      %31 = vector.broadcast %30 : vector<16x1xf32> to vector<16x128xf32>
      %32 = arith.subf %26, %31 : vector<16x128xf32>
      %33 = arith.mulf %32, %32 : vector<16x128xf32>
      %cst_24 = arith.constant dense<0.000000e+00> : vector<16xf32>
      %34 = vector.multi_reduction <add>, %33, %cst_24 [1] : vector<16x128xf32> to vector<16xf32>
      %35 = vector.shape_cast %34 : vector<16xf32> to vector<16x1xf32>
      %cst_25 = arith.constant 1.280000e+02 : f32
      %36 = vector.broadcast %cst_25 : f32 to vector<16x1xf32>
      %37 = arith.divf %35, %36 : vector<16x1xf32>
      %cst_26 = arith.constant 9.99999974E-6 : f32
      %38 = vector.broadcast %cst_26 : f32 to vector<16x1xf32>
      %39 = arith.addf %37, %38 : vector<16x1xf32>
      %40 = math.rsqrt %39 : vector<16x1xf32>
      %41 = vector.broadcast %40 : vector<16x1xf32> to vector<16x128xf32>
      %42 = arith.mulf %32, %41 : vector<16x128xf32>
      %c0_27 = arith.constant 0 : index
      %c0_28 = arith.constant 0 : index
      %43 = vector.load %arg7[%c0_27, %c0_28] : memref<1x128xf32, #tpu.memory_space<vmem>>, vector<1x128xf32>
      %44 = vector.broadcast %43 : vector<1x128xf32> to vector<16x128xf32>
      %45 = arith.mulf %42, %44 : vector<16x128xf32>
      %c0_29 = arith.constant 0 : index
      %c0_30 = arith.constant 0 : index
      %46 = vector.load %arg8[%c0_29, %c0_30] : memref<1x128xf32, #tpu.memory_space<vmem>>, vector<1x128xf32>
      %47 = vector.broadcast %46 : vector<1x128xf32> to vector<16x128xf32>
      %48 = arith.addf %45, %47 : vector<16x128xf32>
      %49 = arith.truncf %48 : vector<16x128xf32> to vector<16x128xbf16>
      %c0_31 = arith.constant 0 : index
      %c0_32 = arith.constant 0 : index
      %50 = vector.load %arg9[%c0_31, %c0_32] : memref<16x128xbf16, #tpu.memory_space<vmem>>, vector<16x128xbf16>
      tpu.vector_store %arg9[%c0_31, %c0_32], %49 {strides = array<i32>} : memref<16x128xbf16, #tpu.memory_space<vmem>>, vector<16x128xbf16>,
    } else {
    }
    return
  }
  func.func @transform_0(%arg0: i32, %arg1: i32) -> (i32, i32) {
    %c0_i32 = arith.constant 0 : i32
    %c0_i32_0 = arith.constant 0 : i32
    return %arg0, %c0_i32 : i32, i32
  }
  func.func @transform_1(%arg0: i32, %arg1: i32) -> (i32, i32) {
    %c0_i32 = arith.constant 0 : i32
    %c0_i32_0 = arith.constant 0 : i32
    return %c0_i32, %arg1 : i32, i32
  }
  func.func @transform_2(%arg0: i32, %arg1: i32) -> (i32, i32) {
    %c0_i32 = arith.constant 0 : i32
    %c0_i32_0 = arith.constant 0 : i32
    return %c0_i32, %arg1 : i32, i32
  }
  func.func @transform_3(%arg0: i32, %arg1: i32) -> (i32, i32) {
    %c0_i32 = arith.constant 0 : i32
    %c0_i32_0 = arith.constant 0 : i32
    return %arg1, %c0_i32 : i32, i32
  }
  func.func @transform_4(%arg0: i32, %arg1: i32) -> (i32, i32) {
    %c0_i32 = arith.constant 0 : i32
    %c0_i32_0 = arith.constant 0 : i32
    %c0_i32_1 = arith.constant 0 : i32
    return %c0_i32, %c0_i32_0 : i32, i32
  }
  func.func @transform_5(%arg0: i32, %arg1: i32) -> (i32, i32) {
    %c0_i32 = arith.constant 0 : i32
    %c0_i32_0 = arith.constant 0 : i32
    %c0_i32_1 = arith.constant 0 : i32
    return %c0_i32, %c0_i32_0 : i32, i32
  }
  func.func @transform_6(%arg0: i32, %arg1: i32) -> (i32, i32) {
    %c0_i32 = arith.constant 0 : i32
    %c0_i32_0 = arith.constant 0 : i32
    %c0_i32_1 = arith.constant 0 : i32
    return %c0_i32, %c0_i32_0 : i32, i32
  }
  func.func @transform_7(%arg0: i32, %arg1: i32) -> (i32, i32) {
    %c0_i32 = arith.constant 0 : i32
    %c0_i32_0 = arith.constant 0 : i32
    return %arg0, %c0_i32 : i32, i32
  }
}

module attributes {stable_mosaic.version = 11 : i64} {
  func.func @_linear_kernel(%arg0: i32, %arg1: i32, %arg2: i32, %arg3: memref<16x128xbf16, #tpu.memory_space<vmem>>, %arg4: memref<128x256xbf16, #tpu.memory_space<vmem>>, %arg5: memref<1x256xf32, #tpu.memory_space<vmem>>, %arg6: memref<16x256xbf16, #tpu.memory_space<vmem>>, %arg7: memref<16x256xf32, #tpu.memory_space<vmem>>) attributes {dimension_semantics = [#tpu.dimension_semantics<parallel>, #tpu.dimension_semantics<parallel>, #tpu.dimension_semantics<arbitrary>], iteration_bounds = array<i64: 1, 1, 1>, scalar_prefetch = 0 : i64, scratch_operands = 1 : i64, tpu.core_type = #tpu.core_type<tc>, window_params = [{transform_indices = @transform_0, window_bounds = array<i64: 16, 128>}, {transform_indices = @transform_1, window_bounds = array<i64: 128, 256>}, {transform_indices = @transform_2, window_bounds = array<i64: 1, 256>}, {transform_indices = @transform_3, window_bounds = array<i64: 16, 256>}]} {
    %c0_i32 = arith.constant 0 : i32
    %0 = arith.cmpi eq, %arg2, %c0_i32 : i32
    %1 = arith.extui %0 : i1 to i32
    %c0_i32_0 = arith.constant 0 : i32
    %2 = arith.cmpi ne, %1, %c0_i32_0 : i32
    scf.if %2 {
      %cst_10 = arith.constant 0.000000e+00 : f32
      %12 = vector.broadcast %cst_10 : f32 to vector<16x256xf32>
      %c0_11 = arith.constant 0 : index
      %c0_12 = arith.constant 0 : index
      %13 = vector.load %arg7[%c0_11, %c0_12] : memref<16x256xf32, #tpu.memory_space<vmem>>, vector<16x256xf32>
      tpu.vector_store %arg7[%c0_11, %c0_12], %12 {strides = array<i32>} : memref<16x256xf32, #tpu.memory_space<vmem>>, vector<16x256xf32>,
    } else {
    }
    %c0 = arith.constant 0 : index
    %c0_1 = arith.constant 0 : index
    %3 = vector.load %arg7[%c0, %c0_1] : memref<16x256xf32, #tpu.memory_space<vmem>>, vector<16x256xf32>
    %c0_2 = arith.constant 0 : index
    %c0_3 = arith.constant 0 : index
    %4 = vector.load %arg3[%c0_2, %c0_3] : memref<16x128xbf16, #tpu.memory_space<vmem>>, vector<16x128xbf16>
    %c0_4 = arith.constant 0 : index
    %c0_5 = arith.constant 0 : index
    %5 = vector.load %arg4[%c0_4, %c0_5] : memref<128x256xbf16, #tpu.memory_space<vmem>>, vector<128x256xbf16>
    %cst = arith.constant dense<0.000000e+00> : vector<16x256xf32>
    %6 = tpu.matmul %4, %5, %cst {dimension_numbers = #tpu.dot_dimension_numbers<[1], [0], [0], [1], [0, 0, 1, 1], [], []>} : vector<16x128xbf16>, vector<128x256xbf16>, vector<16x256xf32> -> vector<16x256xf32>
    %7 = arith.addf %3, %6 : vector<16x256xf32>
    %c0_6 = arith.constant 0 : index
    %c0_7 = arith.constant 0 : index
    %8 = vector.load %arg7[%c0_6, %c0_7] : memref<16x256xf32, #tpu.memory_space<vmem>>, vector<16x256xf32>
    tpu.vector_store %arg7[%c0_6, %c0_7], %7 {strides = array<i32>} : memref<16x256xf32, #tpu.memory_space<vmem>>, vector<16x256xf32>,
    %c0_i32_8 = arith.constant 0 : i32
    %9 = arith.cmpi eq, %arg2, %c0_i32_8 : i32
    %10 = arith.extui %9 : i1 to i32
    %c0_i32_9 = arith.constant 0 : i32
    %11 = arith.cmpi ne, %10, %c0_i32_9 : i32
    scf.if %11 {
      %c0_10 = arith.constant 0 : index
      %c0_11 = arith.constant 0 : index
      %12 = vector.load %arg7[%c0_10, %c0_11] : memref<16x256xf32, #tpu.memory_space<vmem>>, vector<16x256xf32>
      %c0_12 = arith.constant 0 : index
      %c0_13 = arith.constant 0 : index
      %13 = vector.load %arg5[%c0_12, %c0_13] : memref<1x256xf32, #tpu.memory_space<vmem>>, vector<1x256xf32>
      %14 = vector.broadcast %13 : vector<1x256xf32> to vector<16x256xf32>
      %15 = arith.addf %12, %14 : vector<16x256xf32>
      %16 = arith.truncf %15 : vector<16x256xf32> to vector<16x256xbf16>
      %c0_14 = arith.constant 0 : index
      %c0_15 = arith.constant 0 : index
      %17 = vector.load %arg6[%c0_14, %c0_15] : memref<16x256xbf16, #tpu.memory_space<vmem>>, vector<16x256xbf16>
      tpu.vector_store %arg6[%c0_14, %c0_15], %16 {strides = array<i32>} : memref<16x256xbf16, #tpu.memory_space<vmem>>, vector<16x256xbf16>,
    } else {
    }
    return
  }
  func.func @transform_0(%arg0: i32, %arg1: i32, %arg2: i32) -> (i32, i32) {
    %c0_i32 = arith.constant 0 : i32
    return %arg0, %arg2 : i32, i32
  }
  func.func @transform_1(%arg0: i32, %arg1: i32, %arg2: i32) -> (i32, i32) {
    %c0_i32 = arith.constant 0 : i32
    return %arg2, %arg1 : i32, i32
  }
  func.func @transform_2(%arg0: i32, %arg1: i32, %arg2: i32) -> (i32, i32) {
    %c0_i32 = arith.constant 0 : i32
    %c0_i32_0 = arith.constant 0 : i32
    return %c0_i32, %arg1 : i32, i32
  }
  func.func @transform_3(%arg0: i32, %arg1: i32, %arg2: i32) -> (i32, i32) {
    %c0_i32 = arith.constant 0 : i32
    return %arg0, %arg1 : i32, i32
  }
}

module attributes {stable_mosaic.version = 11 : i64} {
  func.func @_self_attn_ln_kernel(%arg0: i32, %arg1: memref<1x8x384xbf16, #tpu.memory_space<vmem>>, %arg2: memref<1x8x8xf32, #tpu.memory_space<vmem>>, %arg3: memref<128x128xbf16, #tpu.memory_space<vmem>>, %arg4: memref<1x128xf32, #tpu.memory_space<vmem>>, %arg5: memref<1x8x128xbf16, #tpu.memory_space<vmem>>, %arg6: memref<1x128xf32, #tpu.memory_space<vmem>>, %arg7: memref<1x128xf32, #tpu.memory_space<vmem>>, %arg8: memref<1x8x128xbf16, #tpu.memory_space<vmem>>) attributes {dimension_semantics = [#tpu.dimension_semantics<parallel>], iteration_bounds = array<i64: 2>, scalar_prefetch = 0 : i64, scratch_operands = 0 : i64, tpu.core_type = #tpu.core_type<tc>, window_params = [{transform_indices = @transform_0, window_bounds = array<i64: 1, 8, 384>}, {pipeline_mode = #tpu.pipeline_mode<synchronous>, transform_indices = @transform_1, window_bounds = array<i64: 1, 8, 8>}, {pipeline_mode = #tpu.pipeline_mode<synchronous>, transform_indices = @transform_2, window_bounds = array<i64: 128, 128>}, {pipeline_mode = #tpu.pipeline_mode<synchronous>, transform_indices = @transform_3, window_bounds = array<i64: 1, 128>}, {transform_indices = @transform_4, window_bounds = array<i64: 1, 8, 128>}, {pipeline_mode = #tpu.pipeline_mode<synchronous>, transform_indices = @transform_5, window_bounds = array<i64: 1, 128>}, {pipeline_mode = #tpu.pipeline_mode<synchronous>, transform_indices = @transform_6, window_bounds = array<i64: 1, 128>}, {transform_indices = @transform_7, window_bounds = array<i64: 1, 8, 128>}]} {
    %c0 = arith.constant 0 : index
    %c0_0 = arith.constant 0 : index
    %c0_1 = arith.constant 0 : index
    %0 = vector.load %arg1[%c0, %c0_0, %c0_1] : memref<1x8x384xbf16, #tpu.memory_space<vmem>>, vector<1x8x384xbf16>
    %1 = vector.shape_cast %0 : vector<1x8x384xbf16> to vector<8x384xbf16>
    %c0_2 = arith.constant 0 : index
    %c0_3 = arith.constant 0 : index
    %c0_4 = arith.constant 0 : index
    %2 = vector.load %arg2[%c0_2, %c0_3, %c0_4] : memref<1x8x8xf32, #tpu.memory_space<vmem>>, vector<1x8x8xf32>
    %3 = vector.shape_cast %2 : vector<1x8x8xf32> to vector<8x8xf32>
    %4 = vector.extract_strided_slice %1 {offsets = [0, 0], sizes = [8, 128], strides = [1, 1]} : vector<8x384xbf16> to vector<8x128xbf16>
    %5 = vector.extract_strided_slice %1 {offsets = [0, 128], sizes = [8, 128], strides = [1, 1]} : vector<8x384xbf16> to vector<8x128xbf16>
    %6 = vector.extract_strided_slice %1 {offsets = [0, 256], sizes = [8, 128], strides = [1, 1]} : vector<8x384xbf16> to vector<8x128xbf16>
    %7 = vector.extract_strided_slice %4 {offsets = [0, 0], sizes = [8, 32], strides = [1, 1]} : vector<8x128xbf16> to vector<8x32xbf16>
    %8 = vector.extract_strided_slice %5 {offsets = [0, 0], sizes = [8, 32], strides = [1, 1]} : vector<8x128xbf16> to vector<8x32xbf16>
    %cst = arith.constant dense<0.000000e+00> : vector<8x8xf32>
    %9 = tpu.matmul %7, %8, %cst {dimension_numbers = #tpu.dot_dimension_numbers<[1], [1], [0], [0], [0, 0, 1, 0], [], []>} : vector<8x32xbf16>, vector<8x32xbf16>, vector<8x8xf32> -> vector<8x8xf32>
    %cst_5 = arith.constant 0.176776692 : f32
    %10 = vector.broadcast %cst_5 : f32 to vector<8x8xf32>
    %11 = arith.mulf %9, %10 : vector<8x8xf32>
    %12 = arith.addf %11, %3 : vector<8x8xf32>
    %cst_6 = arith.constant dense<0xFF800000> : vector<8xf32>
    %13 = vector.multi_reduction <maximumf>, %12, %cst_6 [1] : vector<8x8xf32> to vector<8xf32>
    %14 = vector.shape_cast %13 : vector<8xf32> to vector<8x1xf32>
    %15 = vector.broadcast %14 : vector<8x1xf32> to vector<8x8xf32>
    %16 = arith.subf %12, %15 : vector<8x8xf32>
    %17 = math.exp %16 : vector<8x8xf32>
    %cst_7 = arith.constant dense<0.000000e+00> : vector<8xf32>
    %18 = vector.multi_reduction <add>, %17, %cst_7 [1] : vector<8x8xf32> to vector<8xf32>
    %19 = vector.shape_cast %18 : vector<8xf32> to vector<8x1xf32>
    %20 = tpu.reciprocal %19 {approx = true} : vector<8x1xf32> -> vector<8x1xf32>
    %21 = vector.broadcast %20 : vector<8x1xf32> to vector<8x8xf32>
    %22 = arith.mulf %17, %21 : vector<8x8xf32>
    %23 = arith.truncf %22 : vector<8x8xf32> to vector<8x8xbf16>
    %24 = vector.extract_strided_slice %6 {offsets = [0, 0], sizes = [8, 32], strides = [1, 1]} : vector<8x128xbf16> to vector<8x32xbf16>
    %cst_8 = arith.constant dense<0.000000e+00> : vector<8x32xf32>
    %25 = tpu.matmul %23, %24, %cst_8 {dimension_numbers = #tpu.dot_dimension_numbers<[1], [0], [0], [1], [0, 0, 1, 1], [], []>} : vector<8x8xbf16>, vector<8x32xbf16>, vector<8x32xf32> -> vector<8x32xf32>
    %26 = vector.extract_strided_slice %4 {offsets = [0, 32], sizes = [8, 32], strides = [1, 1]} : vector<8x128xbf16> to vector<8x32xbf16>
    %27 = vector.extract_strided_slice %5 {offsets = [0, 32], sizes = [8, 32], strides = [1, 1]} : vector<8x128xbf16> to vector<8x32xbf16>
    %cst_9 = arith.constant dense<0.000000e+00> : vector<8x8xf32>
    %28 = tpu.matmul %26, %27, %cst_9 {dimension_numbers = #tpu.dot_dimension_numbers<[1], [1], [0], [0], [0, 0, 1, 0], [], []>} : vector<8x32xbf16>, vector<8x32xbf16>, vector<8x8xf32> -> vector<8x8xf32>
    %cst_10 = arith.constant 0.176776692 : f32
    %29 = vector.broadcast %cst_10 : f32 to vector<8x8xf32>
    %30 = arith.mulf %28, %29 : vector<8x8xf32>
    %31 = arith.addf %30, %3 : vector<8x8xf32>
    %cst_11 = arith.constant dense<0xFF800000> : vector<8xf32>
    %32 = vector.multi_reduction <maximumf>, %31, %cst_11 [1] : vector<8x8xf32> to vector<8xf32>
    %33 = vector.shape_cast %32 : vector<8xf32> to vector<8x1xf32>
    %34 = vector.broadcast %33 : vector<8x1xf32> to vector<8x8xf32>
    %35 = arith.subf %31, %34 : vector<8x8xf32>
    %36 = math.exp %35 : vector<8x8xf32>
    %cst_12 = arith.constant dense<0.000000e+00> : vector<8xf32>
    %37 = vector.multi_reduction <add>, %36, %cst_12 [1] : vector<8x8xf32> to vector<8xf32>
    %38 = vector.shape_cast %37 : vector<8xf32> to vector<8x1xf32>
    %39 = tpu.reciprocal %38 {approx = true} : vector<8x1xf32> -> vector<8x1xf32>
    %40 = vector.broadcast %39 : vector<8x1xf32> to vector<8x8xf32>
    %41 = arith.mulf %36, %40 : vector<8x8xf32>
    %42 = arith.truncf %41 : vector<8x8xf32> to vector<8x8xbf16>
    %43 = vector.extract_strided_slice %6 {offsets = [0, 32], sizes = [8, 32], strides = [1, 1]} : vector<8x128xbf16> to vector<8x32xbf16>
    %cst_13 = arith.constant dense<0.000000e+00> : vector<8x32xf32>
    %44 = tpu.matmul %42, %43, %cst_13 {dimension_numbers = #tpu.dot_dimension_numbers<[1], [0], [0], [1], [0, 0, 1, 1], [], []>} : vector<8x8xbf16>, vector<8x32xbf16>, vector<8x32xf32> -> vector<8x32xf32>
    %45 = vector.extract_strided_slice %4 {offsets = [0, 64], sizes = [8, 32], strides = [1, 1]} : vector<8x128xbf16> to vector<8x32xbf16>
    %46 = vector.extract_strided_slice %5 {offsets = [0, 64], sizes = [8, 32], strides = [1, 1]} : vector<8x128xbf16> to vector<8x32xbf16>
    %cst_14 = arith.constant dense<0.000000e+00> : vector<8x8xf32>
    %47 = tpu.matmul %45, %46, %cst_14 {dimension_numbers = #tpu.dot_dimension_numbers<[1], [1], [0], [0], [0, 0, 1, 0], [], []>} : vector<8x32xbf16>, vector<8x32xbf16>, vector<8x8xf32> -> vector<8x8xf32>
    %cst_15 = arith.constant 0.176776692 : f32
    %48 = vector.broadcast %cst_15 : f32 to vector<8x8xf32>
    %49 = arith.mulf %47, %48 : vector<8x8xf32>
    %50 = arith.addf %49, %3 : vector<8x8xf32>
    %cst_16 = arith.constant dense<0xFF800000> : vector<8xf32>
    %51 = vector.multi_reduction <maximumf>, %50, %cst_16 [1] : vector<8x8xf32> to vector<8xf32>
    %52 = vector.shape_cast %51 : vector<8xf32> to vector<8x1xf32>
    %53 = vector.broadcast %52 : vector<8x1xf32> to vector<8x8xf32>
    %54 = arith.subf %50, %53 : vector<8x8xf32>
    %55 = math.exp %54 : vector<8x8xf32>
    %cst_17 = arith.constant dense<0.000000e+00> : vector<8xf32>
    %56 = vector.multi_reduction <add>, %55, %cst_17 [1] : vector<8x8xf32> to vector<8xf32>
    %57 = vector.shape_cast %56 : vector<8xf32> to vector<8x1xf32>
    %58 = tpu.reciprocal %57 {approx = true} : vector<8x1xf32> -> vector<8x1xf32>
    %59 = vector.broadcast %58 : vector<8x1xf32> to vector<8x8xf32>
    %60 = arith.mulf %55, %59 : vector<8x8xf32>
    %61 = arith.truncf %60 : vector<8x8xf32> to vector<8x8xbf16>
    %62 = vector.extract_strided_slice %6 {offsets = [0, 64], sizes = [8, 32], strides = [1, 1]} : vector<8x128xbf16> to vector<8x32xbf16>
    %cst_18 = arith.constant dense<0.000000e+00> : vector<8x32xf32>
    %63 = tpu.matmul %61, %62, %cst_18 {dimension_numbers = #tpu.dot_dimension_numbers<[1], [0], [0], [1], [0, 0, 1, 1], [], []>} : vector<8x8xbf16>, vector<8x32xbf16>, vector<8x32xf32> -> vector<8x32xf32>
    %64 = vector.extract_strided_slice %4 {offsets = [0, 96], sizes = [8, 32], strides = [1, 1]} : vector<8x128xbf16> to vector<8x32xbf16>
    %65 = vector.extract_strided_slice %5 {offsets = [0, 96], sizes = [8, 32], strides = [1, 1]} : vector<8x128xbf16> to vector<8x32xbf16>
    %cst_19 = arith.constant dense<0.000000e+00> : vector<8x8xf32>
    %66 = tpu.matmul %64, %65, %cst_19 {dimension_numbers = #tpu.dot_dimension_numbers<[1], [1], [0], [0], [0, 0, 1, 0], [], []>} : vector<8x32xbf16>, vector<8x32xbf16>, vector<8x8xf32> -> vector<8x8xf32>
    %cst_20 = arith.constant 0.176776692 : f32
    %67 = vector.broadcast %cst_20 : f32 to vector<8x8xf32>
    %68 = arith.mulf %66, %67 : vector<8x8xf32>
    %69 = arith.addf %68, %3 : vector<8x8xf32>
    %cst_21 = arith.constant dense<0xFF800000> : vector<8xf32>
    %70 = vector.multi_reduction <maximumf>, %69, %cst_21 [1] : vector<8x8xf32> to vector<8xf32>
    %71 = vector.shape_cast %70 : vector<8xf32> to vector<8x1xf32>
    %72 = vector.broadcast %71 : vector<8x1xf32> to vector<8x8xf32>
    %73 = arith.subf %69, %72 : vector<8x8xf32>
    %74 = math.exp %73 : vector<8x8xf32>
    %cst_22 = arith.constant dense<0.000000e+00> : vector<8xf32>
    %75 = vector.multi_reduction <add>, %74, %cst_22 [1] : vector<8x8xf32> to vector<8xf32>
    %76 = vector.shape_cast %75 : vector<8xf32> to vector<8x1xf32>
    %77 = tpu.reciprocal %76 {approx = true} : vector<8x1xf32> -> vector<8x1xf32>
    %78 = vector.broadcast %77 : vector<8x1xf32> to vector<8x8xf32>
    %79 = arith.mulf %74, %78 : vector<8x8xf32>
    %80 = arith.truncf %79 : vector<8x8xf32> to vector<8x8xbf16>
    %81 = vector.extract_strided_slice %6 {offsets = [0, 96], sizes = [8, 32], strides = [1, 1]} : vector<8x128xbf16> to vector<8x32xbf16>
    %cst_23 = arith.constant dense<0.000000e+00> : vector<8x32xf32>
    %82 = tpu.matmul %80, %81, %cst_23 {dimension_numbers = #tpu.dot_dimension_numbers<[1], [0], [0], [1], [0, 0, 1, 1], [], []>} : vector<8x8xbf16>, vector<8x32xbf16>, vector<8x32xf32> -> vector<8x32xf32>
    %83 = tpu.concatenate %25, %44, %63, %82 in 1 : vector<8x32xf32>, vector<8x32xf32>, vector<8x32xf32>, vector<8x32xf32> -> vector<8x128xf32>
    %c0_24 = arith.constant 0 : index
    %c0_25 = arith.constant 0 : index
    %84 = vector.load %arg3[%c0_24, %c0_25] : memref<128x128xbf16, #tpu.memory_space<vmem>>, vector<128x128xbf16>
    %c0_26 = arith.constant 0 : index
    %c0_27 = arith.constant 0 : index
    %85 = vector.load %arg4[%c0_26, %c0_27] : memref<1x128xf32, #tpu.memory_space<vmem>>, vector<1x128xf32>
    %c0_28 = arith.constant 0 : index
    %c0_29 = arith.constant 0 : index
    %c0_30 = arith.constant 0 : index
    %86 = vector.load %arg5[%c0_28, %c0_29, %c0_30] : memref<1x8x128xbf16, #tpu.memory_space<vmem>>, vector<1x8x128xbf16>
    %87 = vector.shape_cast %86 : vector<1x8x128xbf16> to vector<8x128xbf16>
    %c0_31 = arith.constant 0 : index
    %c0_32 = arith.constant 0 : index
    %88 = vector.load %arg6[%c0_31, %c0_32] : memref<1x128xf32, #tpu.memory_space<vmem>>, vector<1x128xf32>
    %c0_33 = arith.constant 0 : index
    %c0_34 = arith.constant 0 : index
    %89 = vector.load %arg7[%c0_33, %c0_34] : memref<1x128xf32, #tpu.memory_space<vmem>>, vector<1x128xf32>
    %90 = arith.truncf %83 : vector<8x128xf32> to vector<8x128xbf16>
    %cst_35 = arith.constant dense<0.000000e+00> : vector<8x128xf32>
    %91 = tpu.matmul %90, %84, %cst_35 {dimension_numbers = #tpu.dot_dimension_numbers<[1], [0], [0], [1], [0, 0, 1, 1], [], []>} : vector<8x128xbf16>, vector<128x128xbf16>, vector<8x128xf32> -> vector<8x128xf32>
    %92 = vector.broadcast %85 : vector<1x128xf32> to vector<8x128xf32>
    %93 = arith.addf %91, %92 : vector<8x128xf32>
    %94 = arith.extf %87 : vector<8x128xbf16> to vector<8x128xf32>
    %95 = arith.addf %93, %94 : vector<8x128xf32>
    %cst_36 = arith.constant dense<0.000000e+00> : vector<8xf32>
    %96 = vector.multi_reduction <add>, %95, %cst_36 [1] : vector<8x128xf32> to vector<8xf32>
    %97 = vector.shape_cast %96 : vector<8xf32> to vector<8x1xf32>
    %cst_37 = arith.constant 1.280000e+02 : f32
    %98 = vector.broadcast %cst_37 : f32 to vector<8x1xf32>
    %99 = arith.divf %97, %98 : vector<8x1xf32>
    %100 = vector.broadcast %99 : vector<8x1xf32> to vector<8x128xf32>
    %101 = arith.subf %95, %100 : vector<8x128xf32>
    %102 = arith.mulf %101, %101 : vector<8x128xf32>
    %cst_38 = arith.constant dense<0.000000e+00> : vector<8xf32>
    %103 = vector.multi_reduction <add>, %102, %cst_38 [1] : vector<8x128xf32> to vector<8xf32>
    %104 = vector.shape_cast %103 : vector<8xf32> to vector<8x1xf32>
    %cst_39 = arith.constant 1.280000e+02 : f32
    %105 = vector.broadcast %cst_39 : f32 to vector<8x1xf32>
    %106 = arith.divf %104, %105 : vector<8x1xf32>
    %cst_40 = arith.constant 9.99999974E-6 : f32
    %107 = vector.broadcast %cst_40 : f32 to vector<8x1xf32>
    %108 = arith.addf %106, %107 : vector<8x1xf32>
    %109 = math.rsqrt %108 : vector<8x1xf32>
    %110 = vector.broadcast %109 : vector<8x1xf32> to vector<8x128xf32>
    %111 = arith.mulf %101, %110 : vector<8x128xf32>
    %112 = vector.broadcast %88 : vector<1x128xf32> to vector<8x128xf32>
    %113 = arith.mulf %111, %112 : vector<8x128xf32>
    %114 = vector.broadcast %89 : vector<1x128xf32> to vector<8x128xf32>
    %115 = arith.addf %113, %114 : vector<8x128xf32>
    %116 = arith.truncf %115 : vector<8x128xf32> to vector<8x128xbf16>
    %c0_41 = arith.constant 0 : index
    %c0_42 = arith.constant 0 : index
    %c0_43 = arith.constant 0 : index
    %117 = vector.load %arg8[%c0_41, %c0_42, %c0_43] : memref<1x8x128xbf16, #tpu.memory_space<vmem>>, vector<1x8x128xbf16>
    %118 = vector.shape_cast %117 : vector<1x8x128xbf16> to vector<8x128xbf16>
    %119 = vector.shape_cast %116 : vector<8x128xbf16> to vector<1x8x128xbf16>
    tpu.vector_store %arg8[%c0_41, %c0_42, %c0_43], %119 {strides = array<i32>} : memref<1x8x128xbf16, #tpu.memory_space<vmem>>, vector<1x8x128xbf16>,
    return
  }
  func.func @transform_0(%arg0: i32) -> (i32, i32, i32) {
    %c0_i32 = arith.constant 0 : i32
    %c0_i32_0 = arith.constant 0 : i32
    %c0_i32_1 = arith.constant 0 : i32
    return %arg0, %c0_i32, %c0_i32_0 : i32, i32, i32
  }
  func.func @transform_1(%arg0: i32) -> (i32, i32, i32) {
    %c0_i32 = arith.constant 0 : i32
    %c0_i32_0 = arith.constant 0 : i32
    %c0_i32_1 = arith.constant 0 : i32
    %c0_i32_2 = arith.constant 0 : i32
    return %c0_i32, %c0_i32_0, %c0_i32_1 : i32, i32, i32
  }
  func.func @transform_2(%arg0: i32) -> (i32, i32) {
    %c0_i32 = arith.constant 0 : i32
    %c0_i32_0 = arith.constant 0 : i32
    %c0_i32_1 = arith.constant 0 : i32
    return %c0_i32, %c0_i32_0 : i32, i32
  }
  func.func @transform_3(%arg0: i32) -> (i32, i32) {
    %c0_i32 = arith.constant 0 : i32
    %c0_i32_0 = arith.constant 0 : i32
    %c0_i32_1 = arith.constant 0 : i32
    return %c0_i32, %c0_i32_0 : i32, i32
  }
  func.func @transform_4(%arg0: i32) -> (i32, i32, i32) {
    %c0_i32 = arith.constant 0 : i32
    %c0_i32_0 = arith.constant 0 : i32
    %c0_i32_1 = arith.constant 0 : i32
    return %arg0, %c0_i32, %c0_i32_0 : i32, i32, i32
  }
  func.func @transform_5(%arg0: i32) -> (i32, i32) {
    %c0_i32 = arith.constant 0 : i32
    %c0_i32_0 = arith.constant 0 : i32
    %c0_i32_1 = arith.constant 0 : i32
    return %c0_i32, %c0_i32_0 : i32, i32
  }
  func.func @transform_6(%arg0: i32) -> (i32, i32) {
    %c0_i32 = arith.constant 0 : i32
    %c0_i32_0 = arith.constant 0 : i32
    %c0_i32_1 = arith.constant 0 : i32
    return %c0_i32, %c0_i32_0 : i32, i32
  }
  func.func @transform_7(%arg0: i32) -> (i32, i32, i32) {
    %c0_i32 = arith.constant 0 : i32
    %c0_i32_0 = arith.constant 0 : i32
    %c0_i32_1 = arith.constant 0 : i32
    return %arg0, %c0_i32, %c0_i32_0 : i32, i32, i32
  }
}

module attributes {stable_mosaic.version = 11 : i64} {
  func.func @_linear_kernel(%arg0: i32, %arg1: i32, %arg2: i32, %arg3: memref<16x128xbf16, #tpu.memory_space<vmem>>, %arg4: memref<128x128xbf16, #tpu.memory_space<vmem>>, %arg5: memref<1x128xf32, #tpu.memory_space<vmem>>, %arg6: memref<16x128xbf16, #tpu.memory_space<vmem>>, %arg7: memref<16x128xf32, #tpu.memory_space<vmem>>) attributes {dimension_semantics = [#tpu.dimension_semantics<parallel>, #tpu.dimension_semantics<parallel>, #tpu.dimension_semantics<arbitrary>], iteration_bounds = array<i64: 1, 1, 1>, scalar_prefetch = 0 : i64, scratch_operands = 1 : i64, tpu.core_type = #tpu.core_type<tc>, window_params = [{transform_indices = @transform_0, window_bounds = array<i64: 16, 128>}, {transform_indices = @transform_1, window_bounds = array<i64: 128, 128>}, {transform_indices = @transform_2, window_bounds = array<i64: 1, 128>}, {transform_indices = @transform_3, window_bounds = array<i64: 16, 128>}]} {
    %c0_i32 = arith.constant 0 : i32
    %0 = arith.cmpi eq, %arg2, %c0_i32 : i32
    %1 = arith.extui %0 : i1 to i32
    %c0_i32_0 = arith.constant 0 : i32
    %2 = arith.cmpi ne, %1, %c0_i32_0 : i32
    scf.if %2 {
      %cst_10 = arith.constant 0.000000e+00 : f32
      %12 = vector.broadcast %cst_10 : f32 to vector<16x128xf32>
      %c0_11 = arith.constant 0 : index
      %c0_12 = arith.constant 0 : index
      %13 = vector.load %arg7[%c0_11, %c0_12] : memref<16x128xf32, #tpu.memory_space<vmem>>, vector<16x128xf32>
      tpu.vector_store %arg7[%c0_11, %c0_12], %12 {strides = array<i32>} : memref<16x128xf32, #tpu.memory_space<vmem>>, vector<16x128xf32>,
    } else {
    }
    %c0 = arith.constant 0 : index
    %c0_1 = arith.constant 0 : index
    %3 = vector.load %arg7[%c0, %c0_1] : memref<16x128xf32, #tpu.memory_space<vmem>>, vector<16x128xf32>
    %c0_2 = arith.constant 0 : index
    %c0_3 = arith.constant 0 : index
    %4 = vector.load %arg3[%c0_2, %c0_3] : memref<16x128xbf16, #tpu.memory_space<vmem>>, vector<16x128xbf16>
    %c0_4 = arith.constant 0 : index
    %c0_5 = arith.constant 0 : index
    %5 = vector.load %arg4[%c0_4, %c0_5] : memref<128x128xbf16, #tpu.memory_space<vmem>>, vector<128x128xbf16>
    %cst = arith.constant dense<0.000000e+00> : vector<16x128xf32>
    %6 = tpu.matmul %4, %5, %cst {dimension_numbers = #tpu.dot_dimension_numbers<[1], [0], [0], [1], [0, 0, 1, 1], [], []>} : vector<16x128xbf16>, vector<128x128xbf16>, vector<16x128xf32> -> vector<16x128xf32>
    %7 = arith.addf %3, %6 : vector<16x128xf32>
    %c0_6 = arith.constant 0 : index
    %c0_7 = arith.constant 0 : index
    %8 = vector.load %arg7[%c0_6, %c0_7] : memref<16x128xf32, #tpu.memory_space<vmem>>, vector<16x128xf32>
    tpu.vector_store %arg7[%c0_6, %c0_7], %7 {strides = array<i32>} : memref<16x128xf32, #tpu.memory_space<vmem>>, vector<16x128xf32>,
    %c0_i32_8 = arith.constant 0 : i32
    %9 = arith.cmpi eq, %arg2, %c0_i32_8 : i32
    %10 = arith.extui %9 : i1 to i32
    %c0_i32_9 = arith.constant 0 : i32
    %11 = arith.cmpi ne, %10, %c0_i32_9 : i32
    scf.if %11 {
      %c0_10 = arith.constant 0 : index
      %c0_11 = arith.constant 0 : index
      %12 = vector.load %arg7[%c0_10, %c0_11] : memref<16x128xf32, #tpu.memory_space<vmem>>, vector<16x128xf32>
      %c0_12 = arith.constant 0 : index
      %c0_13 = arith.constant 0 : index
      %13 = vector.load %arg5[%c0_12, %c0_13] : memref<1x128xf32, #tpu.memory_space<vmem>>, vector<1x128xf32>
      %14 = vector.broadcast %13 : vector<1x128xf32> to vector<16x128xf32>
      %15 = arith.addf %12, %14 : vector<16x128xf32>
      %16 = arith.truncf %15 : vector<16x128xf32> to vector<16x128xbf16>
      %c0_14 = arith.constant 0 : index
      %c0_15 = arith.constant 0 : index
      %17 = vector.load %arg6[%c0_14, %c0_15] : memref<16x128xbf16, #tpu.memory_space<vmem>>, vector<16x128xbf16>
      tpu.vector_store %arg6[%c0_14, %c0_15], %16 {strides = array<i32>} : memref<16x128xbf16, #tpu.memory_space<vmem>>, vector<16x128xbf16>,
    } else {
    }
    return
  }
  func.func @transform_0(%arg0: i32, %arg1: i32, %arg2: i32) -> (i32, i32) {
    %c0_i32 = arith.constant 0 : i32
    return %arg0, %arg2 : i32, i32
  }
  func.func @transform_1(%arg0: i32, %arg1: i32, %arg2: i32) -> (i32, i32) {
    %c0_i32 = arith.constant 0 : i32
    return %arg2, %arg1 : i32, i32
  }
  func.func @transform_2(%arg0: i32, %arg1: i32, %arg2: i32) -> (i32, i32) {
    %c0_i32 = arith.constant 0 : i32
    %c0_i32_0 = arith.constant 0 : i32
    return %c0_i32, %arg1 : i32, i32
  }
  func.func @transform_3(%arg0: i32, %arg1: i32, %arg2: i32) -> (i32, i32) {
    %c0_i32 = arith.constant 0 : i32
    return %arg0, %arg1 : i32, i32
  }
}

module attributes {stable_mosaic.version = 11 : i64} {
  func.func @_cross_attn_ln_kernel(%arg0: i32, %arg1: memref<1x8x128xbf16, #tpu.memory_space<vmem>>, %arg2: memref<1x8x256xbf16, #tpu.memory_space<vmem>>, %arg3: memref<128x128xbf16, #tpu.memory_space<vmem>>, %arg4: memref<1x128xf32, #tpu.memory_space<vmem>>, %arg5: memref<1x8x128xbf16, #tpu.memory_space<vmem>>, %arg6: memref<1x128xf32, #tpu.memory_space<vmem>>, %arg7: memref<1x128xf32, #tpu.memory_space<vmem>>, %arg8: memref<1x8x128xbf16, #tpu.memory_space<vmem>>) attributes {dimension_semantics = [#tpu.dimension_semantics<parallel>], iteration_bounds = array<i64: 2>, scalar_prefetch = 0 : i64, scratch_operands = 0 : i64, tpu.core_type = #tpu.core_type<tc>, window_params = [{transform_indices = @transform_0, window_bounds = array<i64: 1, 8, 128>}, {transform_indices = @transform_1, window_bounds = array<i64: 1, 8, 256>}, {pipeline_mode = #tpu.pipeline_mode<synchronous>, transform_indices = @transform_2, window_bounds = array<i64: 128, 128>}, {pipeline_mode = #tpu.pipeline_mode<synchronous>, transform_indices = @transform_3, window_bounds = array<i64: 1, 128>}, {transform_indices = @transform_4, window_bounds = array<i64: 1, 8, 128>}, {pipeline_mode = #tpu.pipeline_mode<synchronous>, transform_indices = @transform_5, window_bounds = array<i64: 1, 128>}, {pipeline_mode = #tpu.pipeline_mode<synchronous>, transform_indices = @transform_6, window_bounds = array<i64: 1, 128>}, {transform_indices = @transform_7, window_bounds = array<i64: 1, 8, 128>}]} {
    %c0 = arith.constant 0 : index
    %c0_0 = arith.constant 0 : index
    %c0_1 = arith.constant 0 : index
    %0 = vector.load %arg1[%c0, %c0_0, %c0_1] : memref<1x8x128xbf16, #tpu.memory_space<vmem>>, vector<1x8x128xbf16>
    %1 = vector.shape_cast %0 : vector<1x8x128xbf16> to vector<8x128xbf16>
    %c0_2 = arith.constant 0 : index
    %c0_3 = arith.constant 0 : index
    %c0_4 = arith.constant 0 : index
    %2 = vector.load %arg2[%c0_2, %c0_3, %c0_4] : memref<1x8x256xbf16, #tpu.memory_space<vmem>>, vector<1x8x256xbf16>
    %3 = vector.shape_cast %2 : vector<1x8x256xbf16> to vector<8x256xbf16>
    %4 = vector.extract_strided_slice %3 {offsets = [0, 0], sizes = [8, 128], strides = [1, 1]} : vector<8x256xbf16> to vector<8x128xbf16>
    %5 = vector.extract_strided_slice %3 {offsets = [0, 128], sizes = [8, 128], strides = [1, 1]} : vector<8x256xbf16> to vector<8x128xbf16>
    %6 = vector.extract_strided_slice %1 {offsets = [0, 0], sizes = [8, 32], strides = [1, 1]} : vector<8x128xbf16> to vector<8x32xbf16>
    %7 = vector.extract_strided_slice %4 {offsets = [0, 0], sizes = [8, 32], strides = [1, 1]} : vector<8x128xbf16> to vector<8x32xbf16>
    %cst = arith.constant dense<0.000000e+00> : vector<8x8xf32>
    %8 = tpu.matmul %6, %7, %cst {dimension_numbers = #tpu.dot_dimension_numbers<[1], [1], [0], [0], [0, 0, 1, 0], [], []>} : vector<8x32xbf16>, vector<8x32xbf16>, vector<8x8xf32> -> vector<8x8xf32>
    %cst_5 = arith.constant 0.176776692 : f32
    %9 = vector.broadcast %cst_5 : f32 to vector<8x8xf32>
    %10 = arith.mulf %8, %9 : vector<8x8xf32>
    %cst_6 = arith.constant dense<0xFF800000> : vector<8xf32>
    %11 = vector.multi_reduction <maximumf>, %10, %cst_6 [1] : vector<8x8xf32> to vector<8xf32>
    %12 = vector.shape_cast %11 : vector<8xf32> to vector<8x1xf32>
    %13 = vector.broadcast %12 : vector<8x1xf32> to vector<8x8xf32>
    %14 = arith.subf %10, %13 : vector<8x8xf32>
    %15 = math.exp %14 : vector<8x8xf32>
    %cst_7 = arith.constant dense<0.000000e+00> : vector<8xf32>
    %16 = vector.multi_reduction <add>, %15, %cst_7 [1] : vector<8x8xf32> to vector<8xf32>
    %17 = vector.shape_cast %16 : vector<8xf32> to vector<8x1xf32>
    %18 = tpu.reciprocal %17 {approx = true} : vector<8x1xf32> -> vector<8x1xf32>
    %19 = vector.broadcast %18 : vector<8x1xf32> to vector<8x8xf32>
    %20 = arith.mulf %15, %19 : vector<8x8xf32>
    %21 = arith.truncf %20 : vector<8x8xf32> to vector<8x8xbf16>
    %22 = vector.extract_strided_slice %5 {offsets = [0, 0], sizes = [8, 32], strides = [1, 1]} : vector<8x128xbf16> to vector<8x32xbf16>
    %cst_8 = arith.constant dense<0.000000e+00> : vector<8x32xf32>
    %23 = tpu.matmul %21, %22, %cst_8 {dimension_numbers = #tpu.dot_dimension_numbers<[1], [0], [0], [1], [0, 0, 1, 1], [], []>} : vector<8x8xbf16>, vector<8x32xbf16>, vector<8x32xf32> -> vector<8x32xf32>
    %24 = vector.extract_strided_slice %1 {offsets = [0, 32], sizes = [8, 32], strides = [1, 1]} : vector<8x128xbf16> to vector<8x32xbf16>
    %25 = vector.extract_strided_slice %4 {offsets = [0, 32], sizes = [8, 32], strides = [1, 1]} : vector<8x128xbf16> to vector<8x32xbf16>
    %cst_9 = arith.constant dense<0.000000e+00> : vector<8x8xf32>
    %26 = tpu.matmul %24, %25, %cst_9 {dimension_numbers = #tpu.dot_dimension_numbers<[1], [1], [0], [0], [0, 0, 1, 0], [], []>} : vector<8x32xbf16>, vector<8x32xbf16>, vector<8x8xf32> -> vector<8x8xf32>
    %cst_10 = arith.constant 0.176776692 : f32
    %27 = vector.broadcast %cst_10 : f32 to vector<8x8xf32>
    %28 = arith.mulf %26, %27 : vector<8x8xf32>
    %cst_11 = arith.constant dense<0xFF800000> : vector<8xf32>
    %29 = vector.multi_reduction <maximumf>, %28, %cst_11 [1] : vector<8x8xf32> to vector<8xf32>
    %30 = vector.shape_cast %29 : vector<8xf32> to vector<8x1xf32>
    %31 = vector.broadcast %30 : vector<8x1xf32> to vector<8x8xf32>
    %32 = arith.subf %28, %31 : vector<8x8xf32>
    %33 = math.exp %32 : vector<8x8xf32>
    %cst_12 = arith.constant dense<0.000000e+00> : vector<8xf32>
    %34 = vector.multi_reduction <add>, %33, %cst_12 [1] : vector<8x8xf32> to vector<8xf32>
    %35 = vector.shape_cast %34 : vector<8xf32> to vector<8x1xf32>
    %36 = tpu.reciprocal %35 {approx = true} : vector<8x1xf32> -> vector<8x1xf32>
    %37 = vector.broadcast %36 : vector<8x1xf32> to vector<8x8xf32>
    %38 = arith.mulf %33, %37 : vector<8x8xf32>
    %39 = arith.truncf %38 : vector<8x8xf32> to vector<8x8xbf16>
    %40 = vector.extract_strided_slice %5 {offsets = [0, 32], sizes = [8, 32], strides = [1, 1]} : vector<8x128xbf16> to vector<8x32xbf16>
    %cst_13 = arith.constant dense<0.000000e+00> : vector<8x32xf32>
    %41 = tpu.matmul %39, %40, %cst_13 {dimension_numbers = #tpu.dot_dimension_numbers<[1], [0], [0], [1], [0, 0, 1, 1], [], []>} : vector<8x8xbf16>, vector<8x32xbf16>, vector<8x32xf32> -> vector<8x32xf32>
    %42 = vector.extract_strided_slice %1 {offsets = [0, 64], sizes = [8, 32], strides = [1, 1]} : vector<8x128xbf16> to vector<8x32xbf16>
    %43 = vector.extract_strided_slice %4 {offsets = [0, 64], sizes = [8, 32], strides = [1, 1]} : vector<8x128xbf16> to vector<8x32xbf16>
    %cst_14 = arith.constant dense<0.000000e+00> : vector<8x8xf32>
    %44 = tpu.matmul %42, %43, %cst_14 {dimension_numbers = #tpu.dot_dimension_numbers<[1], [1], [0], [0], [0, 0, 1, 0], [], []>} : vector<8x32xbf16>, vector<8x32xbf16>, vector<8x8xf32> -> vector<8x8xf32>
    %cst_15 = arith.constant 0.176776692 : f32
    %45 = vector.broadcast %cst_15 : f32 to vector<8x8xf32>
    %46 = arith.mulf %44, %45 : vector<8x8xf32>
    %cst_16 = arith.constant dense<0xFF800000> : vector<8xf32>
    %47 = vector.multi_reduction <maximumf>, %46, %cst_16 [1] : vector<8x8xf32> to vector<8xf32>
    %48 = vector.shape_cast %47 : vector<8xf32> to vector<8x1xf32>
    %49 = vector.broadcast %48 : vector<8x1xf32> to vector<8x8xf32>
    %50 = arith.subf %46, %49 : vector<8x8xf32>
    %51 = math.exp %50 : vector<8x8xf32>
    %cst_17 = arith.constant dense<0.000000e+00> : vector<8xf32>
    %52 = vector.multi_reduction <add>, %51, %cst_17 [1] : vector<8x8xf32> to vector<8xf32>
    %53 = vector.shape_cast %52 : vector<8xf32> to vector<8x1xf32>
    %54 = tpu.reciprocal %53 {approx = true} : vector<8x1xf32> -> vector<8x1xf32>
    %55 = vector.broadcast %54 : vector<8x1xf32> to vector<8x8xf32>
    %56 = arith.mulf %51, %55 : vector<8x8xf32>
    %57 = arith.truncf %56 : vector<8x8xf32> to vector<8x8xbf16>
    %58 = vector.extract_strided_slice %5 {offsets = [0, 64], sizes = [8, 32], strides = [1, 1]} : vector<8x128xbf16> to vector<8x32xbf16>
    %cst_18 = arith.constant dense<0.000000e+00> : vector<8x32xf32>
    %59 = tpu.matmul %57, %58, %cst_18 {dimension_numbers = #tpu.dot_dimension_numbers<[1], [0], [0], [1], [0, 0, 1, 1], [], []>} : vector<8x8xbf16>, vector<8x32xbf16>, vector<8x32xf32> -> vector<8x32xf32>
    %60 = vector.extract_strided_slice %1 {offsets = [0, 96], sizes = [8, 32], strides = [1, 1]} : vector<8x128xbf16> to vector<8x32xbf16>
    %61 = vector.extract_strided_slice %4 {offsets = [0, 96], sizes = [8, 32], strides = [1, 1]} : vector<8x128xbf16> to vector<8x32xbf16>
    %cst_19 = arith.constant dense<0.000000e+00> : vector<8x8xf32>
    %62 = tpu.matmul %60, %61, %cst_19 {dimension_numbers = #tpu.dot_dimension_numbers<[1], [1], [0], [0], [0, 0, 1, 0], [], []>} : vector<8x32xbf16>, vector<8x32xbf16>, vector<8x8xf32> -> vector<8x8xf32>
    %cst_20 = arith.constant 0.176776692 : f32
    %63 = vector.broadcast %cst_20 : f32 to vector<8x8xf32>
    %64 = arith.mulf %62, %63 : vector<8x8xf32>
    %cst_21 = arith.constant dense<0xFF800000> : vector<8xf32>
    %65 = vector.multi_reduction <maximumf>, %64, %cst_21 [1] : vector<8x8xf32> to vector<8xf32>
    %66 = vector.shape_cast %65 : vector<8xf32> to vector<8x1xf32>
    %67 = vector.broadcast %66 : vector<8x1xf32> to vector<8x8xf32>
    %68 = arith.subf %64, %67 : vector<8x8xf32>
    %69 = math.exp %68 : vector<8x8xf32>
    %cst_22 = arith.constant dense<0.000000e+00> : vector<8xf32>
    %70 = vector.multi_reduction <add>, %69, %cst_22 [1] : vector<8x8xf32> to vector<8xf32>
    %71 = vector.shape_cast %70 : vector<8xf32> to vector<8x1xf32>
    %72 = tpu.reciprocal %71 {approx = true} : vector<8x1xf32> -> vector<8x1xf32>
    %73 = vector.broadcast %72 : vector<8x1xf32> to vector<8x8xf32>
    %74 = arith.mulf %69, %73 : vector<8x8xf32>
    %75 = arith.truncf %74 : vector<8x8xf32> to vector<8x8xbf16>
    %76 = vector.extract_strided_slice %5 {offsets = [0, 96], sizes = [8, 32], strides = [1, 1]} : vector<8x128xbf16> to vector<8x32xbf16>
    %cst_23 = arith.constant dense<0.000000e+00> : vector<8x32xf32>
    %77 = tpu.matmul %75, %76, %cst_23 {dimension_numbers = #tpu.dot_dimension_numbers<[1], [0], [0], [1], [0, 0, 1, 1], [], []>} : vector<8x8xbf16>, vector<8x32xbf16>, vector<8x32xf32> -> vector<8x32xf32>
    %78 = tpu.concatenate %23, %41, %59, %77 in 1 : vector<8x32xf32>, vector<8x32xf32>, vector<8x32xf32>, vector<8x32xf32> -> vector<8x128xf32>
    %c0_24 = arith.constant 0 : index
    %c0_25 = arith.constant 0 : index
    %79 = vector.load %arg3[%c0_24, %c0_25] : memref<128x128xbf16, #tpu.memory_space<vmem>>, vector<128x128xbf16>
    %c0_26 = arith.constant 0 : index
    %c0_27 = arith.constant 0 : index
    %80 = vector.load %arg4[%c0_26, %c0_27] : memref<1x128xf32, #tpu.memory_space<vmem>>, vector<1x128xf32>
    %c0_28 = arith.constant 0 : index
    %c0_29 = arith.constant 0 : index
    %c0_30 = arith.constant 0 : index
    %81 = vector.load %arg5[%c0_28, %c0_29, %c0_30] : memref<1x8x128xbf16, #tpu.memory_space<vmem>>, vector<1x8x128xbf16>
    %82 = vector.shape_cast %81 : vector<1x8x128xbf16> to vector<8x128xbf16>
    %c0_31 = arith.constant 0 : index
    %c0_32 = arith.constant 0 : index
    %83 = vector.load %arg6[%c0_31, %c0_32] : memref<1x128xf32, #tpu.memory_space<vmem>>, vector<1x128xf32>
    %c0_33 = arith.constant 0 : index
    %c0_34 = arith.constant 0 : index
    %84 = vector.load %arg7[%c0_33, %c0_34] : memref<1x128xf32, #tpu.memory_space<vmem>>, vector<1x128xf32>
    %85 = arith.truncf %78 : vector<8x128xf32> to vector<8x128xbf16>
    %cst_35 = arith.constant dense<0.000000e+00> : vector<8x128xf32>
    %86 = tpu.matmul %85, %79, %cst_35 {dimension_numbers = #tpu.dot_dimension_numbers<[1], [0], [0], [1], [0, 0, 1, 1], [], []>} : vector<8x128xbf16>, vector<128x128xbf16>, vector<8x128xf32> -> vector<8x128xf32>
    %87 = vector.broadcast %80 : vector<1x128xf32> to vector<8x128xf32>
    %88 = arith.addf %86, %87 : vector<8x128xf32>
    %89 = arith.extf %82 : vector<8x128xbf16> to vector<8x128xf32>
    %90 = arith.addf %88, %89 : vector<8x128xf32>
    %cst_36 = arith.constant dense<0.000000e+00> : vector<8xf32>
    %91 = vector.multi_reduction <add>, %90, %cst_36 [1] : vector<8x128xf32> to vector<8xf32>
    %92 = vector.shape_cast %91 : vector<8xf32> to vector<8x1xf32>
    %cst_37 = arith.constant 1.280000e+02 : f32
    %93 = vector.broadcast %cst_37 : f32 to vector<8x1xf32>
    %94 = arith.divf %92, %93 : vector<8x1xf32>
    %95 = vector.broadcast %94 : vector<8x1xf32> to vector<8x128xf32>
    %96 = arith.subf %90, %95 : vector<8x128xf32>
    %97 = arith.mulf %96, %96 : vector<8x128xf32>
    %cst_38 = arith.constant dense<0.000000e+00> : vector<8xf32>
    %98 = vector.multi_reduction <add>, %97, %cst_38 [1] : vector<8x128xf32> to vector<8xf32>
    %99 = vector.shape_cast %98 : vector<8xf32> to vector<8x1xf32>
    %cst_39 = arith.constant 1.280000e+02 : f32
    %100 = vector.broadcast %cst_39 : f32 to vector<8x1xf32>
    %101 = arith.divf %99, %100 : vector<8x1xf32>
    %cst_40 = arith.constant 9.99999974E-6 : f32
    %102 = vector.broadcast %cst_40 : f32 to vector<8x1xf32>
    %103 = arith.addf %101, %102 : vector<8x1xf32>
    %104 = math.rsqrt %103 : vector<8x1xf32>
    %105 = vector.broadcast %104 : vector<8x1xf32> to vector<8x128xf32>
    %106 = arith.mulf %96, %105 : vector<8x128xf32>
    %107 = vector.broadcast %83 : vector<1x128xf32> to vector<8x128xf32>
    %108 = arith.mulf %106, %107 : vector<8x128xf32>
    %109 = vector.broadcast %84 : vector<1x128xf32> to vector<8x128xf32>
    %110 = arith.addf %108, %109 : vector<8x128xf32>
    %111 = arith.truncf %110 : vector<8x128xf32> to vector<8x128xbf16>
    %c0_41 = arith.constant 0 : index
    %c0_42 = arith.constant 0 : index
    %c0_43 = arith.constant 0 : index
    %112 = vector.load %arg8[%c0_41, %c0_42, %c0_43] : memref<1x8x128xbf16, #tpu.memory_space<vmem>>, vector<1x8x128xbf16>
    %113 = vector.shape_cast %112 : vector<1x8x128xbf16> to vector<8x128xbf16>
    %114 = vector.shape_cast %111 : vector<8x128xbf16> to vector<1x8x128xbf16>
    tpu.vector_store %arg8[%c0_41, %c0_42, %c0_43], %114 {strides = array<i32>} : memref<1x8x128xbf16, #tpu.memory_space<vmem>>, vector<1x8x128xbf16>,
    return
  }
  func.func @transform_0(%arg0: i32) -> (i32, i32, i32) {
    %c0_i32 = arith.constant 0 : i32
    %c0_i32_0 = arith.constant 0 : i32
    %c0_i32_1 = arith.constant 0 : i32
    return %arg0, %c0_i32, %c0_i32_0 : i32, i32, i32
  }
  func.func @transform_1(%arg0: i32) -> (i32, i32, i32) {
    %c0_i32 = arith.constant 0 : i32
    %c0_i32_0 = arith.constant 0 : i32
    %c0_i32_1 = arith.constant 0 : i32
    return %arg0, %c0_i32, %c0_i32_0 : i32, i32, i32
  }
  func.func @transform_2(%arg0: i32) -> (i32, i32) {
    %c0_i32 = arith.constant 0 : i32
    %c0_i32_0 = arith.constant 0 : i32
    %c0_i32_1 = arith.constant 0 : i32
    return %c0_i32, %c0_i32_0 : i32, i32
  }
  func.func @transform_3(%arg0: i32) -> (i32, i32) {
    %c0_i32 = arith.constant 0 : i32
    %c0_i32_0 = arith.constant 0 : i32
    %c0_i32_1 = arith.constant 0 : i32
    return %c0_i32, %c0_i32_0 : i32, i32
  }
  func.func @transform_4(%arg0: i32) -> (i32, i32, i32) {
    %c0_i32 = arith.constant 0 : i32
    %c0_i32_0 = arith.constant 0 : i32
    %c0_i32_1 = arith.constant 0 : i32
    return %arg0, %c0_i32, %c0_i32_0 : i32, i32, i32
  }
  func.func @transform_5(%arg0: i32) -> (i32, i32) {
    %c0_i32 = arith.constant 0 : i32
    %c0_i32_0 = arith.constant 0 : i32
    %c0_i32_1 = arith.constant 0 : i32
    return %c0_i32, %c0_i32_0 : i32, i32
  }
  func.func @transform_6(%arg0: i32) -> (i32, i32) {
    %c0_i32 = arith.constant 0 : i32
    %c0_i32_0 = arith.constant 0 : i32
    %c0_i32_1 = arith.constant 0 : i32
    return %c0_i32, %c0_i32_0 : i32, i32
  }
  func.func @transform_7(%arg0: i32) -> (i32, i32, i32) {
    %c0_i32 = arith.constant 0 : i32
    %c0_i32_0 = arith.constant 0 : i32
    %c0_i32_1 = arith.constant 0 : i32
    return %arg0, %c0_i32, %c0_i32_0 : i32, i32, i32
  }
}

module attributes {stable_mosaic.version = 11 : i64} {
  func.func @_linear_kernel(%arg0: i32, %arg1: i32, %arg2: i32, %arg3: memref<16x128xbf16, #tpu.memory_space<vmem>>, %arg4: memref<128x256xbf16, #tpu.memory_space<vmem>>, %arg5: memref<1x256xf32, #tpu.memory_space<vmem>>, %arg6: memref<16x256xf32, #tpu.memory_space<vmem>>, %arg7: memref<16x256xf32, #tpu.memory_space<vmem>>) attributes {dimension_semantics = [#tpu.dimension_semantics<parallel>, #tpu.dimension_semantics<parallel>, #tpu.dimension_semantics<arbitrary>], iteration_bounds = array<i64: 1, 1, 1>, scalar_prefetch = 0 : i64, scratch_operands = 1 : i64, tpu.core_type = #tpu.core_type<tc>, window_params = [{transform_indices = @transform_0, window_bounds = array<i64: 16, 128>}, {transform_indices = @transform_1, window_bounds = array<i64: 128, 256>}, {transform_indices = @transform_2, window_bounds = array<i64: 1, 256>}, {transform_indices = @transform_3, window_bounds = array<i64: 16, 256>}]} {
    %c0_i32 = arith.constant 0 : i32
    %0 = arith.cmpi eq, %arg2, %c0_i32 : i32
    %1 = arith.extui %0 : i1 to i32
    %c0_i32_0 = arith.constant 0 : i32
    %2 = arith.cmpi ne, %1, %c0_i32_0 : i32
    scf.if %2 {
      %cst_10 = arith.constant 0.000000e+00 : f32
      %12 = vector.broadcast %cst_10 : f32 to vector<16x256xf32>
      %c0_11 = arith.constant 0 : index
      %c0_12 = arith.constant 0 : index
      %13 = vector.load %arg7[%c0_11, %c0_12] : memref<16x256xf32, #tpu.memory_space<vmem>>, vector<16x256xf32>
      tpu.vector_store %arg7[%c0_11, %c0_12], %12 {strides = array<i32>} : memref<16x256xf32, #tpu.memory_space<vmem>>, vector<16x256xf32>,
    } else {
    }
    %c0 = arith.constant 0 : index
    %c0_1 = arith.constant 0 : index
    %3 = vector.load %arg7[%c0, %c0_1] : memref<16x256xf32, #tpu.memory_space<vmem>>, vector<16x256xf32>
    %c0_2 = arith.constant 0 : index
    %c0_3 = arith.constant 0 : index
    %4 = vector.load %arg3[%c0_2, %c0_3] : memref<16x128xbf16, #tpu.memory_space<vmem>>, vector<16x128xbf16>
    %c0_4 = arith.constant 0 : index
    %c0_5 = arith.constant 0 : index
    %5 = vector.load %arg4[%c0_4, %c0_5] : memref<128x256xbf16, #tpu.memory_space<vmem>>, vector<128x256xbf16>
    %cst = arith.constant dense<0.000000e+00> : vector<16x256xf32>
    %6 = tpu.matmul %4, %5, %cst {dimension_numbers = #tpu.dot_dimension_numbers<[1], [0], [0], [1], [0, 0, 1, 1], [], []>} : vector<16x128xbf16>, vector<128x256xbf16>, vector<16x256xf32> -> vector<16x256xf32>
    %7 = arith.addf %3, %6 : vector<16x256xf32>
    %c0_6 = arith.constant 0 : index
    %c0_7 = arith.constant 0 : index
    %8 = vector.load %arg7[%c0_6, %c0_7] : memref<16x256xf32, #tpu.memory_space<vmem>>, vector<16x256xf32>
    tpu.vector_store %arg7[%c0_6, %c0_7], %7 {strides = array<i32>} : memref<16x256xf32, #tpu.memory_space<vmem>>, vector<16x256xf32>,
    %c0_i32_8 = arith.constant 0 : i32
    %9 = arith.cmpi eq, %arg2, %c0_i32_8 : i32
    %10 = arith.extui %9 : i1 to i32
    %c0_i32_9 = arith.constant 0 : i32
    %11 = arith.cmpi ne, %10, %c0_i32_9 : i32
    scf.if %11 {
      %c0_10 = arith.constant 0 : index
      %c0_11 = arith.constant 0 : index
      %12 = vector.load %arg7[%c0_10, %c0_11] : memref<16x256xf32, #tpu.memory_space<vmem>>, vector<16x256xf32>
      %c0_12 = arith.constant 0 : index
      %c0_13 = arith.constant 0 : index
      %13 = vector.load %arg5[%c0_12, %c0_13] : memref<1x256xf32, #tpu.memory_space<vmem>>, vector<1x256xf32>
      %14 = vector.broadcast %13 : vector<1x256xf32> to vector<16x256xf32>
      %15 = arith.addf %12, %14 : vector<16x256xf32>
      %c0_14 = arith.constant 0 : index
      %c0_15 = arith.constant 0 : index
      %16 = vector.load %arg6[%c0_14, %c0_15] : memref<16x256xf32, #tpu.memory_space<vmem>>, vector<16x256xf32>
      tpu.vector_store %arg6[%c0_14, %c0_15], %15 {strides = array<i32>} : memref<16x256xf32, #tpu.memory_space<vmem>>, vector<16x256xf32>,
    } else {
    }
    return
  }
  func.func @transform_0(%arg0: i32, %arg1: i32, %arg2: i32) -> (i32, i32) {
    %c0_i32 = arith.constant 0 : i32
    return %arg0, %arg2 : i32, i32
  }
  func.func @transform_1(%arg0: i32, %arg1: i32, %arg2: i32) -> (i32, i32) {
    %c0_i32 = arith.constant 0 : i32
    return %arg2, %arg1 : i32, i32
  }
  func.func @transform_2(%arg0: i32, %arg1: i32, %arg2: i32) -> (i32, i32) {
    %c0_i32 = arith.constant 0 : i32
    %c0_i32_0 = arith.constant 0 : i32
    return %c0_i32, %arg1 : i32, i32
  }
  func.func @transform_3(%arg0: i32, %arg1: i32, %arg2: i32) -> (i32, i32) {
    %c0_i32 = arith.constant 0 : i32
    return %arg0, %arg1 : i32, i32
  }
}

</mosaic_0001>

<bundles_post_ra>
// kernel: seq2seq_transformer_forward.20
= control target key start
LH: loop header
LB: loop body
LE: loop exit
PB: predicated region body
PF: predicated region fallthrough
CT: control target
= control target key end

     0   :  { %v123_v0 = vmov 0.0   ;;  %vm124_vm0 = vmmov 0   ;;  %vm38_vm1 = vcmask 130048   ;;  %s160_s1 = inlined_call_operand.vmem [shape: bf16[16,128], index: 1, kind: input, shape index: {}]   ;;  %s161_s0 = inlined_call_operand.vmem [shape: bf16[16,16], index: 0, kind: input, shape index: {}]   ;;  %s162_s2 = inlined_call_operand.vmem [shape: f32[1,128], index: 2, kind: input, shape index: {}]   ;;  %s163_s3 = inlined_call_operand.vmem [shape: f32[16,128], index: 3, kind: output, shape index: {}]  }
   0x1   :  { %113 = vmatprep.subr.bf16.mxu0 %v123_v0  ;;  %v121_v1 = vld [vmem:[%s160_s1] sm:$0xff]   ;;  %115 = vmatprep.mubr.msk.bf16.mxu0 %vm124_vm0, %v123_v0 }
   0x2   :  { %v122_v2 = vld [vmem:[%s161_s0] sm:$0xff]   ;;  %114 = vmatpush3.bf16.msra.mxu0 %v121_v1 }
   0x3   :  { %v110_v3 = vld [vmem:[%s162_s2] ss:$0 sm:$0xff] }
   0x5   :  { %116 = vmatmul.mubr.msk.bf16.vlgmr.msra.gmra.mrb[0].mxu0 %vm38_vm1, %v122_v2 }
  0xd8   :  { %v76_v4 = vpop.f32.mrb[0].mxu0 }
  0xd9   :  { %v99_v5 = vadd.f32 %v110_v3, %v76_v4  ;;  %v117_v6 = vpop.f32.mrb[1].mxu0 }
  0xda   :  { %v79_v7 = vpop.f32.mrb[2].mxu0 }
  0xdb   :  { %101 = vst [vmem:[%s163_s3] sm:$0xff] %v99_v5  ;;  %v100_v8 = vadd.f32 %v110_v3, %v79_v7  ;;  %v118_v9 = vpop.f32.mrb[3].mxu0 }
  0xdd   :  { %102 = vst [vmem:[%s163_s3 + $0x8] sm:$0xff] %v100_v8 }

// kernel: seq2seq_transformer_forward.21
= control target key start
LH: loop header
LB: loop body
LE: loop exit
PB: predicated region body
PF: predicated region fallthrough
CT: control target
= control target key end

     0   :  { %v453_v0 = vmov 0.0   ;;  %vm454_vm0 = vmmov 0   ;;  %v455_v3 = vmov 0   ;;  %v306_v27 = vlaneseq  ;;  %s566_s1 = inlined_call_operand.vmem [shape: bf16[128,384], index: 1, kind: input, shape index: {}]   ;;  %s567_s0 = inlined_call_operand.vmem [shape: bf16[16,128], index: 0, kind: input, shape index: {}]   ;;  %s568_s2 = inlined_call_operand.vmem [shape: f32[1,384], index: 2, kind: input, shape index: {}]   ;;  %s569_s3 = inlined_call_operand.vmem [shape: bf16[16,384], index: 3, kind: output, shape index: {}]  }
   0x1   :  { %397 = vmatprep.subr.bf16.mxu1 %v453_v0  ;;  %v420_v1 = vld [vmem:[%s566_s1 + $0x4] ss:$12 sps:$4 sm:$0xff]   ;;  %413 = vmatprep.mubr.msk.bf16.mxu1 %vm454_vm0, %v453_v0  ;;  %v422_v2 = vld [vmem:[%s566_s1 + $0x8] ss:$12 sps:$4 sm:$0xff]   ;;  %v423_v4 = vld [vmem:[%s566_s1] ss:$12 sps:$4 sm:$0xff]  }
   0x2   :  { %231 = vmatprep.mubr.bf16.mxu0 %v455_v3  ;;  %199 = vmatprep.subr.bf16.mxu0 %v420_v1  ;;  %v424_v5 = vld [vmem:[%s566_s1 + $0x1c] ss:$12 sps:$4 sm:$0xff]   ;;  %v426_v6 = vld [vmem:[%s566_s1 + $0x20] ss:$12 sps:$4 sm:$0xff]   ;;  %v427_v7 = vld [vmem:[%s566_s1 + $0x18] ss:$12 sps:$4 sm:$0xff]  }
   0x3   :  { %398 = vmatpush3.bf16.msra.mxu1 %v422_v2  ;;  %200 = vmatpush1.bf16.msra.mxu0 %v423_v4  ;;  %v428_v8 = vld [vmem:[%s566_s1 + $0x34] ss:$12 sps:$4 sm:$0xff]   ;;  %v430_v9 = vld [vmem:[%s566_s1 + $0x38] ss:$12 sps:$4 sm:$0xff]   ;;  %v431_v10 = vld [vmem:[%s566_s1 + $0x30] ss:$12 sps:$4 sm:$0xff]  }
   0x4   :  { %399 = vmatprep.subr.bf16.mxu1 %v453_v0  ;;  %201 = vmatprep.subr.bf16.mxu0 %v424_v5  ;;  %v432_v11 = vld [vmem:[%s566_s1 + $0x4c] ss:$12 sps:$4 sm:$0xff]   ;;  %v434_v12 = vld [vmem:[%s566_s1 + $0x50] ss:$12 sps:$4 sm:$0xff]   ;;  %v435_v13 = vld [vmem:[%s566_s1 + $0x48] ss:$12 sps:$4 sm:$0xff]  }
   0x5   :  { %v436_v14 = vld [vmem:[%s566_s1 + $0x64] ss:$12 sps:$4 sm:$0xff]   ;;  %v438_v15 = vld [vmem:[%s566_s1 + $0x68] ss:$12 sps:$4 sm:$0xff]   ;;  %v439_v16 = vld [vmem:[%s566_s1 + $0x60] ss:$12 sps:$4 sm:$0xff]  }
   0x6   :  { %v440_v17 = vld [vmem:[%s566_s1 + $0x7c] ss:$12 sps:$4 sm:$0xff]   ;;  %v442_v18 = vld [vmem:[%s566_s1 + $0x80] ss:$12 sps:$4 sm:$0xff]   ;;  %v443_v19 = vld [vmem:[%s566_s1 + $0x78] ss:$12 sps:$4 sm:$0xff]  }
   0x7   :  { %400 = vmatpush3.bf16.msra.mxu1 %v426_v6  ;;  %202 = vmatpush1.bf16.msra.mxu0 %v427_v7  ;;  %v444_v20 = vld [vmem:[%s566_s1 + $0x94] ss:$12 sps:$4 sm:$0xff]   ;;  %v446_v21 = vld [vmem:[%s566_s1 + $0x98] ss:$12 sps:$4 sm:$0xff]   ;;  %v447_v22 = vld [vmem:[%s566_s1 + $0x90] ss:$12 sps:$4 sm:$0xff]  }
   0x8   :  { %401 = vmatprep.subr.bf16.mxu1 %v453_v0  ;;  %203 = vmatprep.subr.bf16.mxu0 %v428_v8  ;;  %v448_v23 = vld [vmem:[%s566_s1 + $0xac] ss:$12 sps:$4 sm:$0xff]   ;;  %v450_v24 = vld [vmem:[%s566_s1 + $0xb0] ss:$12 sps:$4 sm:$0xff]   ;;  %v451_v25 = vld [vmem:[%s566_s1 + $0xa8] ss:$12 sps:$4 sm:$0xff]  }
   0x9   :  { %v452_v26 = vld [vmem:[%s567_s0] sm:$0xff]   ;;  %v307_v28 = vshrl.u32 %v306_v27, 7 }
   0xa   :  { %v304_v30 = vld [vmem:[%s568_s2] sm:$0x7] }
   0xb   :  { %402 = vmatpush3.bf16.msra.mxu1 %v430_v9  ;;  %204 = vmatpush1.bf16.msra.mxu0 %v431_v10  ;;  %v316_v29 = vsub.s32 2, %v307_v28  ;;  %v308_v31 = vsub.s32 0, %v307_v28  ;;  %v312_v32 = vsub.s32 1, %v307_v28 }
   0xc   :  { %403 = vmatprep.subr.bf16.mxu1 %v453_v0  ;;  %205 = vmatprep.subr.bf16.mxu0 %v432_v11 }
   0xd   :  { %v317_v33 = vrot.slane %v304_v30, %v316_v29  ;;  %v309_v34 = vrot.slane %v304_v30, %v308_v31  ;;  %v313_v35 = vrot.slane %v304_v30, %v312_v32 }
   0xf   :  { %404 = vmatpush3.bf16.msra.mxu1 %v434_v12  ;;  %206 = vmatpush1.bf16.msra.mxu0 %v435_v13 }
  0x10   :  { %405 = vmatprep.subr.bf16.mxu1 %v453_v0  ;;  %207 = vmatprep.subr.bf16.mxu0 %v436_v14 }
  0x13   :  { %406 = vmatpush3.bf16.msra.mxu1 %v438_v15  ;;  %208 = vmatpush1.bf16.msra.mxu0 %v439_v16 }
  0x14   :  { %407 = vmatprep.subr.bf16.mxu1 %v453_v0  ;;  %209 = vmatprep.subr.bf16.mxu0 %v440_v17 }
  0x17   :  { %408 = vmatpush3.bf16.msra.mxu1 %v442_v18  ;;  %210 = vmatpush1.bf16.msra.mxu0 %v443_v19 }
  0x18   :  { %409 = vmatprep.subr.bf16.mxu1 %v453_v0  ;;  %211 = vmatprep.subr.bf16.mxu0 %v444_v20 }
  0x1b   :  { %410 = vmatpush3.bf16.msra.mxu1 %v446_v21  ;;  %212 = vmatpush1.bf16.msra.mxu0 %v447_v22 }
  0x1c   :  { %411 = vmatprep.subr.bf16.mxu1 %v453_v0  ;;  %213 = vmatprep.subr.bf16.mxu0 %v448_v23 }
  0x1f   :  { %412 = vmatpush3.bf16.msra.mxu1 %v450_v24  ;;  %214 = vmatpush1.bf16.msra.mxu0 %v451_v25 }
  0x22   :  { %414 = vmatmul.mubr.bf16.vlgmr.msra.gmra.mrb[0].mxu1 %v452_v26  ;;  %232 = vmatmul.mubr.bf16.vlgmr.msra.gmra.mrb[0].mxu0 %v452_v26 }
  0xf5   :  { %v276_v36 = vpop.f32.mrb[0].mxu1  ;;  %v233_v38 = vpop.f32.mrb[0].mxu0 }
  0xf6   :  { %v323_v37 = vadd.f32 %v317_v33, %v276_v36  ;;  %v415_v39 = vpop.f32.mrb[1].mxu1  ;;  %v321_v40 = vadd.f32 %v309_v34, %v233_v38  ;;  %v235_v41 = vpop.f32.mrb[1].mxu0 }
  0xf7   :  { %v279_v42 = vpop.f32.mrb[2].mxu1  ;;  %v322_v44 = vadd.f32 %v313_v35, %v235_v41  ;;  %v237_v46 = vpop.f32.mrb[2].mxu0 }
  0xf8   :  { %v385_v43 = vpack.c.bf16 %v323_v37, %v323_v37  ;;  %v326_v45 = vadd.f32 %v317_v33, %v279_v42  ;;  %v416_v47 = vpop.f32.mrb[3].mxu1  ;;  %v324_v48 = vadd.f32 %v309_v34, %v237_v46  ;;  %v239_v49 = vpop.f32.mrb[3].mxu0 }
  0xf9   :  { %v384_v50 = vpack.c.bf16 %v322_v44, %v321_v40  ;;  %v325_v52 = vadd.f32 %v313_v35, %v239_v49 }
  0xfa   :  { %348 = vst [vmem:[%s569_s3 + $0x8] sm:$0xf] %v385_v43  ;;  %v387_v51 = vpack.c.bf16 %v326_v45, %v326_v45 }
  0xfb   :  { %347 = vst [vmem:[%s569_s3] sm:$0xff] %v384_v50  ;;  %v386_v53 = vpack.c.bf16 %v325_v52, %v324_v48 }
  0xfc   :  { %350 = vst [vmem:[%s569_s3 + $0x14] sm:$0xf] %v387_v51 }
  0xfd   :  { %349 = vst [vmem:[%s569_s3 + $0xc] sm:$0xff] %v386_v53 }

// kernel: seq2seq_transformer_forward.23
= control target key start
LH: loop header
LB: loop body
LE: loop exit
PB: predicated region body
PF: predicated region fallthrough
CT: control target
= control target key end

     0   :  { %v565_v1 = vmov 0   ;;  %v53_v34 = vlaneseq  ;;  %s723_s1 = inlined_call_operand.vmem [shape: bf16[128,256], index: 1, kind: input, shape index: {}]   ;;  %s724_s0 = inlined_call_operand.vmem [shape: bf16[16,128], index: 0, kind: input, shape index: {}]   ;;  %s725_s3 = inlined_call_operand.vmem [shape: bf16[256,128], index: 3, kind: input, shape index: {}]   ;;  %s726_s2 = inlined_call_operand.vmem [shape: f32[1,256], index: 2, kind: input, shape index: {}]   ;;  %s727_s4 = inlined_call_operand.vmem [shape: f32[1,128], index: 4, kind: input, shape index: {}]   ;;  %s728_s5 = inlined_call_operand.vmem [shape: f32[1,128], index: 5, kind: input, shape index: {}]   ;;  %s729_s6 = inlined_call_operand.vmem [shape: f32[1,128], index: 6, kind: input, shape index: {}]   ;;  %s730_s7 = inlined_call_operand.vmem [shape: bf16[16,128], index: 7, kind: output, shape index: {}]  }
   0x1   :  { %v520_v0 = vld [vmem:[%s723_s1 + $0x4] ss:$8 sps:$4 sm:$0xff]   ;;  %181 = vmatprep.mubr.bf16.mxu0 %v565_v1  ;;  %v522_v2 = vld [vmem:[%s723_s1] ss:$8 sps:$4 sm:$0xff]   ;;  %v523_v3 = vld [vmem:[%s723_s1 + $0x14] ss:$8 sps:$4 sm:$0xff]  }
   0x2   :  { %149 = vmatprep.subr.bf16.mxu0 %v520_v0  ;;  %v525_v4 = vld [vmem:[%s723_s1 + $0x10] ss:$8 sps:$4 sm:$0xff]   ;;  %v526_v5 = vld [vmem:[%s723_s1 + $0x24] ss:$8 sps:$4 sm:$0xff]   ;;  %v528_v6 = vld [vmem:[%s723_s1 + $0x20] ss:$8 sps:$4 sm:$0xff]  }
   0x3   :  { %150 = vmatpush1.bf16.msra.mxu0 %v522_v2  ;;  %v529_v7 = vld [vmem:[%s723_s1 + $0x34] ss:$8 sps:$4 sm:$0xff]   ;;  %v531_v8 = vld [vmem:[%s723_s1 + $0x30] ss:$8 sps:$4 sm:$0xff]   ;;  %v532_v9 = vld [vmem:[%s723_s1 + $0x44] ss:$8 sps:$4 sm:$0xff]  }
   0x4   :  { %151 = vmatprep.subr.bf16.mxu0 %v523_v3  ;;  %v545_v10 = vld [vmem:[%s725_s3 + $0x40] sm:$0xff]   ;;  %v535_v13 = vld [vmem:[%s723_s1 + $0x54] ss:$8 sps:$4 sm:$0xff]   ;;  %v547_v14 = vld [vmem:[%s725_s3 + $0x48] sm:$0xff]   ;;  %v54_v35 = vshrl.u32 %v53_v34, 7 }
   0x5   :  { %v534_v11 = vld [vmem:[%s723_s1 + $0x40] ss:$8 sps:$4 sm:$0xff]   ;;  %497 = vmatprep.subr.bf16.mxu1 %v545_v10  ;;  %v549_v16 = vld [vmem:[%s725_s3 + $0x50] sm:$0xff]   ;;  %v538_v18 = vld [vmem:[%s723_s1 + $0x64] ss:$8 sps:$4 sm:$0xff]  }
   0x6   :  { %v546_v12 = vld [vmem:[%s725_s3] sm:$0xff]   ;;  %v548_v15 = vld [vmem:[%s725_s3 + $0x8] sm:$0xff]   ;;  %v537_v17 = vld [vmem:[%s723_s1 + $0x50] ss:$8 sps:$4 sm:$0xff]   ;;  %v55_v36 = vsub.s32 0, %v54_v35  ;;  %v59_v38 = vsub.s32 1, %v54_v35 }
   0x7   :  { %152 = vmatpush1.bf16.msra.mxu0 %v525_v4  ;;  %498 = vmatpush3.bf16.msra.mxu1 %v546_v12  ;;  %v550_v19 = vld [vmem:[%s725_s3 + $0x10] sm:$0xff]   ;;  %v551_v20 = vld [vmem:[%s725_s3 + $0x58] sm:$0xff]   ;;  %v540_v21 = vld [vmem:[%s723_s1 + $0x60] ss:$8 sps:$4 sm:$0xff]  }
   0x8   :  { %153 = vmatprep.subr.bf16.mxu0 %v526_v5  ;;  %499 = vmatprep.subr.bf16.mxu1 %v547_v14  ;;  %v541_v22 = vld [vmem:[%s723_s1 + $0x74] ss:$8 sps:$4 sm:$0xff]   ;;  %v553_v24 = vld [vmem:[%s725_s3 + $0x60] sm:$0xff]   ;;  %v543_v25 = vld [vmem:[%s723_s1 + $0x70] ss:$8 sps:$4 sm:$0xff]  }
   0x9   :  { %v552_v23 = vld [vmem:[%s725_s3 + $0x18] sm:$0xff]   ;;  %v554_v26 = vld [vmem:[%s725_s3 + $0x20] sm:$0xff]   ;;  %v555_v27 = vld [vmem:[%s725_s3 + $0x68] sm:$0xff]  }
   0xa   :  { %v544_v28 = vld [vmem:[%s724_s0] sm:$0xff]   ;;  %v556_v29 = vld [vmem:[%s725_s3 + $0x28] sm:$0xff]   ;;  %v557_v30 = vld [vmem:[%s725_s3 + $0x70] sm:$0xff]  }
   0xb   :  { %154 = vmatpush1.bf16.msra.mxu0 %v528_v6  ;;  %500 = vmatpush3.bf16.msra.mxu1 %v548_v15  ;;  %v558_v31 = vld [vmem:[%s725_s3 + $0x30] sm:$0xff]   ;;  %v559_v32 = vld [vmem:[%s725_s3 + $0x78] sm:$0xff]   ;;  %v51_v37 = vld [vmem:[%s726_s2] sm:$0x3] }
   0xc   :  { %155 = vmatprep.subr.bf16.mxu0 %v529_v7  ;;  %501 = vmatprep.subr.bf16.mxu1 %v549_v16  ;;  %v560_v33 = vld [vmem:[%s725_s3 + $0x38] sm:$0xff]   ;;  %v56_v39 = vrot.slane %v51_v37, %v55_v36  ;;  %v60_v40 = vrot.slane %v51_v37, %v59_v38  ;;  %v489_v55 = vld [vmem:[%s724_s0] sm:$0xff]  }
   0xd   :  { %v481_v58 = vld [vmem:[%s727_s4] ss:$0 sm:$0xff]  ;;  %v490_v61 = vunpack.c.l.bf16 %v489_v55  ;;  %v491_v3 = vunpack.c.h.bf16 %v489_v55 }
   0xf   :  { %156 = vmatpush1.bf16.msra.mxu0 %v531_v8  ;;  %502 = vmatpush3.bf16.msra.mxu1 %v550_v19 }
  0x10   :  { %157 = vmatprep.subr.bf16.mxu0 %v532_v9  ;;  %503 = vmatprep.subr.bf16.mxu1 %v551_v20 }
  0x13   :  { %158 = vmatpush1.bf16.msra.mxu0 %v534_v11  ;;  %504 = vmatpush3.bf16.msra.mxu1 %v552_v23 }
  0x14   :  { %159 = vmatprep.subr.bf16.mxu0 %v535_v13  ;;  %505 = vmatprep.subr.bf16.mxu1 %v553_v24 }
  0x17   :  { %160 = vmatpush1.bf16.msra.mxu0 %v537_v17  ;;  %506 = vmatpush3.bf16.msra.mxu1 %v554_v26 }
  0x18   :  { %161 = vmatprep.subr.bf16.mxu0 %v538_v18  ;;  %507 = vmatprep.subr.bf16.mxu1 %v555_v27 }
  0x1b   :  { %162 = vmatpush1.bf16.msra.mxu0 %v540_v21  ;;  %508 = vmatpush3.bf16.msra.mxu1 %v556_v29  ;;  %v482_v21 = vld [vmem:[%s728_s5] ss:$0 sm:$0xff] }
  0x1c   :  { %163 = vmatprep.subr.bf16.mxu0 %v541_v22  ;;  %509 = vmatprep.subr.bf16.mxu1 %v557_v30 }
  0x1f   :  { %164 = vmatpush1.bf16.msra.mxu0 %v543_v25  ;;  %510 = vmatpush3.bf16.msra.mxu1 %v558_v31  ;;  %v483_v25 = vld [vmem:[%s729_s6] ss:$0 sm:$0xff] }
  0x20   :  { %511 = vmatprep.subr.bf16.mxu1 %v559_v32 }
  0x22   :  { %182 = vmatmul.mubr.bf16.vlgmr.msra.gmra.mrb[0].mxu0 %v544_v28 }
  0x23   :  { %512 = vmatpush3.bf16.msra.mxu1 %v560_v33 }
  0xf5   :  { %v183_v41 = vpop.f32.mrb[0].mxu0 }
  0xf6   :  { %v184_v42 = vadd.f32 %v183_v41, %v56_v39  ;;  %v185_v43 = vpop.f32.mrb[1].mxu0 }
  0xf7   :  { %v186_v44 = vadd.f32 %v185_v43, %v60_v40  ;;  %v187_v45 = vpop.f32.mrb[2].mxu0 }
  0xf8   :  { %v188_v46 = vadd.f32 %v187_v45, %v56_v39  ;;  %v189_v47 = vpop.f32.mrb[3].mxu0  ;;  %v192_v49 = vmax.f32 %v184_v42, 0.0 }
  0xf9   :  { %v190_v48 = vadd.f32 %v189_v47, %v60_v40  ;;  %v193_v51 = vmax.f32 %v186_v44, 0.0 }
  0xfa   :  { %v194_v50 = vmax.f32 %v188_v46, 0.0 }
  0xfb   :  { %v195_v52 = vmax.f32 %v190_v48, 0.0 }
  0xfc   :  { %v196_v53 = vpack.c.bf16 %v194_v50, %v192_v49 }
  0xfd   :  { %v197_v54 = vpack.c.bf16 %v195_v52, %v193_v51 }
  0xff   :  { %360 = vmatprep.mubr.bf16.mxu1 %v197_v54 }
 0x100   :  { %361 = vmatmul.mubr.bf16.vlgmr.msra.gmra.mrb[0].mxu1 %v196_v53 }
 0x1d3   :  { %v513_v56 = vpop.f32.mrb[0].mxu1 }
 0x1d4   :  { %v514_v57 = vpop.f32.mrb[1].mxu1 }
 0x1d5   :  { %v515_v59 = vadd.f32 %v514_v57, %v513_v56  ;;  %v516_v60 = vpop.f32.mrb[2].mxu1 }
 0x1d6   :  { %v517_v62 = vpop.f32.mrb[3].mxu1 }
 0x1d7   :  { %v385_v63 = vadd.f32 %v515_v59, %v481_v58  ;;  %v518_v0 = vadd.f32 %v517_v62, %v516_v60 }
 0x1d9   :  { %v386_v1 = vadd.f32 %v518_v0, %v481_v58  ;;  %v391_v2 = vadd.f32 %v490_v61, %v385_v63 }
 0x1db   :  { %393 = vadd.xlane.f32.xlu0 %v391_v2  ;;  %v392_v4 = vadd.f32 %v491_v3, %v386_v1 }
 0x1df   :  { %395 = vadd.xlane.f32.xlu0 %v392_v4 }
 0x268   :  { %v394_v5 = vpop.xlane.xlu0 %393 }
 0x269   :  { %v398_v6 = vmul.f32 0.0078125, %v394_v5 }
 0x26b   :  { %v400_v7 = vsub.f32 %v391_v2, %v398_v6 }
 0x26c   :  { %v396_v8 = vpop.xlane.xlu0 %395 }
 0x26d   :  { %v399_v9 = vmul.f32 0.0078125, %v396_v8  ;;  %v402_v10 = vmul.f32 %v400_v7, %v400_v7 }
 0x26f   :  { %v401_v11 = vsub.f32 %v392_v4, %v399_v9  ;;  %404 = vadd.xlane.f32.xlu1 %v402_v10 }
 0x271   :  { %v403_v12 = vmul.f32 %v401_v11, %v401_v11 }
 0x273   :  { %406 = vadd.xlane.f32.xlu1 %v403_v12 }
 0x2fc   :  { %v405_v13 = vpop.xlane.xlu1 %404 }
 0x2fd   :  { %v408_v14 = vmul.f32 0.0078125, %v405_v13 }
 0x2ff   :  { %v410_v15 = vadd.f32 1e-05, %v408_v14 }
 0x300   :  { %v407_v16 = vpop.xlane.xlu1 %406 }
 0x301   :  { %561 = vrsqrt.f32 %v410_v15  ;;  %v409_v17 = vmul.f32 0.0078125, %v407_v16 }
 0x303   :  { %v411_v18 = vadd.f32 1e-05, %v409_v17 }
 0x305   :  { %563 = vrsqrt.f32 %v411_v18 }
 0x30b   :  { %v562_v19 = vpop.eup %561 }
 0x30c   :  { %v414_v20 = vmul.f32 %v562_v19, %v400_v7 }
 0x30e   :  { %v423_v23 = vmul.f32 %v482_v21, %v414_v20 }
 0x30f   :  { %v564_v22 = vpop.eup %563 }
 0x310   :  { %v415_v24 = vmul.f32 %v564_v22, %v401_v11  ;;  %v432_v27 = vadd.f32 %v483_v25, %v423_v23 }
 0x312   :  { %v424_v26 = vmul.f32 %v482_v21, %v415_v24 }
 0x314   :  { %v433_v28 = vadd.f32 %v483_v25, %v424_v26 }
 0x316   :  { %v495_v29 = vpack.c.bf16 %v433_v28, %v432_v27 }
 0x318   :  { %496 = vst [vmem:[%s730_s7] sm:$0xff] %v495_v29  }

// kernel: seq2seq_transformer_forward.22
= control target key start
LH: loop header
LB: loop body
LE: loop exit
PB: predicated region body
PF: predicated region fallthrough
CT: control target
= control target key end

     0   :  { %s1229_s24 = smov 0   ;;  %s1379_s0 = inlined_call_operand.vmem [shape: bf16[2,8,384], index: 0, kind: input, shape index: {}]   ;;  %s1380_s1 = inlined_call_operand.vmem [shape: f32[2,1,8], index: 1, kind: input, shape index: {}]   ;;  %s1381_s2 = inlined_call_operand.vmem [shape: bf16[128,128], index: 2, kind: input, shape index: {}]   ;;  %s1382_s3 = inlined_call_operand.vmem [shape: f32[1,128], index: 3, kind: input, shape index: {}]   ;;  %s1383_s4 = inlined_call_operand.vmem [shape: bf16[2,8,128], index: 4, kind: input, shape index: {}]   ;;  %s1384_s5 = inlined_call_operand.vmem [shape: f32[1,128], index: 5, kind: input, shape index: {}]   ;;  %s1385_s6 = inlined_call_operand.vmem [shape: f32[1,128], index: 6, kind: input, shape index: {}]   ;;  %s1386_s7 = inlined_call_operand.vmem [shape: bf16[2,8,128], index: 7, kind: output, shape index: {}]  }
   0x1 LB: > { %s1007_s25 = sadd.s32 4294967295, %s1182_s24   ;;  %p1011_p0 = scmp.ge.s32.totalorder %s1182_s24, 1  ;;  %s1182_s24 = sphi %s1229_s24, %s17_s24  }
   0x2   : > { %p254_p1 = scmp.lt.s32.totalorder %s1182_s24, 3 }
   0x4   : > { %p255_p2 = pnand %p1011_p0, %p254_p1 }
   0x5   : > { %p292_p3 = scmp.lt.s32.totalorder (!%p255_p2), %s1007_s25, 1  ;;  %v1184_v0 = vmov (!%p255_p2), 0.0   ;;  %vm1185_vm0 = vmmov (!%p255_p2), 0   ;;  %vm315_vm1 = vcmask (!%p255_p2), 261120   ;;  %vm370_vm2 = vcmask (!%p255_p2), 64512   ;;  %s1186_s10 = smov (!%p255_p2), 96  }
   0x6   : > { %258 = sbr.rel (%p255_p2) target bundleno = 1984 (0x7c0), region = 48  ;;  %1065 = vmatprep.subr.bf16.mxu0 (!%p255_p2), %v1184_v0  ;;  %1067 = vmatprep.mubr.msk.bf16.mxu0 (!%p255_p2), %vm1185_vm0, %v1184_v0  ;;  %s1187_s11 = smov (!%p255_p2), 64   ;;  %vm386_vm3 = vcmask (!%p255_p2), 1043456   ;;  %vm784_vm4 = vcmask (!%p255_p2), 523264   ;;  %vm786_vm5 = vcmask (!%p255_p2), 785408  }
   0x7   : > { %1089 = vmatprep.subr.bf16.mxu1 (!%p255_p2), %v1184_v0  ;;  %1091 = vmatprep.mubr.msk.bf16.mxu1 (!%p255_p2), %vm1185_vm0, %v1184_v0  ;;  %s1188_s12 = smov (!%p255_p2), 32  }
   0xd   : > { %s1388_s25 = smov (!%p292_p3, %s1007_s25), 1 }
   0xe   : > { %s1133_s26 = smul.u32 12, %s1388_s25  ;;  %s299_s9 = scalar_lea.vmem %s1380_s1, %s1388_s25 }
   0xf   : > { %v1261_v5 = vld [vmem:[%s299_s9] ss:$0 sm:$0xff]  ;;  %s1013_s8 = sshll.u32 %s1388_s25, 2 }
  0x10   : > { %s1249_s29 = scalar_lea.vmem %s1379_s0, %s1133_s26  ;;  %s307_s19 = scalar_lea.vmem %s1386_s7, %s1013_s8 }
  0x11   : > { %v309_v1 = vld [vmem:[%s1249_s29] sm:$0xff]  ;;  %v1272_v18 = vld [vmem:[%s1249_s29 + $0x8] sm:$0xf] }
  0x12   : > { %v1015_v2 = vcombine.high %v309_v1, %v309_v1  ;;  %v1019_v12 = vcombine.low %v309_v1, %v309_v1  ;;  %v388_v19 = vsel %vm386_vm3, %v1272_v18, 0 }
  0x14   : > { %v320_v3 = vsel %vm315_vm1, %v1015_v2, 0  ;;  %434 = vrot.lane.b32.xlu1 %v1015_v2, %s1186_s10 }
  0x15   : > { %1066 = vmatpush3.bf16.xpose.msra.mxu0 %v320_v3 }
  0x16   : > { %1071 = vmatprep.subr.bf16.mxu0 %v1184_v0 }
  0x18   : > { %432 = vrot.lane.b32.xlu1 %v1019_v12, %s1186_s10 }
  0x1c   : > { %1068 = vmatmul.mubr.msk.bf16.vlgmr.msra.gmra.mrb[0].mxu0 %vm315_vm1, %v309_v1  ;;  %547 = vrot.lane.b32.xlu1 %v1019_v12, %s1187_s11 }
  0x1d   : > { %1073 = vmatprep.mubr.msk.bf16.mxu0 %vm1185_vm0, %v1184_v0  ;;  %1072 = vmatpush3.bf16.msra.mxu0 %v388_v19 }
  0x1e   : > { %1077 = vmatprep.subr.bf16.mxu0 %v1184_v0 }
  0x20   : > { %661 = vrot.lane.b32.xlu1 %v1015_v2, %s1188_s12 }
  0x24   : > { %659 = vrot.lane.b32.xlu1 %v1019_v12, %s1188_s12 }
  0x86   : > { %v435_v20 = vpop.permute.xlu1 %434 }
  0x87   : > { %v440_v31 = vsel %vm315_vm1, %v435_v20, 0 }
  0x8a   : > { %v433_v21 = vpop.permute.xlu1 %432 }
  0x8e   : > { %v548_v23 = vpop.permute.xlu1 %547 }
  0x92   : > { %v662_v26 = vpop.permute.xlu1 %661 }
  0x93   : > { %v667_v28 = vsel %vm315_vm1, %v662_v26, 0 }
  0x96   : > { %v660_v32 = vpop.permute.xlu1 %659 }
  0xef   : > { %v356_v4 = vpop.f32.mrb[0].mxu0 }
  0xf0   : > { %v362_v6 = vmul.f32 0.17677669, %v356_v4  ;;  %v1069_v7 = vpop.f32.mrb[1].mxu0 }
  0xf1   : > { %v359_v8 = vpop.f32.mrb[2].mxu0 }
  0xf2   : > { %v1070_v9 = vpop.f32.mrb[3].mxu0  ;;  %v369_v10 = vadd.f32 %v1261_v5, %v362_v6 }
  0xf4   : > { %v371_v11 = vsel %vm370_vm2, %v369_v10, -inf }
  0xf5   : > { %372 = vmax.xlane.f32.xlu0 %v371_v11 }
 0x182   : > { %v373_v13 = vpop.xlane.xlu0 %372 }
 0x183   : > { %v374_v14 = vsub.f32 %v369_v10, %v373_v13  ;;  %v1021_v10 = vcombine.low %v1272_v18, %v1272_v18 }
 0x185   : > { %v375_v15 = vmul.f32 1.442695, %v374_v14 }
 0x187   : > { %1158 = vpow2.f32 %v375_v15 }
 0x191   : > { %v1159_v16 = vpop.eup %1158 }
 0x192   : > { %v377_v17 = vsel %vm370_vm2, %v1159_v16, 0.0 }
 0x193   : > { %378 = vadd.xlane.f32.xlu0 %v377_v17 }
 0x1a9   : > { %549 = vrot.lane.b32.xlu0 %v1015_v2, %s1187_s11 }
 0x220   : > { %v379_v22 = vpop.xlane.xlu0 %378 }
 0x221   : > { %1160 = vrcp.f32 %v379_v22 }
 0x224   : > { %v550_v24 = vpop.permute.xlu0 %549 }
 0x225   : > { %v555_v25 = vsel %vm315_vm1, %v550_v24, 0 }
 0x226   : > { %1090 = vmatpush3.bf16.xpose.msra.mxu1 %v555_v25 }
 0x227   : > { %1101 = vmatprep.subr.bf16.mxu1 %v1184_v0 }
 0x22b   : > { %v1161_v27 = vpop.eup %1160 }
 0x22c   : > { %v381_v29 = vmul.f32 %v1161_v27, %v1159_v16 }
 0x22d   : > { %1092 = vmatmul.mubr.msk.bf16.vlgmr.msra.gmra.mrb[0].mxu1 %vm315_vm1, %v548_v23 }
 0x22e   : > { %v382_v30 = vpack.c.bf16 %v381_v29, %v381_v29  ;;  %1102 = vmatpush3.bf16.xpose.msra.mxu1 %v667_v28  ;;  %1103 = vmatprep.mubr.msk.bf16.mxu1 %vm1185_vm0, %v1184_v0  ;;  %v1150_v29 = vld [vmem:[%s1381_s2] sm:$0xff]  }
 0x22f   : > { %1113 = vmatprep.subr.bf16.mxu1 %v1184_v0 }
 0x230   : > { %1074 = vmatmul.mubr.msk.bf16.vlgmr.msra.gmra.mrb[4].mxu0 %vm370_vm2, %v382_v30  ;;  %v1151_v30 = vld [vmem:[%s1381_s2 + $0x8] sm:$0xff]  }
 0x231   : > { %1078 = vmatpush3.bf16.xpose.msra.mxu0 %v440_v31  ;;  %1079 = vmatprep.mubr.msk.bf16.mxu0 %vm1185_vm0, %v1184_v0  ;;  %v1152_v31 = vld [vmem:[%s1381_s2 + $0x10] sm:$0xff]  }
 0x232   : > { %1083 = vmatprep.subr.bf16.mxu0 %v1184_v0 }
 0x235   : > { %1104 = vmatmul.mubr.msk.bf16.vlgmr.msra.gmra.mrb[4].mxu1 %vm315_vm1, %v660_v32  ;;  %v1153_v32 = vld [vmem:[%s1381_s2 + $0x18] sm:$0xff]  }
 0x236   : > { %1129 = vmatprep.mubr.msk.bf16.mxu1 %vm1185_vm0, %v1184_v0  ;;  %1114 = vmatpush3.bf16.msra.mxu1 %v1150_v29 }
 0x237   : > { %1115 = vmatprep.subr.bf16.mxu1 %v1184_v0 }
 0x238   : > { %1080 = vmatmul.mubr.msk.bf16.vlgmr.msra.gmra.mrb[8].mxu0 %vm315_vm1, %v433_v21 }
 0x239   : > { %1085 = vmatprep.mubr.msk.bf16.mxu0 %vm1185_vm0, %v1184_v0 }
 0x23a   : > { %1116 = vmatpush3.bf16.msra.mxu1 %v1151_v30 }
 0x23b   : > { %1117 = vmatprep.subr.bf16.mxu1 %v1184_v0 }
 0x23e   : > { %1118 = vmatpush3.bf16.msra.mxu1 %v1152_v31 }
 0x23f   : > { %1119 = vmatprep.subr.bf16.mxu1 %v1184_v0 }
 0x242   : > { %1120 = vmatpush3.bf16.msra.mxu1 %v1153_v32 }
 0x243   : > { %1121 = vmatprep.subr.bf16.mxu1 %v1184_v0 }
 0x300   : > { %v591_v33 = vpop.f32.mrb[0].mxu1 }
 0x301   : > { %v597_v34 = vmul.f32 0.17677669, %v591_v33  ;;  %v1093_v35 = vpop.f32.mrb[1].mxu1  ;;  %v1154_v33 = vld [vmem:[%s1381_s2 + $0x20] sm:$0xff]  }
 0x302   : > { %v594_v36 = vpop.f32.mrb[2].mxu1  ;;  %1122 = vmatpush3.bf16.msra.mxu1 %v1154_v33  ;;  %v1156_v35 = vld [vmem:[%s1381_s2 + $0x30] sm:$0xff]  }
 0x303   : > { %v1296_v37 = vpop.f32.mrb[4].mxu0  ;;  %v1094_v38 = vpop.f32.mrb[3].mxu1  ;;  %v598_v39 = vadd.f32 %v1261_v5, %v597_v34  ;;  %1123 = vmatprep.subr.bf16.mxu1 %v1184_v0  ;;  %v1155_v34 = vld [vmem:[%s1381_s2 + $0x28] sm:$0xff]  }
 0x304   : > { %v1075_v40 = vpop.f32.mrb[5].mxu0 }
 0x305   : > { %v427_v41 = vpop.f32.mrb[6].mxu0  ;;  %v599_v42 = vsel %vm370_vm2, %v598_v39, -inf }
 0x306   : > { %600 = vmax.xlane.f32.xlu0 %v599_v42  ;;  %v1076_v43 = vpop.f32.mrb[7].mxu0  ;;  %1124 = vmatpush3.bf16.msra.mxu1 %v1155_v34  ;;  %v1157_v41 = vld [vmem:[%s1381_s2 + $0x38] sm:$0xff]  }
 0x307   : > { %1125 = vmatprep.subr.bf16.mxu1 %v1184_v0 }
 0x308   : > { %v703_v44 = vpop.f32.mrb[4].mxu1 }
 0x309   : > { %v1105_v45 = vpop.f32.mrb[5].mxu1  ;;  %v709_v46 = vmul.f32 0.17677669, %v703_v44 }
 0x30a   : > { %v706_v47 = vpop.f32.mrb[6].mxu1  ;;  %1126 = vmatpush3.bf16.msra.mxu1 %v1156_v35 }
 0x30b   : > { %v476_v48 = vpop.f32.mrb[8].mxu0  ;;  %v1106_v49 = vpop.f32.mrb[7].mxu1  ;;  %v710_v55 = vadd.f32 %v1261_v5, %v709_v46  ;;  %1127 = vmatprep.subr.bf16.mxu1 %v1184_v0 }
 0x30c   : > { %v482_v50 = vmul.f32 0.17677669, %v476_v48  ;;  %v1081_v51 = vpop.f32.mrb[9].mxu0 }
 0x30d   : > { %v479_v52 = vpop.f32.mrb[10].mxu0  ;;  %v711_v57 = vsel %vm370_vm2, %v710_v55, -inf }
 0x30e   : > { %v1082_v53 = vpop.f32.mrb[11].mxu0  ;;  %v483_v54 = vadd.f32 %v1261_v5, %v482_v50  ;;  %1128 = vmatpush3.bf16.msra.mxu1 %v1157_v41 }
 0x310   : > { %v484_v56 = vsel %vm370_vm2, %v483_v54, -inf }
 0x311   : > { %485 = vmax.xlane.f32.xlu1 %v484_v56 }
 0x315   : > { %712 = vmax.xlane.f32.xlu1 %v711_v57  ;;  %v1027_v57 = vld [vmem:[%s1382_s3] ss:$0 sm:$0xff] }
 0x393   : > { %v601_v58 = vpop.xlane.xlu0 %600 }
 0x394   : > { %v602_v59 = vsub.f32 %v598_v39, %v601_v58 }
 0x396   : > { %v603_v60 = vmul.f32 1.442695, %v602_v59 }
 0x398   : > { %1162 = vpow2.f32 %v603_v60 }
 0x39e   : > { %v486_v61 = vpop.xlane.xlu1 %485 }
 0x39f   : > { %v487_v62 = vsub.f32 %v483_v54, %v486_v61 }
 0x3a1   : > { %v488_v4 = vmul.f32 1.442695, %v487_v62 }
 0x3a2   : > { %v1163_v63 = vpop.eup %1162  ;;  %v713_v1 = vpop.xlane.xlu1 %712 }
 0x3a3   : > { %v714_v2 = vsub.f32 %v710_v55, %v713_v1  ;;  %v605_v3 = vsel %vm370_vm2, %v1163_v63, 0.0 }
 0x3a4   : > { %606 = vadd.xlane.f32.xlu0 %v605_v3 }
 0x3a5   : > { %v715_v5 = vmul.f32 1.442695, %v714_v2 }
 0x3a7   : > { %1164 = vpow2.f32 %v715_v5 }
 0x3a8   : > { %1166 = vpow2.f32 %v488_v4 }
 0x3b1   : > { %v1165_v6 = vpop.eup %1164 }
 0x3b2   : > { %v717_v7 = vsel %vm370_vm2, %v1165_v6, 0.0  ;;  %v1167_v8 = vpop.eup %1166 }
 0x3b3   : > { %718 = vadd.xlane.f32.xlu1 %v717_v7  ;;  %v490_v9 = vsel %vm370_vm2, %v1167_v8, 0.0 }
 0x3b7   : > { %491 = vadd.xlane.f32.xlu1 %v490_v9  ;;  %v1036_v9 = vld [vmem:[%s1384_s5] ss:$0 sm:$0xff] }
 0x3ba   : > { %499 = vrot.lane.b32.xlu0 %v1021_v10, %s1186_s10 }
 0x3c8   : > { %611 = vrot.lane.b32.xlu1 %v1021_v10, %s1187_s11 }
 0x3cc   : > { %723 = vrot.lane.b32.xlu1 %v1021_v10, %s1188_s12 }
 0x431   : > { %v607_v11 = vpop.xlane.xlu0 %606 }
 0x435   : > { %v500_v12 = vpop.permute.xlu0 %499 }
 0x436   : > { %v505_v13 = vsel %vm386_vm3, %v500_v12, 0 }
 0x437   : > { %1084 = vmatpush3.bf16.msra.mxu0 %v505_v13 }
 0x438   : > { %1095 = vmatprep.subr.bf16.mxu0 %v1184_v0 }
 0x440   : > { %v719_v14 = vpop.xlane.xlu1 %718 }
 0x444   : > { %v492_v15 = vpop.xlane.xlu1 %491 }
 0x445   : > { %1168 = vrcp.f32 %v492_v15 }
 0x446   : > { %1170 = vrcp.f32 %v607_v11  ;;  %v1037_v11 = vld [vmem:[%s1385_s6] ss:$0 sm:$0xff] }
 0x447   : > { %1172 = vrcp.f32 %v719_v14 }
 0x448   : > { %v612_v17 = vpop.permute.xlu1 %611 }
 0x449   : > { %v617_v19 = vsel %vm386_vm3, %v612_v17, 0 }
 0x44c   : > { %v724_v23 = vpop.permute.xlu1 %723 }
 0x44d   : > { %v729_v24 = vsel %vm386_vm3, %v724_v23, 0 }
 0x44f   : > { %v1169_v16 = vpop.eup %1168 }
 0x450   : > { %v494_v18 = vmul.f32 %v1169_v16, %v1167_v8  ;;  %v1171_v21 = vpop.eup %1170 }
 0x451   : > { %v609_v22 = vmul.f32 %v1171_v21, %v1163_v63  ;;  %v1173_v26 = vpop.eup %1172 }
 0x452   : > { %v495_v20 = vpack.c.bf16 %v494_v18, %v494_v18  ;;  %v721_v27 = vmul.f32 %v1173_v26, %v1165_v6 }
 0x453   : > { %v610_v25 = vpack.c.bf16 %v609_v22, %v609_v22 }
 0x454   : > { %1086 = vmatmul.mubr.msk.bf16.vlgmr.msra.gmra.mrb[12].mxu0 %vm370_vm2, %v495_v20  ;;  %v722_v28 = vpack.c.bf16 %v721_v27, %v721_v27 }
 0x455   : > { %1096 = vmatpush3.bf16.msra.mxu0 %v617_v19  ;;  %1097 = vmatprep.mubr.msk.bf16.mxu0 %vm1185_vm0, %v1184_v0 }
 0x456   : > { %1107 = vmatprep.subr.bf16.mxu0 %v1184_v0 }
 0x45c   : > { %1098 = vmatmul.mubr.msk.bf16.vlgmr.msra.gmra.mrb[16].mxu0 %vm370_vm2, %v610_v25 }
 0x45d   : > { %1108 = vmatpush3.bf16.msra.mxu0 %v729_v24  ;;  %1109 = vmatprep.mubr.msk.bf16.mxu0 %vm1185_vm0, %v1184_v0 }
 0x464   : > { %1110 = vmatmul.mubr.msk.bf16.vlgmr.msra.gmra.mrb[20].mxu0 %vm370_vm2, %v722_v28 }
 0x527   : > { %v541_v36 = vpop.f32.mrb[12].mxu0 }
 0x528   : > { %772 = vrot.lane.b32.xlu0 %v541_v36, %s1188_s12  ;;  %v1087_v38 = vpop.f32.mrb[13].mxu0 }
 0x529   : > { %v544_v39 = vpop.f32.mrb[14].mxu0 }
 0x52a   : > { %v1088_v40 = vpop.f32.mrb[15].mxu0 }
 0x52f   : > { %v653_v42 = vpop.f32.mrb[16].mxu0 }
 0x530   : > { %776 = vrot.lane.b32.xlu1 %v653_v42, %s1187_s11  ;;  %v1099_v43 = vpop.f32.mrb[17].mxu0 }
 0x531   : > { %v656_v44 = vpop.f32.mrb[18].mxu0 }
 0x532   : > { %v1100_v45 = vpop.f32.mrb[19].mxu0 }
 0x537   : > { %v765_v46 = vpop.f32.mrb[20].mxu0 }
 0x538   : > { %780 = vrot.lane.b32.xlu0 %v765_v46, %s1186_s10  ;;  %v1111_v47 = vpop.f32.mrb[21].mxu0  ;;  %s303_s10 = scalar_lea.vmem %s1383_s4, %s1013_s8 }
 0x539   : > { %v768_v48 = vpop.f32.mrb[22].mxu0  ;;  %v805_v56 = vld [vmem:[%s303_s10] sm:$0xf] }
 0x53a   : > { %v1112_v49 = vpop.f32.mrb[23].mxu0  ;;  %v903_v58 = vunpack.c.l.bf16 %v805_v56 }
 0x59a   : > { %v773_v0 = vpop.permute.xlu0 %772 }
 0x59b   : > { %v783_v51 = vsel %vm315_vm1, %v1296_v37, %v773_v0 }
 0x5a2   : > { %v777_v50 = vpop.permute.xlu1 %776 }
 0x5a3   : > { %v785_v52 = vsel %vm784_vm4, %v783_v51, %v777_v50 }
 0x5aa   : > { %v781_v53 = vpop.permute.xlu0 %780 }
 0x5ab   : > { %v787_v54 = vsel %vm786_vm5, %v785_v52, %v781_v53 }
 0x5ac   : > { %v808_v55 = vpack.c.bf16 %v787_v54, %v787_v54 }
 0x5ae   : > { %1130 = vmatmul.mubr.bf16.vlgmr.msra.gmra.mrb[8].mxu1 %v808_v55 }
 0x681   : > { %v897_v59 = vpop.f32.mrb[8].mxu1 }
 0x682   : > { %v898_v60 = vadd.f32 %v1027_v57, %v897_v59  ;;  %v1131_v61 = vpop.f32.mrb[9].mxu1 }
 0x683   : > { %v900_v37 = vpop.f32.mrb[10].mxu1 }
 0x684   : > { %v1132_v62 = vpop.f32.mrb[11].mxu1  ;;  %v904_v63 = vadd.f32 %v903_v58, %v898_v60 }
 0x686   : > { %905 = vadd.xlane.f32.xlu1 %v904_v63 }
 0x713   : > { %v906_v1 = vpop.xlane.xlu1 %905 }
 0x714   : > { %v908_v2 = vmul.f32 0.0078125, %v906_v1 }
 0x716   : > { %v909_v3 = vsub.f32 %v904_v63, %v908_v2 }
 0x718   : > { %v910_v4 = vmul.f32 %v909_v3, %v909_v3 }
 0x71a   : > { %911 = vadd.xlane.f32.xlu0 %v910_v4 }
 0x7a7   : > { %v912_v5 = vpop.xlane.xlu0 %911 }
 0x7a8   : > { %v913_v6 = vmul.f32 0.0078125, %v912_v5 }
 0x7aa   : > { %v914_v7 = vadd.f32 1e-05, %v913_v6 }
 0x7ac   : > { %1174 = vrsqrt.f32 %v914_v7 }
 0x7b6   : > { %v1175_v8 = vpop.eup %1174 }
 0x7b7   : > { %v916_v10 = vmul.f32 %v1175_v8, %v909_v3 }
 0x7b9   : > { %v923_v12 = vmul.f32 %v1036_v9, %v916_v10 }
 0x7bb   : > { %v930_v13 = vadd.f32 %v1037_v11, %v923_v12 }
 0x7bd   : > { %v931_v14 = vpack.c.bf16 %v930_v13, %v930_v13 }
 0x7bf   : > { %932 = vst [vmem:[%s307_s19] sm:$0xf] %v931_v14 }
 0x7c0 PF: > { %s17_s24 = sadd.s32 1, %s1182_s24  }
 0x7c1   : > { %p14_p4 = scmp.ge.s32.totalorder %s17_s24, 4  }
 0x7c3   :  { %16 = sbr.rel (!%p14_p4) target bundleno = 1 (0x1), region = 84 }

// kernel: seq2seq_transformer_forward.30
= control target key start
LH: loop header
LB: loop body
LE: loop exit
PB: predicated region body
PF: predicated region fallthrough
CT: control target
= control target key end

     0   :  { %v270_v1 = vmov 0   ;;  %v191_v18 = vlaneseq  ;;  %s351_s1 = inlined_call_operand.vmem [shape: bf16[128,256], index: 1, kind: input, shape index: {}]   ;;  %s352_s0 = inlined_call_operand.vmem [shape: bf16[16,128], index: 0, kind: input, shape index: {}]   ;;  %s353_s2 = inlined_call_operand.vmem [shape: f32[1,256], index: 2, kind: input, shape index: {}]   ;;  %s354_s3 = inlined_call_operand.vmem [shape: bf16[16,256], index: 3, kind: output, shape index: {}]  }
   0x1   :  { %v245_v0 = vld [vmem:[%s351_s1 + $0x4] ss:$8 sps:$4 sm:$0xff]   ;;  %163 = vmatprep.mubr.bf16.mxu0 %v270_v1  ;;  %v247_v2 = vld [vmem:[%s351_s1] ss:$8 sps:$4 sm:$0xff]   ;;  %v248_v3 = vld [vmem:[%s351_s1 + $0x14] ss:$8 sps:$4 sm:$0xff]  }
   0x2   :  { %131 = vmatprep.subr.bf16.mxu0 %v245_v0  ;;  %v250_v4 = vld [vmem:[%s351_s1 + $0x10] ss:$8 sps:$4 sm:$0xff]   ;;  %v251_v5 = vld [vmem:[%s351_s1 + $0x24] ss:$8 sps:$4 sm:$0xff]   ;;  %v253_v6 = vld [vmem:[%s351_s1 + $0x20] ss:$8 sps:$4 sm:$0xff]  }
   0x3   :  { %132 = vmatpush1.bf16.msra.mxu0 %v247_v2  ;;  %v254_v7 = vld [vmem:[%s351_s1 + $0x34] ss:$8 sps:$4 sm:$0xff]   ;;  %v256_v8 = vld [vmem:[%s351_s1 + $0x30] ss:$8 sps:$4 sm:$0xff]   ;;  %v257_v9 = vld [vmem:[%s351_s1 + $0x44] ss:$8 sps:$4 sm:$0xff]  }
   0x4   :  { %133 = vmatprep.subr.bf16.mxu0 %v248_v3  ;;  %v259_v10 = vld [vmem:[%s351_s1 + $0x40] ss:$8 sps:$4 sm:$0xff]   ;;  %v260_v11 = vld [vmem:[%s351_s1 + $0x54] ss:$8 sps:$4 sm:$0xff]   ;;  %v262_v12 = vld [vmem:[%s351_s1 + $0x50] ss:$8 sps:$4 sm:$0xff]  }
   0x5   :  { %v263_v13 = vld [vmem:[%s351_s1 + $0x64] ss:$8 sps:$4 sm:$0xff]   ;;  %v265_v14 = vld [vmem:[%s351_s1 + $0x60] ss:$8 sps:$4 sm:$0xff]   ;;  %v266_v15 = vld [vmem:[%s351_s1 + $0x74] ss:$8 sps:$4 sm:$0xff]  }
   0x6   :  { %v268_v16 = vld [vmem:[%s351_s1 + $0x70] ss:$8 sps:$4 sm:$0xff]   ;;  %v269_v17 = vld [vmem:[%s352_s0] sm:$0xff]   ;;  %v192_v19 = vshrl.u32 %v191_v18, 7 }
   0x7   :  { %134 = vmatpush1.bf16.msra.mxu0 %v250_v4  ;;  %v189_v21 = vld [vmem:[%s353_s2] sm:$0x3] }
   0x8   :  { %135 = vmatprep.subr.bf16.mxu0 %v251_v5  ;;  %v193_v20 = vsub.s32 0, %v192_v19  ;;  %v197_v22 = vsub.s32 1, %v192_v19 }
   0xa   :  { %v194_v23 = vrot.slane %v189_v21, %v193_v20  ;;  %v198_v24 = vrot.slane %v189_v21, %v197_v22 }
   0xb   :  { %136 = vmatpush1.bf16.msra.mxu0 %v253_v6 }
   0xc   :  { %137 = vmatprep.subr.bf16.mxu0 %v254_v7 }
   0xf   :  { %138 = vmatpush1.bf16.msra.mxu0 %v256_v8 }
  0x10   :  { %139 = vmatprep.subr.bf16.mxu0 %v257_v9 }
  0x13   :  { %140 = vmatpush1.bf16.msra.mxu0 %v259_v10 }
  0x14   :  { %141 = vmatprep.subr.bf16.mxu0 %v260_v11 }
  0x17   :  { %142 = vmatpush1.bf16.msra.mxu0 %v262_v12 }
  0x18   :  { %143 = vmatprep.subr.bf16.mxu0 %v263_v13 }
  0x1b   :  { %144 = vmatpush1.bf16.msra.mxu0 %v265_v14 }
  0x1c   :  { %145 = vmatprep.subr.bf16.mxu0 %v266_v15 }
  0x1f   :  { %146 = vmatpush1.bf16.msra.mxu0 %v268_v16 }
  0x22   :  { %164 = vmatmul.mubr.bf16.vlgmr.msra.gmra.mrb[0].mxu0 %v269_v17 }
  0xf5   :  { %v165_v25 = vpop.f32.mrb[0].mxu0 }
  0xf6   :  { %v201_v26 = vadd.f32 %v194_v23, %v165_v25  ;;  %v167_v27 = vpop.f32.mrb[1].mxu0 }
  0xf7   :  { %v202_v28 = vadd.f32 %v198_v24, %v167_v27  ;;  %v169_v29 = vpop.f32.mrb[2].mxu0 }
  0xf8   :  { %v203_v30 = vadd.f32 %v194_v23, %v169_v29  ;;  %v171_v31 = vpop.f32.mrb[3].mxu0 }
  0xf9   :  { %v242_v32 = vpack.c.bf16 %v202_v28, %v201_v26  ;;  %v204_v33 = vadd.f32 %v198_v24, %v171_v31 }
  0xfb   :  { %217 = vst [vmem:[%s354_s3] sm:$0xff] %v242_v32  ;;  %v243_v34 = vpack.c.bf16 %v204_v33, %v203_v30 }
  0xfd   :  { %218 = vst [vmem:[%s354_s3 + $0x8] sm:$0xff] %v243_v34 }

// kernel: seq2seq_transformer_forward.28
= control target key start
LH: loop header
LB: loop body
LE: loop exit
PB: predicated region body
PF: predicated region fallthrough
CT: control target
= control target key end

     0   :  { %s1199_s24 = smov 0   ;;  %s1348_s0 = inlined_call_operand.vmem [shape: bf16[2,8,384], index: 0, kind: input, shape index: {}]   ;;  %s1349_s1 = inlined_call_operand.vmem [shape: f32[1,8,8], index: 1, kind: input, shape index: {}]   ;;  %s1350_s2 = inlined_call_operand.vmem [shape: bf16[128,128], index: 2, kind: input, shape index: {}]   ;;  %s1351_s3 = inlined_call_operand.vmem [shape: f32[1,128], index: 3, kind: input, shape index: {}]   ;;  %s1352_s4 = inlined_call_operand.vmem [shape: bf16[2,8,128], index: 4, kind: input, shape index: {}]   ;;  %s1353_s5 = inlined_call_operand.vmem [shape: f32[1,128], index: 5, kind: input, shape index: {}]   ;;  %s1354_s6 = inlined_call_operand.vmem [shape: f32[1,128], index: 6, kind: input, shape index: {}]   ;;  %s1355_s7 = inlined_call_operand.vmem [shape: bf16[2,8,128], index: 7, kind: output, shape index: {}]  }
   0x1 LB: > { %s978_s25 = sadd.s32 4294967295, %s1152_s24   ;;  %p982_p0 = scmp.ge.s32.totalorder %s1152_s24, 1  ;;  %s1152_s24 = sphi %s1199_s24, %s17_s24  }
   0x2   : > { %p246_p1 = scmp.lt.s32.totalorder %s1152_s24, 3 }
   0x4   : > { %p247_p2 = pnand %p982_p0, %p246_p1 }
   0x5   : > { %p281_p3 = scmp.lt.s32.totalorder (!%p247_p2), %s978_s25, 1  ;;  %v1154_v0 = vmov (!%p247_p2), 0.0   ;;  %vm1155_vm0 = vmmov (!%p247_p2), 0   ;;  %vm301_vm1 = vcmask (!%p247_p2), 261120   ;;  %v1230_v5 = vld [vmem:[%s1349_s1] sm:$0xff] (!%p247_p2)  ;;  %vm350_vm2 = vcmask (!%p247_p2), 64512  }
   0x6   : > { %250 = sbr.rel (%p247_p2) target bundleno = 1984 (0x7c0), region = 48  ;;  %1035 = vmatprep.subr.bf16.mxu0 (!%p247_p2), %v1154_v0  ;;  %1037 = vmatprep.mubr.msk.bf16.mxu0 (!%p247_p2), %vm1155_vm0, %v1154_v0  ;;  %s1156_s9 = smov (!%p247_p2), 96   ;;  %vm366_vm3 = vcmask (!%p247_p2), 1043456   ;;  %vm764_vm4 = vcmask (!%p247_p2), 523264   ;;  %vm766_vm5 = vcmask (!%p247_p2), 785408  }
   0x7   : > { %1059 = vmatprep.subr.bf16.mxu1 (!%p247_p2), %v1154_v0  ;;  %1061 = vmatprep.mubr.msk.bf16.mxu1 (!%p247_p2), %vm1155_vm0, %v1154_v0  ;;  %s1157_s10 = smov (!%p247_p2), 64   ;;  %s1158_s11 = smov (!%p247_p2), 32  }
   0xd   : > { %s1357_s25 = smov (!%p281_p3, %s978_s25), 1 }
   0xe   : > { %s1103_s26 = smul.u32 12, %s1357_s25  ;;  %s984_s30 = sshll.u32 %s1357_s25, 2 }
   0xf   : > { %s293_s18 = scalar_lea.vmem %s1355_s7, %s984_s30 }
  0x10   : > { %s1219_s29 = scalar_lea.vmem %s1348_s0, %s1103_s26 }
  0x11   : > { %v295_v1 = vld [vmem:[%s1219_s29] sm:$0xff]  ;;  %v1241_v18 = vld [vmem:[%s1219_s29 + $0x8] sm:$0xf] }
  0x12   : > { %v986_v2 = vcombine.high %v295_v1, %v295_v1  ;;  %v989_v12 = vcombine.low %v295_v1, %v295_v1  ;;  %v368_v19 = vsel %vm366_vm3, %v1241_v18, 0 }
  0x14   : > { %v306_v3 = vsel %vm301_vm1, %v986_v2, 0  ;;  %414 = vrot.lane.b32.xlu1 %v986_v2, %s1156_s9 }
  0x15   : > { %1036 = vmatpush3.bf16.xpose.msra.mxu0 %v306_v3 }
  0x16   : > { %1041 = vmatprep.subr.bf16.mxu0 %v1154_v0 }
  0x18   : > { %412 = vrot.lane.b32.xlu1 %v989_v12, %s1156_s9 }
  0x1c   : > { %1038 = vmatmul.mubr.msk.bf16.vlgmr.msra.gmra.mrb[0].mxu0 %vm301_vm1, %v295_v1  ;;  %527 = vrot.lane.b32.xlu1 %v989_v12, %s1157_s10 }
  0x1d   : > { %1043 = vmatprep.mubr.msk.bf16.mxu0 %vm1155_vm0, %v1154_v0  ;;  %1042 = vmatpush3.bf16.msra.mxu0 %v368_v19 }
  0x1e   : > { %1047 = vmatprep.subr.bf16.mxu0 %v1154_v0 }
  0x20   : > { %641 = vrot.lane.b32.xlu1 %v986_v2, %s1158_s11 }
  0x24   : > { %639 = vrot.lane.b32.xlu1 %v989_v12, %s1158_s11 }
  0x86   : > { %v415_v20 = vpop.permute.xlu1 %414 }
  0x87   : > { %v420_v31 = vsel %vm301_vm1, %v415_v20, 0 }
  0x8a   : > { %v413_v21 = vpop.permute.xlu1 %412 }
  0x8e   : > { %v528_v23 = vpop.permute.xlu1 %527 }
  0x92   : > { %v642_v26 = vpop.permute.xlu1 %641 }
  0x93   : > { %v647_v28 = vsel %vm301_vm1, %v642_v26, 0 }
  0x96   : > { %v640_v32 = vpop.permute.xlu1 %639 }
  0xef   : > { %v342_v4 = vpop.f32.mrb[0].mxu0 }
  0xf0   : > { %v348_v6 = vmul.f32 0.17677669, %v342_v4  ;;  %v1039_v7 = vpop.f32.mrb[1].mxu0 }
  0xf1   : > { %v345_v8 = vpop.f32.mrb[2].mxu0 }
  0xf2   : > { %v1040_v9 = vpop.f32.mrb[3].mxu0  ;;  %v349_v10 = vadd.f32 %v348_v6, %v1230_v5 }
  0xf4   : > { %v351_v11 = vsel %vm350_vm2, %v349_v10, -inf }
  0xf5   : > { %352 = vmax.xlane.f32.xlu0 %v351_v11 }
 0x182   : > { %v353_v13 = vpop.xlane.xlu0 %352 }
 0x183   : > { %v354_v14 = vsub.f32 %v349_v10, %v353_v13  ;;  %v991_v10 = vcombine.low %v1241_v18, %v1241_v18 }
 0x185   : > { %v355_v15 = vmul.f32 1.442695, %v354_v14 }
 0x187   : > { %1128 = vpow2.f32 %v355_v15 }
 0x191   : > { %v1129_v16 = vpop.eup %1128 }
 0x192   : > { %v357_v17 = vsel %vm350_vm2, %v1129_v16, 0.0 }
 0x193   : > { %358 = vadd.xlane.f32.xlu0 %v357_v17 }
 0x1a9   : > { %529 = vrot.lane.b32.xlu0 %v986_v2, %s1157_s10 }
 0x220   : > { %v359_v22 = vpop.xlane.xlu0 %358 }
 0x221   : > { %1130 = vrcp.f32 %v359_v22 }
 0x224   : > { %v530_v24 = vpop.permute.xlu0 %529 }
 0x225   : > { %v535_v25 = vsel %vm301_vm1, %v530_v24, 0 }
 0x226   : > { %1060 = vmatpush3.bf16.xpose.msra.mxu1 %v535_v25 }
 0x227   : > { %1071 = vmatprep.subr.bf16.mxu1 %v1154_v0 }
 0x22b   : > { %v1131_v27 = vpop.eup %1130 }
 0x22c   : > { %v361_v29 = vmul.f32 %v1131_v27, %v1129_v16 }
 0x22d   : > { %1062 = vmatmul.mubr.msk.bf16.vlgmr.msra.gmra.mrb[0].mxu1 %vm301_vm1, %v528_v23 }
 0x22e   : > { %v362_v30 = vpack.c.bf16 %v361_v29, %v361_v29  ;;  %1072 = vmatpush3.bf16.xpose.msra.mxu1 %v647_v28  ;;  %1073 = vmatprep.mubr.msk.bf16.mxu1 %vm1155_vm0, %v1154_v0  ;;  %v1120_v29 = vld [vmem:[%s1350_s2] sm:$0xff]  }
 0x22f   : > { %1083 = vmatprep.subr.bf16.mxu1 %v1154_v0 }
 0x230   : > { %1044 = vmatmul.mubr.msk.bf16.vlgmr.msra.gmra.mrb[4].mxu0 %vm350_vm2, %v362_v30  ;;  %v1121_v30 = vld [vmem:[%s1350_s2 + $0x8] sm:$0xff]  }
 0x231   : > { %1048 = vmatpush3.bf16.xpose.msra.mxu0 %v420_v31  ;;  %1049 = vmatprep.mubr.msk.bf16.mxu0 %vm1155_vm0, %v1154_v0  ;;  %v1122_v31 = vld [vmem:[%s1350_s2 + $0x10] sm:$0xff]  }
 0x232   : > { %1053 = vmatprep.subr.bf16.mxu0 %v1154_v0 }
 0x235   : > { %1074 = vmatmul.mubr.msk.bf16.vlgmr.msra.gmra.mrb[4].mxu1 %vm301_vm1, %v640_v32  ;;  %v1123_v32 = vld [vmem:[%s1350_s2 + $0x18] sm:$0xff]  }
 0x236   : > { %1099 = vmatprep.mubr.msk.bf16.mxu1 %vm1155_vm0, %v1154_v0  ;;  %1084 = vmatpush3.bf16.msra.mxu1 %v1120_v29 }
 0x237   : > { %1085 = vmatprep.subr.bf16.mxu1 %v1154_v0 }
 0x238   : > { %1050 = vmatmul.mubr.msk.bf16.vlgmr.msra.gmra.mrb[8].mxu0 %vm301_vm1, %v413_v21 }
 0x239   : > { %1055 = vmatprep.mubr.msk.bf16.mxu0 %vm1155_vm0, %v1154_v0 }
 0x23a   : > { %1086 = vmatpush3.bf16.msra.mxu1 %v1121_v30 }
 0x23b   : > { %1087 = vmatprep.subr.bf16.mxu1 %v1154_v0 }
 0x23e   : > { %1088 = vmatpush3.bf16.msra.mxu1 %v1122_v31 }
 0x23f   : > { %1089 = vmatprep.subr.bf16.mxu1 %v1154_v0 }
 0x242   : > { %1090 = vmatpush3.bf16.msra.mxu1 %v1123_v32 }
 0x243   : > { %1091 = vmatprep.subr.bf16.mxu1 %v1154_v0 }
 0x300   : > { %v571_v33 = vpop.f32.mrb[0].mxu1 }
 0x301   : > { %v577_v34 = vmul.f32 0.17677669, %v571_v33  ;;  %v1063_v35 = vpop.f32.mrb[1].mxu1  ;;  %v1124_v33 = vld [vmem:[%s1350_s2 + $0x20] sm:$0xff]  }
 0x302   : > { %v574_v36 = vpop.f32.mrb[2].mxu1  ;;  %1092 = vmatpush3.bf16.msra.mxu1 %v1124_v33  ;;  %v1126_v35 = vld [vmem:[%s1350_s2 + $0x30] sm:$0xff]  }
 0x303   : > { %v1265_v37 = vpop.f32.mrb[4].mxu0  ;;  %v1064_v38 = vpop.f32.mrb[3].mxu1  ;;  %v578_v39 = vadd.f32 %v577_v34, %v1230_v5  ;;  %1093 = vmatprep.subr.bf16.mxu1 %v1154_v0  ;;  %v1125_v34 = vld [vmem:[%s1350_s2 + $0x28] sm:$0xff]  }
 0x304   : > { %v1045_v40 = vpop.f32.mrb[5].mxu0 }
 0x305   : > { %v407_v41 = vpop.f32.mrb[6].mxu0  ;;  %v579_v42 = vsel %vm350_vm2, %v578_v39, -inf }
 0x306   : > { %580 = vmax.xlane.f32.xlu0 %v579_v42  ;;  %v1046_v43 = vpop.f32.mrb[7].mxu0  ;;  %1094 = vmatpush3.bf16.msra.mxu1 %v1125_v34  ;;  %v1127_v41 = vld [vmem:[%s1350_s2 + $0x38] sm:$0xff]  }
 0x307   : > { %1095 = vmatprep.subr.bf16.mxu1 %v1154_v0 }
 0x308   : > { %v683_v44 = vpop.f32.mrb[4].mxu1 }
 0x309   : > { %v1075_v45 = vpop.f32.mrb[5].mxu1  ;;  %v689_v46 = vmul.f32 0.17677669, %v683_v44 }
 0x30a   : > { %v686_v47 = vpop.f32.mrb[6].mxu1  ;;  %1096 = vmatpush3.bf16.msra.mxu1 %v1126_v35 }
 0x30b   : > { %v456_v48 = vpop.f32.mrb[8].mxu0  ;;  %v1076_v49 = vpop.f32.mrb[7].mxu1  ;;  %v690_v55 = vadd.f32 %v689_v46, %v1230_v5  ;;  %1097 = vmatprep.subr.bf16.mxu1 %v1154_v0 }
 0x30c   : > { %v462_v50 = vmul.f32 0.17677669, %v456_v48  ;;  %v1051_v51 = vpop.f32.mrb[9].mxu0 }
 0x30d   : > { %v459_v52 = vpop.f32.mrb[10].mxu0  ;;  %v691_v57 = vsel %vm350_vm2, %v690_v55, -inf }
 0x30e   : > { %v1052_v53 = vpop.f32.mrb[11].mxu0  ;;  %v463_v54 = vadd.f32 %v462_v50, %v1230_v5  ;;  %1098 = vmatpush3.bf16.msra.mxu1 %v1127_v41 }
 0x310   : > { %v464_v56 = vsel %vm350_vm2, %v463_v54, -inf }
 0x311   : > { %465 = vmax.xlane.f32.xlu1 %v464_v56 }
 0x315   : > { %692 = vmax.xlane.f32.xlu1 %v691_v57  ;;  %v997_v57 = vld [vmem:[%s1351_s3] ss:$0 sm:$0xff] }
 0x393   : > { %v581_v58 = vpop.xlane.xlu0 %580 }
 0x394   : > { %v582_v59 = vsub.f32 %v578_v39, %v581_v58 }
 0x396   : > { %v583_v60 = vmul.f32 1.442695, %v582_v59 }
 0x398   : > { %1132 = vpow2.f32 %v583_v60 }
 0x39e   : > { %v466_v61 = vpop.xlane.xlu1 %465 }
 0x39f   : > { %v467_v62 = vsub.f32 %v463_v54, %v466_v61 }
 0x3a1   : > { %v468_v4 = vmul.f32 1.442695, %v467_v62 }
 0x3a2   : > { %v1133_v63 = vpop.eup %1132  ;;  %v693_v1 = vpop.xlane.xlu1 %692 }
 0x3a3   : > { %v694_v2 = vsub.f32 %v690_v55, %v693_v1  ;;  %v585_v3 = vsel %vm350_vm2, %v1133_v63, 0.0 }
 0x3a4   : > { %586 = vadd.xlane.f32.xlu0 %v585_v3 }
 0x3a5   : > { %v695_v5 = vmul.f32 1.442695, %v694_v2 }
 0x3a7   : > { %1134 = vpow2.f32 %v695_v5 }
 0x3a8   : > { %1136 = vpow2.f32 %v468_v4 }
 0x3b1   : > { %v1135_v6 = vpop.eup %1134 }
 0x3b2   : > { %v697_v7 = vsel %vm350_vm2, %v1135_v6, 0.0  ;;  %v1137_v8 = vpop.eup %1136 }
 0x3b3   : > { %698 = vadd.xlane.f32.xlu1 %v697_v7  ;;  %v470_v9 = vsel %vm350_vm2, %v1137_v8, 0.0 }
 0x3b7   : > { %471 = vadd.xlane.f32.xlu1 %v470_v9  ;;  %v1006_v9 = vld [vmem:[%s1353_s5] ss:$0 sm:$0xff] }
 0x3ba   : > { %479 = vrot.lane.b32.xlu0 %v991_v10, %s1156_s9 }
 0x3c8   : > { %591 = vrot.lane.b32.xlu1 %v991_v10, %s1157_s10 }
 0x3cc   : > { %703 = vrot.lane.b32.xlu1 %v991_v10, %s1158_s11 }
 0x431   : > { %v587_v11 = vpop.xlane.xlu0 %586 }
 0x435   : > { %v480_v12 = vpop.permute.xlu0 %479 }
 0x436   : > { %v485_v13 = vsel %vm366_vm3, %v480_v12, 0 }
 0x437   : > { %1054 = vmatpush3.bf16.msra.mxu0 %v485_v13 }
 0x438   : > { %1065 = vmatprep.subr.bf16.mxu0 %v1154_v0 }
 0x440   : > { %v699_v14 = vpop.xlane.xlu1 %698 }
 0x444   : > { %v472_v15 = vpop.xlane.xlu1 %471 }
 0x445   : > { %1138 = vrcp.f32 %v472_v15 }
 0x446   : > { %1140 = vrcp.f32 %v587_v11  ;;  %v1007_v11 = vld [vmem:[%s1354_s6] ss:$0 sm:$0xff] }
 0x447   : > { %1142 = vrcp.f32 %v699_v14 }
 0x448   : > { %v592_v17 = vpop.permute.xlu1 %591 }
 0x449   : > { %v597_v19 = vsel %vm366_vm3, %v592_v17, 0 }
 0x44c   : > { %v704_v23 = vpop.permute.xlu1 %703 }
 0x44d   : > { %v709_v24 = vsel %vm366_vm3, %v704_v23, 0 }
 0x44f   : > { %v1139_v16 = vpop.eup %1138 }
 0x450   : > { %v474_v18 = vmul.f32 %v1139_v16, %v1137_v8  ;;  %v1141_v21 = vpop.eup %1140 }
 0x451   : > { %v589_v22 = vmul.f32 %v1141_v21, %v1133_v63  ;;  %v1143_v26 = vpop.eup %1142 }
 0x452   : > { %v475_v20 = vpack.c.bf16 %v474_v18, %v474_v18  ;;  %v701_v27 = vmul.f32 %v1143_v26, %v1135_v6 }
 0x453   : > { %v590_v25 = vpack.c.bf16 %v589_v22, %v589_v22 }
 0x454   : > { %1056 = vmatmul.mubr.msk.bf16.vlgmr.msra.gmra.mrb[12].mxu0 %vm350_vm2, %v475_v20  ;;  %v702_v28 = vpack.c.bf16 %v701_v27, %v701_v27 }
 0x455   : > { %1066 = vmatpush3.bf16.msra.mxu0 %v597_v19  ;;  %1067 = vmatprep.mubr.msk.bf16.mxu0 %vm1155_vm0, %v1154_v0 }
 0x456   : > { %1077 = vmatprep.subr.bf16.mxu0 %v1154_v0 }
 0x45c   : > { %1068 = vmatmul.mubr.msk.bf16.vlgmr.msra.gmra.mrb[16].mxu0 %vm350_vm2, %v590_v25 }
 0x45d   : > { %1078 = vmatpush3.bf16.msra.mxu0 %v709_v24  ;;  %1079 = vmatprep.mubr.msk.bf16.mxu0 %vm1155_vm0, %v1154_v0 }
 0x464   : > { %1080 = vmatmul.mubr.msk.bf16.vlgmr.msra.gmra.mrb[20].mxu0 %vm350_vm2, %v702_v28 }
 0x527   : > { %v521_v36 = vpop.f32.mrb[12].mxu0 }
 0x528   : > { %752 = vrot.lane.b32.xlu0 %v521_v36, %s1158_s11  ;;  %v1057_v38 = vpop.f32.mrb[13].mxu0 }
 0x529   : > { %v524_v39 = vpop.f32.mrb[14].mxu0 }
 0x52a   : > { %v1058_v40 = vpop.f32.mrb[15].mxu0 }
 0x52f   : > { %v633_v42 = vpop.f32.mrb[16].mxu0 }
 0x530   : > { %756 = vrot.lane.b32.xlu1 %v633_v42, %s1157_s10  ;;  %v1069_v43 = vpop.f32.mrb[17].mxu0 }
 0x531   : > { %v636_v44 = vpop.f32.mrb[18].mxu0 }
 0x532   : > { %v1070_v45 = vpop.f32.mrb[19].mxu0 }
 0x537   : > { %v745_v46 = vpop.f32.mrb[20].mxu0 }
 0x538   : > { %760 = vrot.lane.b32.xlu0 %v745_v46, %s1156_s9  ;;  %v1081_v47 = vpop.f32.mrb[21].mxu0  ;;  %s289_s9 = scalar_lea.vmem %s1352_s4, %s984_s30 }
 0x539   : > { %v748_v48 = vpop.f32.mrb[22].mxu0  ;;  %v785_v56 = vld [vmem:[%s289_s9] sm:$0xf] }
 0x53a   : > { %v1082_v49 = vpop.f32.mrb[23].mxu0  ;;  %v883_v58 = vunpack.c.l.bf16 %v785_v56 }
 0x59a   : > { %v753_v0 = vpop.permute.xlu0 %752 }
 0x59b   : > { %v763_v51 = vsel %vm301_vm1, %v1265_v37, %v753_v0 }
 0x5a2   : > { %v757_v50 = vpop.permute.xlu1 %756 }
 0x5a3   : > { %v765_v52 = vsel %vm764_vm4, %v763_v51, %v757_v50 }
 0x5aa   : > { %v761_v53 = vpop.permute.xlu0 %760 }
 0x5ab   : > { %v767_v54 = vsel %vm766_vm5, %v765_v52, %v761_v53 }
 0x5ac   : > { %v788_v55 = vpack.c.bf16 %v767_v54, %v767_v54 }
 0x5ae   : > { %1100 = vmatmul.mubr.bf16.vlgmr.msra.gmra.mrb[8].mxu1 %v788_v55 }
 0x681   : > { %v877_v59 = vpop.f32.mrb[8].mxu1 }
 0x682   : > { %v878_v60 = vadd.f32 %v997_v57, %v877_v59  ;;  %v1101_v61 = vpop.f32.mrb[9].mxu1 }
 0x683   : > { %v880_v37 = vpop.f32.mrb[10].mxu1 }
 0x684   : > { %v1102_v62 = vpop.f32.mrb[11].mxu1  ;;  %v884_v63 = vadd.f32 %v883_v58, %v878_v60 }
 0x686   : > { %885 = vadd.xlane.f32.xlu1 %v884_v63 }
 0x713   : > { %v886_v1 = vpop.xlane.xlu1 %885 }
 0x714   : > { %v888_v2 = vmul.f32 0.0078125, %v886_v1 }
 0x716   : > { %v889_v3 = vsub.f32 %v884_v63, %v888_v2 }
 0x718   : > { %v890_v4 = vmul.f32 %v889_v3, %v889_v3 }
 0x71a   : > { %891 = vadd.xlane.f32.xlu0 %v890_v4 }
 0x7a7   : > { %v892_v5 = vpop.xlane.xlu0 %891 }
 0x7a8   : > { %v893_v6 = vmul.f32 0.0078125, %v892_v5 }
 0x7aa   : > { %v894_v7 = vadd.f32 1e-05, %v893_v6 }
 0x7ac   : > { %1144 = vrsqrt.f32 %v894_v7 }
 0x7b6   : > { %v1145_v8 = vpop.eup %1144 }
 0x7b7   : > { %v896_v10 = vmul.f32 %v1145_v8, %v889_v3 }
 0x7b9   : > { %v903_v12 = vmul.f32 %v1006_v9, %v896_v10 }
 0x7bb   : > { %v910_v13 = vadd.f32 %v1007_v11, %v903_v12 }
 0x7bd   : > { %v911_v14 = vpack.c.bf16 %v910_v13, %v910_v13 }
 0x7bf   : > { %912 = vst [vmem:[%s293_s18] sm:$0xf] %v911_v14 }
 0x7c0 PF: > { %s17_s24 = sadd.s32 1, %s1152_s24  }
 0x7c1   : > { %p14_p4 = scmp.ge.s32.totalorder %s17_s24, 4  }
 0x7c3   :  { %16 = sbr.rel (!%p14_p4) target bundleno = 1 (0x1), region = 81 }

// kernel: seq2seq_transformer_forward.29
= control target key start
LH: loop header
LB: loop body
LE: loop exit
PB: predicated region body
PF: predicated region fallthrough
CT: control target
= control target key end

     0   :  { %v227_v0 = vmov 0.0   ;;  %vm228_vm0 = vmmov 0   ;;  %s282_s1 = inlined_call_operand.vmem [shape: bf16[128,128], index: 1, kind: input, shape index: {}]   ;;  %s283_s0 = inlined_call_operand.vmem [shape: bf16[16,128], index: 0, kind: input, shape index: {}]   ;;  %s284_s2 = inlined_call_operand.vmem [shape: f32[1,128], index: 2, kind: input, shape index: {}]   ;;  %s285_s3 = inlined_call_operand.vmem [shape: bf16[16,128], index: 3, kind: output, shape index: {}]  }
   0x1   :  { %196 = vmatprep.subr.bf16.mxu0 %v227_v0  ;;  %v218_v1 = vld [vmem:[%s282_s1] sm:$0xff]   ;;  %212 = vmatprep.mubr.msk.bf16.mxu0 %vm228_vm0, %v227_v0  ;;  %v219_v2 = vld [vmem:[%s282_s1 + $0x8] sm:$0xff]   ;;  %v220_v3 = vld [vmem:[%s282_s1 + $0x10] sm:$0xff]  }
   0x2   :  { %197 = vmatpush3.bf16.msra.mxu0 %v218_v1  ;;  %v221_v4 = vld [vmem:[%s282_s1 + $0x18] sm:$0xff]   ;;  %v222_v5 = vld [vmem:[%s282_s1 + $0x20] sm:$0xff]   ;;  %v223_v6 = vld [vmem:[%s282_s1 + $0x28] sm:$0xff]  }
   0x3   :  { %198 = vmatprep.subr.bf16.mxu0 %v227_v0  ;;  %v224_v7 = vld [vmem:[%s282_s1 + $0x30] sm:$0xff]   ;;  %v225_v8 = vld [vmem:[%s282_s1 + $0x38] sm:$0xff]   ;;  %v226_v9 = vld [vmem:[%s283_s0] sm:$0xff]  }
   0x4   :  { %v177_v11 = vld [vmem:[%s284_s2] ss:$0 sm:$0xff] }
   0x6   :  { %199 = vmatpush3.bf16.msra.mxu0 %v219_v2 }
   0x7   :  { %200 = vmatprep.subr.bf16.mxu0 %v227_v0 }
   0xa   :  { %201 = vmatpush3.bf16.msra.mxu0 %v220_v3 }
   0xb   :  { %202 = vmatprep.subr.bf16.mxu0 %v227_v0 }
   0xe   :  { %203 = vmatpush3.bf16.msra.mxu0 %v221_v4 }
   0xf   :  { %204 = vmatprep.subr.bf16.mxu0 %v227_v0 }
  0x12   :  { %205 = vmatpush3.bf16.msra.mxu0 %v222_v5 }
  0x13   :  { %206 = vmatprep.subr.bf16.mxu0 %v227_v0 }
  0x16   :  { %207 = vmatpush3.bf16.msra.mxu0 %v223_v6 }
  0x17   :  { %208 = vmatprep.subr.bf16.mxu0 %v227_v0 }
  0x1a   :  { %209 = vmatpush3.bf16.msra.mxu0 %v224_v7 }
  0x1b   :  { %210 = vmatprep.subr.bf16.mxu0 %v227_v0 }
  0x1e   :  { %211 = vmatpush3.bf16.msra.mxu0 %v225_v8 }
  0x21   :  { %213 = vmatmul.mubr.bf16.vlgmr.msra.gmra.mrb[0].mxu0 %v226_v9 }
  0xf4   :  { %v129_v10 = vpop.f32.mrb[0].mxu0 }
  0xf5   :  { %v214_v12 = vpop.f32.mrb[1].mxu0  ;;  %v152_v14 = vadd.f32 %v177_v11, %v129_v10 }
  0xf6   :  { %v132_v13 = vpop.f32.mrb[2].mxu0 }
  0xf7   :  { %v153_v15 = vadd.f32 %v177_v11, %v132_v13  ;;  %v215_v16 = vpop.f32.mrb[3].mxu0 }
  0xf9   :  { %v185_v17 = vpack.c.bf16 %v153_v15, %v152_v14 }
  0xfb   :  { %186 = vst [vmem:[%s285_s3] sm:$0xff] %v185_v17  }

// kernel: seq2seq_transformer_forward.39
= control target key start
LH: loop header
LB: loop body
LE: loop exit
PB: predicated region body
PF: predicated region fallthrough
CT: control target
= control target key end

     0   :  { %v296_v2 = vmov 0   ;;  %s386_s0 = inlined_call_operand.vmem [shape: bf16[16,128], index: 0, kind: input, shape index: {}]   ;;  %s387_s1 = inlined_call_operand.vmem [shape: bf16[128,256], index: 1, kind: input, shape index: {}]   ;;  %s388_s2 = inlined_call_operand.vmem [shape: f32[1,256], index: 2, kind: input, shape index: {}]   ;;  %s389_s3 = inlined_call_operand.hbm [shape: f32[16,256], index: 3, kind: output, shape index: {}]  }
   0x1   :  { %v247_v0 = vld [vmem:[%s387_s1 + $0x4] ss:$8 sps:$4 sm:$0xff]   ;;  %v249_v1 = vld [vmem:[%s387_s1] ss:$8 sps:$4 sm:$0xff]   ;;  %164 = vmatprep.mubr.bf16.mxu0 %v296_v2  ;;  %v250_v3 = vld [vmem:[%s387_s1 + $0x14] ss:$8 sps:$4 sm:$0xff]  }
   0x2   :  { %132 = vmatprep.subr.bf16.mxu0 %v247_v0  ;;  %v252_v4 = vld [vmem:[%s387_s1 + $0x10] ss:$8 sps:$4 sm:$0xff]   ;;  %v253_v5 = vld [vmem:[%s387_s1 + $0x24] ss:$8 sps:$4 sm:$0xff]   ;;  %v255_v6 = vld [vmem:[%s387_s1 + $0x20] ss:$8 sps:$4 sm:$0xff]  }
   0x3   :  { %133 = vmatpush1.bf16.msra.mxu0 %v249_v1  ;;  %v256_v7 = vld [vmem:[%s387_s1 + $0x34] ss:$8 sps:$4 sm:$0xff]   ;;  %v258_v8 = vld [vmem:[%s387_s1 + $0x30] ss:$8 sps:$4 sm:$0xff]  }
   0x4   :  { %134 = vmatprep.subr.bf16.mxu0 %v250_v3 }
   0x7   :  { %135 = vmatpush1.bf16.msra.mxu0 %v252_v4 }
   0x8   :  { %136 = vmatprep.subr.bf16.mxu0 %v253_v5 }
   0xb   :  { %137 = vmatpush1.bf16.msra.mxu0 %v255_v6 }
   0xc   :  { %8 = vsyncpa [#allocation4], 0  ;;  %138 = vmatprep.subr.bf16.mxu0 %v256_v7  ;;  %v259_v9 = vld [vmem:[%s387_s1 + $0x44] ss:$8 sps:$4 sm:$0xff]   ;;  %v261_v10 = vld [vmem:[%s387_s1 + $0x40] ss:$8 sps:$4 sm:$0xff]   ;;  %v192_v18 = vlaneseq }
   0xd   :  { %v262_v11 = vld [vmem:[%s387_s1 + $0x54] ss:$8 sps:$4 sm:$0xff]   ;;  %v264_v12 = vld [vmem:[%s387_s1 + $0x50] ss:$8 sps:$4 sm:$0xff]   ;;  %v265_v13 = vld [vmem:[%s387_s1 + $0x64] ss:$8 sps:$4 sm:$0xff]  }
   0xe   :  { %v267_v14 = vld [vmem:[%s387_s1 + $0x60] ss:$8 sps:$4 sm:$0xff]   ;;  %v268_v15 = vld [vmem:[%s387_s1 + $0x74] ss:$8 sps:$4 sm:$0xff]   ;;  %v270_v16 = vld [vmem:[%s387_s1 + $0x70] ss:$8 sps:$4 sm:$0xff]  }
   0xf   :  { %139 = vmatpush1.bf16.msra.mxu0 %v258_v8  ;;  %v271_v17 = vld [vmem:[%s386_s0] sm:$0xff]   ;;  %v193_v19 = vshrl.u32 %v192_v18, 7  ;;  %s297_s21 = smov [#allocation3]  }
  0x10   :  { %140 = vmatprep.subr.bf16.mxu0 %v259_v9  ;;  %v190_v21 = vld [vmem:[%s388_s2] sm:$0x3]  ;;  %s215_s1 = sshll.u32 %s297_s21, 4  ;;  %s216_s1 = int_to_ptr.vmem [resolvable:$true] %s215_s1 }
  0x11   :  { %v194_v20 = vsub.s32 0, %v193_v19  ;;  %v198_v22 = vsub.s32 1, %v193_v19  ;;  %s272_s0 = scalar_lea.vmem %s216_s1, 512  ;;  %p277_p1 = scmp.lt.s32.totalorder %s216_s1, %s216_s1 }
  0x12   :  { %p273_p0 = scmp.ne.s32.totalorder %s216_s1, %s272_s0  ;;  %p278_p2 = scmp.lt.s32.totalorder %s272_s0, %s272_s0 }
  0x13   :  { %141 = vmatpush1.bf16.msra.mxu0 %v261_v10  ;;  %v195_v23 = vrot.slane %v190_v21, %v194_v20  ;;  %v199_v24 = vrot.slane %v190_v21, %v198_v22 }
  0x14   :  { %142 = vmatprep.subr.bf16.mxu0 %v262_v11  ;;  %p279_p3 = por %p278_p2, %p277_p1 }
  0x16   :  { %p280_p4 = pnand %p279_p3, %p273_p0 }
  0x17   :  { %143 = vmatpush1.bf16.msra.mxu0 %v264_v12 }
  0x18   :  { %144 = vmatprep.subr.bf16.mxu0 %v265_v13 }
  0x1b   :  { %145 = vmatpush1.bf16.msra.mxu0 %v267_v14 }
  0x1c   :  { %146 = vmatprep.subr.bf16.mxu0 %v268_v15 }
  0x1f   :  { %147 = vmatpush1.bf16.msra.mxu0 %v270_v16 }
  0x22   :  { %165 = vmatmul.mubr.bf16.vlgmr.msra.gmra.mrb[0].mxu0 %v271_v17 }
  0xf5   :  { %v166_v25 = vpop.f32.mrb[0].mxu0 }
  0xf6   :  { %v202_v26 = vadd.f32 %v195_v23, %v166_v25  ;;  %v168_v27 = vpop.f32.mrb[1].mxu0 }
  0xf7   :  { %v203_v28 = vadd.f32 %v199_v24, %v168_v27  ;;  %v170_v29 = vpop.f32.mrb[2].mxu0 }
  0xf8   :  { %206 = vst [vmem:[#allocation3] sm:$0xff] %v202_v26  ;;  %v204_v30 = vadd.f32 %v195_v23, %v170_v29  ;;  %v172_v31 = vpop.f32.mrb[3].mxu0 }
  0xf9   :  { %207 = vst [vmem:[#allocation3 + $0x8] sm:$0xff] %v203_v28  ;;  %v205_v32 = vadd.f32 %v199_v24, %v172_v31 }
  0xfa   :  { %208 = vst [vmem:[#allocation3 + $0x10] sm:$0xff] %v204_v30 }
  0xfb   :  { %209 = vst [vmem:[#allocation3 + $0x18] sm:$0xff] %v205_v32 }
  0xfc   :  { %283 = shalt.err (!%p280_p4)
}
  0xfd   :  { %s284_s23 = scalar_lea.hbm %s389_s3, 512 }
  0xfe   :  { %p285_p5 = scmp.ne.s32.totalorder %s389_s3, %s284_s23  ;;  %p288_p6 = scmp.lt.u32.totalorder %s284_s23, %s389_s3 }
 0x100   :  { %p290_p7 = pnand %p288_p6, %p285_p5 }
 0x102   :  { %293 = shalt.err (!%p290_p7)
}
 0x103   :  { %s298_s28 = smov 256   ;;  %s299_s29 = smov 16  }
 0x104   :  { %221 = dma.vmem_to_hbm [thread:$0]  %s216_s1, 512, %s389_s3, [#allocation4], %s298_s28, %s298_s28, %s299_s29  }
 0x105   :  { %294 = dma.done.wait [#allocation4], 512  }
 0x106   :  { %295 = vsyncadd [#allocation4], 4294966784 }
 0x107   :  { %225 = vsyncpa [#allocation4], 1 }

// kernel: seq2seq_transformer_forward.31
= control target key start
LH: loop header
LB: loop body
LE: loop exit
PB: predicated region body
PF: predicated region fallthrough
CT: control target
= control target key end

     0   :  { %s1225_s24 = smov 0   ;;  %s1366_s0 = inlined_call_operand.vmem [shape: bf16[2,8,128], index: 0, kind: input, shape index: {}]   ;;  %s1367_s1 = inlined_call_operand.vmem [shape: bf16[2,8,256], index: 1, kind: input, shape index: {}]   ;;  %s1368_s2 = inlined_call_operand.vmem [shape: bf16[128,128], index: 2, kind: input, shape index: {}]   ;;  %s1369_s3 = inlined_call_operand.vmem [shape: f32[1,128], index: 3, kind: input, shape index: {}]   ;;  %s1370_s4 = inlined_call_operand.vmem [shape: bf16[2,8,128], index: 4, kind: input, shape index: {}]   ;;  %s1371_s5 = inlined_call_operand.vmem [shape: f32[1,128], index: 5, kind: input, shape index: {}]   ;;  %s1372_s6 = inlined_call_operand.vmem [shape: f32[1,128], index: 6, kind: input, shape index: {}]   ;;  %s1373_s7 = inlined_call_operand.vmem [shape: bf16[2,8,128], index: 7, kind: output, shape index: {}]  }
   0x1 LB: > { %s1002_s25 = sadd.s32 4294967295, %s1178_s24   ;;  %p1006_p0 = scmp.ge.s32.totalorder %s1178_s24, 1  ;;  %s1178_s24 = sphi %s1225_s24, %s17_s24  }
   0x2   : > { %p255_p1 = scmp.lt.s32.totalorder %s1178_s24, 3 }
   0x4   : > { %p256_p2 = pnand %p1006_p0, %p255_p1 }
   0x5   : > { %p294_p3 = scmp.lt.s32.totalorder (!%p256_p2), %s1002_s25, 1  ;;  %v1180_v0 = vmov (!%p256_p2), 0.0   ;;  %vm1181_vm0 = vmmov (!%p256_p2), 0   ;;  %vm314_vm1 = vcmask (!%p256_p2), 261120   ;;  %vm362_vm2 = vcmask (!%p256_p2), 64512   ;;  %s1182_s11 = smov (!%p256_p2), 96  }
   0x6   : > { %259 = sbr.rel (%p256_p2) target bundleno = 1977 (0x7b9), region = 48  ;;  %1062 = vmatprep.subr.bf16.mxu0 (!%p256_p2), %v1180_v0  ;;  %1064 = vmatprep.mubr.msk.bf16.mxu0 (!%p256_p2), %vm1181_vm0, %v1180_v0  ;;  %s1183_s12 = smov (!%p256_p2), 64   ;;  %vm381_vm3 = vcmask (!%p256_p2), 1043456   ;;  %vm776_vm4 = vcmask (!%p256_p2), 523264   ;;  %vm778_vm5 = vcmask (!%p256_p2), 785408  }
   0x7   : > { %1086 = vmatprep.subr.bf16.mxu1 (!%p256_p2), %v1180_v0  ;;  %1088 = vmatprep.mubr.msk.bf16.mxu1 (!%p256_p2), %vm1181_vm0, %v1180_v0  ;;  %s1184_s13 = smov (!%p256_p2), 32  }
   0xd   : > { %s1375_s25 = smov (!%p294_p3, %s1002_s25), 1 }
   0xe   : > { %s1036_s26 = sshll.u32 %s1375_s25, 3  ;;  %s1242_s30 = sshll.u32 %s1375_s25, 2 }
   0xf   : > { %s302_s29 = scalar_lea.vmem %s1367_s1, %s1036_s26  ;;  %s297_s10 = scalar_lea.vmem %s1366_s0, %s1242_s30 }
  0x10   : > { %v313_v1 = vld [vmem:[%s302_s29] sm:$0xff]  ;;  %s310_s20 = scalar_lea.vmem %s1373_s7, %s1242_s30 }
  0x11   : > { %v319_v2 = vsel %vm314_vm1, %v313_v1, 0  ;;  %v312_v3 = vld [vmem:[%s297_s10] sm:$0xf]  ;;  %v1016_v10 = vcombine.low %v313_v1, %v313_v1  ;;  %v1260_v17 = vcombine.high %v313_v1, %v313_v1 }
  0x12   : > { %1063 = vmatpush3.bf16.xpose.msra.mxu0 %v319_v2  ;;  %v1015_v11 = vcombine.low %v312_v3, %v312_v3 }
  0x13   : > { %1068 = vmatprep.subr.bf16.mxu0 %v1180_v0  ;;  %432 = vrot.lane.b32.xlu1 %v1016_v10, %s1182_s11  ;;  %v383_v18 = vsel %vm381_vm3, %v1260_v17, 0 }
  0x17   : > { %428 = vrot.lane.b32.xlu1 %v1015_v11, %s1182_s11 }
  0x19   : > { %1065 = vmatmul.mubr.msk.bf16.vlgmr.msra.gmra.mrb[0].mxu0 %vm314_vm1, %v312_v3 }
  0x1a   : > { %1070 = vmatprep.mubr.msk.bf16.mxu0 %vm1181_vm0, %v1180_v0  ;;  %1069 = vmatpush3.bf16.msra.mxu0 %v383_v18 }
  0x1b   : > { %541 = vrot.lane.b32.xlu1 %v1015_v11, %s1183_s12  ;;  %1074 = vmatprep.subr.bf16.mxu0 %v1180_v0 }
  0x1f   : > { %654 = vrot.lane.b32.xlu1 %v1016_v10, %s1184_s13 }
  0x23   : > { %652 = vrot.lane.b32.xlu1 %v1015_v11, %s1184_s13 }
  0x85   : > { %v433_v19 = vpop.permute.xlu1 %432 }
  0x86   : > { %v438_v30 = vsel %vm314_vm1, %v433_v19, 0 }
  0x89   : > { %v429_v20 = vpop.permute.xlu1 %428 }
  0x8d   : > { %v542_v22 = vpop.permute.xlu1 %541 }
  0x91   : > { %v655_v25 = vpop.permute.xlu1 %654 }
  0x92   : > { %v660_v27 = vsel %vm314_vm1, %v655_v25, 0  ;;  %v1147_v25 = vld [vmem:[%s1368_s2 + $0x8] sm:$0xff]  }
  0x95   : > { %v653_v31 = vpop.permute.xlu1 %652 }
  0xec   : > { %v355_v4 = vpop.f32.mrb[0].mxu0 }
  0xed   : > { %v361_v5 = vmul.f32 0.17677669, %v355_v4  ;;  %v1066_v6 = vpop.f32.mrb[1].mxu0 }
  0xee   : > { %v358_v7 = vpop.f32.mrb[2].mxu0 }
  0xef   : > { %v1067_v8 = vpop.f32.mrb[3].mxu0  ;;  %v363_v9 = vsel %vm362_vm2, %v361_v5, -inf }
  0xf0   : > { %364 = vmax.xlane.f32.xlu0 %v363_v9 }
 0x17d   : > { %v365_v12 = vpop.xlane.xlu0 %364 }
 0x17e   : > { %v366_v13 = vsub.f32 %v361_v5, %v365_v12 }
 0x180   : > { %v367_v14 = vmul.f32 1.442695, %v366_v13 }
 0x182   : > { %1154 = vpow2.f32 %v367_v14 }
 0x18c   : > { %v1155_v15 = vpop.eup %1154 }
 0x18d   : > { %v369_v16 = vsel %vm362_vm2, %v1155_v15, 0.0 }
 0x18e   : > { %370 = vadd.xlane.f32.xlu0 %v369_v16 }
 0x1a4   : > { %543 = vrot.lane.b32.xlu0 %v1016_v10, %s1183_s12 }
 0x21b   : > { %v371_v21 = vpop.xlane.xlu0 %370 }
 0x21c   : > { %1156 = vrcp.f32 %v371_v21 }
 0x21f   : > { %v544_v23 = vpop.permute.xlu0 %543 }
 0x220   : > { %v549_v24 = vsel %vm314_vm1, %v544_v23, 0 }
 0x221   : > { %1087 = vmatpush3.bf16.xpose.msra.mxu1 %v549_v24  ;;  %v1146_v24 = vld [vmem:[%s1368_s2] sm:$0xff]  }
 0x222   : > { %1098 = vmatprep.subr.bf16.mxu1 %v1180_v0 }
 0x226   : > { %v1157_v26 = vpop.eup %1156 }
 0x227   : > { %v373_v28 = vmul.f32 %v1157_v26, %v1155_v15  ;;  %v1148_v26 = vld [vmem:[%s1368_s2 + $0x10] sm:$0xff]  }
 0x228   : > { %1089 = vmatmul.mubr.msk.bf16.vlgmr.msra.gmra.mrb[0].mxu1 %vm314_vm1, %v542_v22 }
 0x229   : > { %v374_v29 = vpack.c.bf16 %v373_v28, %v373_v28  ;;  %1099 = vmatpush3.bf16.xpose.msra.mxu1 %v660_v27  ;;  %1100 = vmatprep.mubr.msk.bf16.mxu1 %vm1181_vm0, %v1180_v0  ;;  %v1149_v27 = vld [vmem:[%s1368_s2 + $0x18] sm:$0xff]   ;;  %v1150_v28 = vld [vmem:[%s1368_s2 + $0x20] sm:$0xff]  }
 0x22a   : > { %1110 = vmatprep.subr.bf16.mxu1 %v1180_v0 }
 0x22b   : > { %1071 = vmatmul.mubr.msk.bf16.vlgmr.msra.gmra.mrb[4].mxu0 %vm362_vm2, %v374_v29  ;;  %v1151_v29 = vld [vmem:[%s1368_s2 + $0x28] sm:$0xff]  }
 0x22c   : > { %1075 = vmatpush3.bf16.xpose.msra.mxu0 %v438_v30  ;;  %1076 = vmatprep.mubr.msk.bf16.mxu0 %vm1181_vm0, %v1180_v0  ;;  %v1152_v30 = vld [vmem:[%s1368_s2 + $0x30] sm:$0xff]  }
 0x22d   : > { %1080 = vmatprep.subr.bf16.mxu0 %v1180_v0 }
 0x230   : > { %1101 = vmatmul.mubr.msk.bf16.vlgmr.msra.gmra.mrb[4].mxu1 %vm314_vm1, %v653_v31 }
 0x231   : > { %1126 = vmatprep.mubr.msk.bf16.mxu1 %vm1181_vm0, %v1180_v0  ;;  %1111 = vmatpush3.bf16.msra.mxu1 %v1146_v24 }
 0x232   : > { %1112 = vmatprep.subr.bf16.mxu1 %v1180_v0 }
 0x233   : > { %1077 = vmatmul.mubr.msk.bf16.vlgmr.msra.gmra.mrb[8].mxu0 %vm314_vm1, %v429_v20 }
 0x234   : > { %1082 = vmatprep.mubr.msk.bf16.mxu0 %vm1181_vm0, %v1180_v0 }
 0x235   : > { %1113 = vmatpush3.bf16.msra.mxu1 %v1147_v25 }
 0x236   : > { %1114 = vmatprep.subr.bf16.mxu1 %v1180_v0 }
 0x239   : > { %1115 = vmatpush3.bf16.msra.mxu1 %v1148_v26 }
 0x23a   : > { %1116 = vmatprep.subr.bf16.mxu1 %v1180_v0 }
 0x23d   : > { %1117 = vmatpush3.bf16.msra.mxu1 %v1149_v27 }
 0x23e   : > { %1118 = vmatprep.subr.bf16.mxu1 %v1180_v0 }
 0x241   : > { %1119 = vmatpush3.bf16.msra.mxu1 %v1150_v28 }
 0x242   : > { %1120 = vmatprep.subr.bf16.mxu1 %v1180_v0 }
 0x245   : > { %1121 = vmatpush3.bf16.msra.mxu1 %v1151_v29 }
 0x246   : > { %1122 = vmatprep.subr.bf16.mxu1 %v1180_v0 }
 0x249   : > { %1123 = vmatpush3.bf16.msra.mxu1 %v1152_v30 }
 0x24a   : > { %1124 = vmatprep.subr.bf16.mxu1 %v1180_v0 }
 0x2fb   : > { %v585_v32 = vpop.f32.mrb[0].mxu1 }
 0x2fc   : > { %v591_v33 = vmul.f32 0.17677669, %v585_v32  ;;  %v1090_v34 = vpop.f32.mrb[1].mxu1 }
 0x2fd   : > { %v588_v35 = vpop.f32.mrb[2].mxu1 }
 0x2fe   : > { %v1284_v36 = vpop.f32.mrb[4].mxu0  ;;  %v1091_v37 = vpop.f32.mrb[3].mxu1  ;;  %v592_v38 = vsel %vm362_vm2, %v591_v33, -inf  ;;  %v1153_v35 = vld [vmem:[%s1368_s2 + $0x38] sm:$0xff]  }
 0x2ff   : > { %593 = vmax.xlane.f32.xlu0 %v592_v38  ;;  %v1072_v39 = vpop.f32.mrb[5].mxu0  ;;  %1125 = vmatpush3.bf16.msra.mxu1 %v1153_v35 }
 0x300   : > { %v422_v40 = vpop.f32.mrb[6].mxu0 }
 0x301   : > { %v1073_v41 = vpop.f32.mrb[7].mxu0 }
 0x303   : > { %v696_v42 = vpop.f32.mrb[4].mxu1 }
 0x304   : > { %v1102_v43 = vpop.f32.mrb[5].mxu1  ;;  %v702_v49 = vmul.f32 0.17677669, %v696_v42 }
 0x305   : > { %v699_v44 = vpop.f32.mrb[6].mxu1 }
 0x306   : > { %v474_v45 = vpop.f32.mrb[8].mxu0  ;;  %v1103_v46 = vpop.f32.mrb[7].mxu1  ;;  %v703_v53 = vsel %vm362_vm2, %v702_v49, -inf }
 0x307   : > { %v480_v47 = vmul.f32 0.17677669, %v474_v45  ;;  %v1078_v48 = vpop.f32.mrb[9].mxu0 }
 0x308   : > { %v477_v50 = vpop.f32.mrb[10].mxu0 }
 0x309   : > { %v1079_v51 = vpop.f32.mrb[11].mxu0  ;;  %v481_v52 = vsel %vm362_vm2, %v480_v47, -inf }
 0x30a   : > { %482 = vmax.xlane.f32.xlu1 %v481_v52  ;;  %v1023_v52 = vld [vmem:[%s1369_s3] ss:$0 sm:$0xff] }
 0x30e   : > { %704 = vmax.xlane.f32.xlu1 %v703_v53 }
 0x38c   : > { %v594_v54 = vpop.xlane.xlu0 %593 }
 0x38d   : > { %v595_v55 = vsub.f32 %v591_v33, %v594_v54 }
 0x38f   : > { %v596_v56 = vmul.f32 1.442695, %v595_v55 }
 0x391   : > { %1158 = vpow2.f32 %v596_v56 }
 0x397   : > { %v483_v57 = vpop.xlane.xlu1 %482 }
 0x398   : > { %v484_v58 = vsub.f32 %v480_v47, %v483_v57 }
 0x39a   : > { %v485_v63 = vmul.f32 1.442695, %v484_v58 }
 0x39b   : > { %v1159_v59 = vpop.eup %1158  ;;  %v705_v60 = vpop.xlane.xlu1 %704 }
 0x39c   : > { %v706_v61 = vsub.f32 %v702_v49, %v705_v60  ;;  %v598_v62 = vsel %vm362_vm2, %v1159_v59, 0.0 }
 0x39d   : > { %599 = vadd.xlane.f32.xlu0 %v598_v62 }
 0x39e   : > { %v707_v1 = vmul.f32 1.442695, %v706_v61 }
 0x3a0   : > { %1160 = vpow2.f32 %v707_v1 }
 0x3a1   : > { %1162 = vpow2.f32 %v485_v63 }
 0x3aa   : > { %v1161_v2 = vpop.eup %1160 }
 0x3ab   : > { %v709_v3 = vsel %vm362_vm2, %v1161_v2, 0.0  ;;  %v1163_v4 = vpop.eup %1162 }
 0x3ac   : > { %710 = vadd.xlane.f32.xlu1 %v709_v3  ;;  %v487_v5 = vsel %vm362_vm2, %v1163_v4, 0.0 }
 0x3b0   : > { %488 = vadd.xlane.f32.xlu1 %v487_v5 }
 0x3b3   : > { %493 = vrot.lane.b32.xlu0 %v1260_v17, %s1182_s11 }
 0x3c1   : > { %604 = vrot.lane.b32.xlu1 %v1260_v17, %s1183_s12 }
 0x3c5   : > { %715 = vrot.lane.b32.xlu1 %v1260_v17, %s1184_s13 }
 0x42a   : > { %v600_v6 = vpop.xlane.xlu0 %599 }
 0x42e   : > { %v494_v7 = vpop.permute.xlu0 %493 }
 0x42f   : > { %v499_v8 = vsel %vm381_vm3, %v494_v7, 0 }
 0x430   : > { %1081 = vmatpush3.bf16.msra.mxu0 %v499_v8 }
 0x431   : > { %1092 = vmatprep.subr.bf16.mxu0 %v1180_v0 }
 0x439   : > { %v711_v9 = vpop.xlane.xlu1 %710 }
 0x43d   : > { %v489_v10 = vpop.xlane.xlu1 %488 }
 0x43e   : > { %1164 = vrcp.f32 %v489_v10 }
 0x43f   : > { %1166 = vrcp.f32 %v600_v6  ;;  %v1033_v6 = vld [vmem:[%s1372_s6] ss:$0 sm:$0xff] }
 0x440   : > { %1168 = vrcp.f32 %v711_v9 }
 0x441   : > { %v605_v12 = vpop.permute.xlu1 %604 }
 0x442   : > { %v610_v14 = vsel %vm381_vm3, %v605_v12, 0 }
 0x445   : > { %v716_v18 = vpop.permute.xlu1 %715 }
 0x446   : > { %v721_v19 = vsel %vm381_vm3, %v716_v18, 0 }
 0x448   : > { %v1165_v11 = vpop.eup %1164 }
 0x449   : > { %v491_v13 = vmul.f32 %v1165_v11, %v1163_v4  ;;  %v1167_v16 = vpop.eup %1166  ;;  %v1032_v4 = vld [vmem:[%s1371_s5] ss:$0 sm:$0xff] }
 0x44a   : > { %v602_v17 = vmul.f32 %v1167_v16, %v1159_v59  ;;  %v1169_v21 = vpop.eup %1168 }
 0x44b   : > { %v492_v15 = vpack.c.bf16 %v491_v13, %v491_v13  ;;  %v713_v22 = vmul.f32 %v1169_v21, %v1161_v2 }
 0x44c   : > { %v603_v20 = vpack.c.bf16 %v602_v17, %v602_v17 }
 0x44d   : > { %1083 = vmatmul.mubr.msk.bf16.vlgmr.msra.gmra.mrb[12].mxu0 %vm362_vm2, %v492_v15  ;;  %v714_v23 = vpack.c.bf16 %v713_v22, %v713_v22 }
 0x44e   : > { %1093 = vmatpush3.bf16.msra.mxu0 %v610_v14  ;;  %1094 = vmatprep.mubr.msk.bf16.mxu0 %vm1181_vm0, %v1180_v0 }
 0x44f   : > { %1104 = vmatprep.subr.bf16.mxu0 %v1180_v0 }
 0x455   : > { %1095 = vmatmul.mubr.msk.bf16.vlgmr.msra.gmra.mrb[16].mxu0 %vm362_vm2, %v603_v20 }
 0x456   : > { %1105 = vmatpush3.bf16.msra.mxu0 %v721_v19  ;;  %1106 = vmatprep.mubr.msk.bf16.mxu0 %vm1181_vm0, %v1180_v0 }
 0x45d   : > { %1107 = vmatmul.mubr.msk.bf16.vlgmr.msra.gmra.mrb[20].mxu0 %vm362_vm2, %v714_v23 }
 0x520   : > { %v535_v31 = vpop.f32.mrb[12].mxu0 }
 0x521   : > { %764 = vrot.lane.b32.xlu0 %v535_v31, %s1184_s13  ;;  %v1084_v32 = vpop.f32.mrb[13].mxu0 }
 0x522   : > { %v538_v33 = vpop.f32.mrb[14].mxu0 }
 0x523   : > { %v1085_v34 = vpop.f32.mrb[15].mxu0 }
 0x528   : > { %v646_v37 = vpop.f32.mrb[16].mxu0 }
 0x529   : > { %768 = vrot.lane.b32.xlu1 %v646_v37, %s1183_s12  ;;  %v1096_v38 = vpop.f32.mrb[17].mxu0  ;;  %s306_s12 = scalar_lea.vmem %s1370_s4, %s1242_s30 }
 0x52a   : > { %v649_v39 = vpop.f32.mrb[18].mxu0  ;;  %v797_v51 = vld [vmem:[%s306_s12] sm:$0xf] }
 0x52b   : > { %v1097_v40 = vpop.f32.mrb[19].mxu0  ;;  %v895_v53 = vunpack.c.l.bf16 %v797_v51 }
 0x530   : > { %v757_v41 = vpop.f32.mrb[20].mxu0 }
 0x531   : > { %772 = vrot.lane.b32.xlu0 %v757_v41, %s1182_s11  ;;  %v1108_v42 = vpop.f32.mrb[21].mxu0 }
 0x532   : > { %v760_v43 = vpop.f32.mrb[22].mxu0 }
 0x533   : > { %v1109_v44 = vpop.f32.mrb[23].mxu0 }
 0x593   : > { %v765_v0 = vpop.permute.xlu0 %764 }
 0x594   : > { %v775_v46 = vsel %vm314_vm1, %v1284_v36, %v765_v0 }
 0x59b   : > { %v769_v45 = vpop.permute.xlu1 %768 }
 0x59c   : > { %v777_v47 = vsel %vm776_vm4, %v775_v46, %v769_v45 }
 0x5a3   : > { %v773_v48 = vpop.permute.xlu0 %772 }
 0x5a4   : > { %v779_v49 = vsel %vm778_vm5, %v777_v47, %v773_v48 }
 0x5a5   : > { %v800_v50 = vpack.c.bf16 %v779_v49, %v779_v49 }
 0x5a7   : > { %1127 = vmatmul.mubr.bf16.vlgmr.msra.gmra.mrb[8].mxu1 %v800_v50 }
 0x67a   : > { %v889_v54 = vpop.f32.mrb[8].mxu1 }
 0x67b   : > { %v890_v55 = vadd.f32 %v1023_v52, %v889_v54  ;;  %v1128_v56 = vpop.f32.mrb[9].mxu1 }
 0x67c   : > { %v892_v57 = vpop.f32.mrb[10].mxu1 }
 0x67d   : > { %v1129_v36 = vpop.f32.mrb[11].mxu1  ;;  %v896_v58 = vadd.f32 %v895_v53, %v890_v55 }
 0x67f   : > { %897 = vadd.xlane.f32.xlu1 %v896_v58 }
 0x70c   : > { %v898_v59 = vpop.xlane.xlu1 %897 }
 0x70d   : > { %v900_v60 = vmul.f32 0.0078125, %v898_v59 }
 0x70f   : > { %v901_v61 = vsub.f32 %v896_v58, %v900_v60 }
 0x711   : > { %v902_v62 = vmul.f32 %v901_v61, %v901_v61 }
 0x713   : > { %903 = vadd.xlane.f32.xlu0 %v902_v62 }
 0x7a0   : > { %v904_v63 = vpop.xlane.xlu0 %903 }
 0x7a1   : > { %v905_v1 = vmul.f32 0.0078125, %v904_v63 }
 0x7a3   : > { %v906_v2 = vadd.f32 1e-05, %v905_v1 }
 0x7a5   : > { %1170 = vrsqrt.f32 %v906_v2 }
 0x7af   : > { %v1171_v3 = vpop.eup %1170 }
 0x7b0   : > { %v908_v5 = vmul.f32 %v1171_v3, %v901_v61 }
 0x7b2   : > { %v915_v7 = vmul.f32 %v1032_v4, %v908_v5 }
 0x7b4   : > { %v922_v8 = vadd.f32 %v1033_v6, %v915_v7 }
 0x7b6   : > { %v923_v9 = vpack.c.bf16 %v922_v8, %v922_v8 }
 0x7b8   : > { %924 = vst [vmem:[%s310_s20] sm:$0xf] %v923_v9 }
 0x7b9 PF: > { %s17_s24 = sadd.s32 1, %s1178_s24  }
 0x7ba   : > { %p14_p4 = scmp.ge.s32.totalorder %s17_s24, 4  }
 0x7bc   :  { %16 = sbr.rel (!%p14_p4) target bundleno = 1 (0x1), region = 84 }

</bundles_post_ra>
